<compile_context>
chip_gen: v7x
topology: tpu7x:2x2x1
jax: 0.10.0
libtpu: 0.0.40
codegen_flags: <defaults>
</compile_context>

<pallas_src>
import numpy as np
import jax
import jax.numpy as jnp
from jax.experimental import pallas as pl
from jax.experimental.pallas import tpu as pltpu

# ----------------------------- configuration -------------------------------
IN_CH = 4
IN_CH_PAD = 8              # input channels zero-padded to 8 -> aligned concats
FEATS = (8, 16, 32)        # features_per_stage
NUM_CLASSES = 3
NEG_SLOPE = 0.01           # nn.LeakyReLU default
H0 = W0 = 16               # input spatial size used by this script
HW0 = H0 * W0
BATCH = 2                  # geometry constants are built for this batch size

BF16 = jnp.bfloat16
F32 = jnp.float32

# --------------------------- packed weight layout ---------------------------
# Conv weights are stored flattened as (Cout, K):
#   3x3 conv:           W[co, (kh*3+kw)*Cin + ci] = torch_W[co, ci, kh, kw]
#   ConvTranspose2d 2x2: W[co, (kh*2+kw)*Cin + ci] = torch_W[ci, co, kh, kw]
#   1x1 conv:           W[co, ci]                 = torch_W[co, ci, 0, 0]
# Decoder convs expect channel order [transpconv output, skip] -- matching
# torch.cat((up, skip), dim=1) in UNetDecoder.
_WEIGHT_DEFS = (
    # name   cout        K                     has_bias
    ("stem", FEATS[0], 9 * IN_CH_PAD,          True),   # stem conv 4(+4 pad)->8
    ("e0c1", FEATS[0], 9 * FEATS[0],           True),
    ("e0c2", FEATS[0], 9 * FEATS[0],           True),
    ("e1c1", FEATS[1], 9 * FEATS[0],           True),   # stride 2
    ("e1c2", FEATS[1], 9 * FEATS[1],           True),
    ("e1sk", FEATS[1], FEATS[0],               False),  # skip 1x1 (bias=False)
    ("e2c1", FEATS[2], 9 * FEATS[1],           True),   # stride 2
    ("e2c2", FEATS[2], 9 * FEATS[2],           True),
    ("e2sk", FEATS[2], FEATS[1],               False),
    ("up0",  FEATS[1], 4 * FEATS[2],           True),   # transpconv 32->16
    ("d0",   FEATS[1], 9 * (2 * FEATS[1]),     True),   # conv(cat) 32->16
    ("up1",  FEATS[0], 4 * FEATS[1],           True),   # transpconv 16->8
    ("d1",   FEATS[0], 9 * (2 * FEATS[0]),     True),   # conv(cat) 16->8
    ("seg",  NUM_CLASSES, FEATS[0],            True),   # 1x1 seg head
)


def _round8(n):
    return (n + 7) // 8 * 8


def _build_wspec():
    spec, off = {}, 0
    for name, co, k, _ in _WEIGHT_DEFS:
        spec[name] = (off, co, k)
        off += _round8(co)
    return spec, off


_WSPEC, W_ROWS = _build_wspec()              # 224 rows
W_COLS = max(k for _, _, k, _ in _WEIGHT_DEFS)   # 288


# --------------------------- in-kernel helpers ------------------------------
def _lrelu(v):
    return jnp.where(v >= 0, v, v * NEG_SLOPE)


def _roll_lanes(x, d, length):
    """Circular lane shift: result[:, q] = x[:, (q + d) % length] (static d)."""
    s = (-d) % length
    if s == 0:
        return x
    return jnp.concatenate([x[:, length - s:], x[:, :length - s]], axis=1)


# --------------------------------- kernel -----------------------------------
def _unet_kernel(x_ref, w_ref, b_ref, m16_ref, m8_ref, m4_ref,
                 s16_ref, s8_ref, p16_ref, p8_ref,
                 r0_ref, r1_ref, um0_ref, um1_ref, o_ref):

    def getw(name):
        off, co, k = _WSPEC[name]
        return w_ref[off:off + co, :k], b_ref[off:off + co, :]

    def conv3x3(x, name, img_w, m_ref, act=True, sel_ref=None):
        """3x3 conv, pad=1, on channel-first (Cin, B*HW) f32 activation.

        9 taps built with lane rolls + 0/1 boundary masks, concatenated along
        the K (sublane) axis and folded into ONE bf16 MXU dot (f32 accum).
        Stride-2 convs select their output columns with `sel_ref` (exact 0/1
        selection applied to the bf16 im2col, so no extra rounding)."""
        w, b = getw(name)
        length = x.shape[1]
        taps = []
        for kh in range(3):
            for kw in range(3):
                d = (kh - 1) * img_w + (kw - 1)
                t = _roll_lanes(x, d, length)
                if d != 0:
                    t = t * m_ref[kh * 3 + kw:kh * 3 + kw + 1, :]
                taps.append(t)
        xcol = jnp.concatenate(taps, axis=0).astype(BF16)        # (9*Cin, L)
        if sel_ref is not None:                                  # stride 2
            xcol = jnp.dot(xcol, sel_ref[...],
                           preferred_element_type=F32).astype(BF16)
        y = jnp.dot(w, xcol, preferred_element_type=F32) + b
        return _lrelu(y) if act else y

    def tconv2x2(x, name, r_ref, um_ref):
        """ConvTranspose2d(k=s=2): nearest-upsample (0/1 matmul) + sub-pixel
        masked stack + one channel-mix MXU dot + bias (no nonlinearity)."""
        w, b = getw(name)
        xn = jnp.dot(x.astype(BF16), r_ref[...], preferred_element_type=F32)
        blocks = [xn * um_ref[p:p + 1, :] for p in range(4)]
        xcat = jnp.concatenate(blocks, axis=0).astype(BF16)      # (4*Cin, Lout)
        return jnp.dot(w, xcat, preferred_element_type=F32) + b

    def conv1x1(x, name, add_bias):
        w, b = getw(name)
        y = jnp.dot(w, x.astype(BF16), preferred_element_type=F32)
        return y + b if add_bias else y

    # input (B, Cpad, HW) -> channel-first with batch folded into lanes
    x = jnp.concatenate([x_ref[i] for i in range(BATCH)], axis=1)   # (8, 512)

    # ------------------------------ encoder --------------------------------
    # stem: ConvDropoutNormReLU = conv3x3 s1 + LeakyReLU
    a = conv3x3(x, "stem", 16, m16_ref)                              # (8, 512)

    # stage 0: BasicBlockD, stride 1, identity skip
    h = conv3x3(a, "e0c1", 16, m16_ref)
    y = conv3x3(h, "e0c2", 16, m16_ref, act=False)
    s0 = _lrelu(y + a)                                               # (8, 512)

    # stage 1: BasicBlockD, stride 2, 8->16, skip = AvgPool2 + 1x1 (no bias)
    h = conv3x3(s0, "e1c1", 16, m16_ref, sel_ref=s16_ref)            # (16, 128)
    y = conv3x3(h, "e1c2", 8, m8_ref, act=False)
    pooled = jnp.dot(s0.astype(BF16), p16_ref[...], preferred_element_type=F32)
    r = conv1x1(pooled, "e1sk", add_bias=False)
    s1 = _lrelu(y + r)                                               # (16, 128)

    # stage 2: BasicBlockD, stride 2, 16->32
    h = conv3x3(s1, "e2c1", 8, m8_ref, sel_ref=s8_ref)               # (32, 32)
    y = conv3x3(h, "e2c2", 4, m4_ref, act=False)
    pooled = jnp.dot(s1.astype(BF16), p8_ref[...], preferred_element_type=F32)
    r = conv1x1(pooled, "e2sk", add_bias=False)
    s2 = _lrelu(y + r)                                               # (32, 32)

    # ------------------------------ decoder --------------------------------
    up = tconv2x2(s2, "up0", r0_ref, um0_ref)                        # (16, 128)
    d0 = conv3x3(jnp.concatenate([up, s1], axis=0), "d0", 8, m8_ref) # (16, 128)
    up = tconv2x2(d0, "up1", r1_ref, um1_ref)                        # (8, 512)
    d1 = conv3x3(jnp.concatenate([up, s0], axis=0), "d1", 16, m16_ref)

    # segmentation head (deep_supervision=False -> only the last seg layer)
    seg = conv1x1(d1, "seg", add_bias=True)                          # (3, 512)

    # lane-dense output: (B, NUM_CLASSES, 256), last dim multiple of 128
    for bidx in range(BATCH):
        o_ref[bidx] = seg[:, bidx * HW0:(bidx + 1) * HW0]


# --------------------------- geometry constants -----------------------------
def _conv_masks_np(H, W):
    """(9, H*W) validity mask of each 3x3 tap (pad=1), indexed by output pos."""
    m = np.zeros((9, H * W), np.float32)
    for kh in range(3):
        for kw in range(3):
            k, dh, dw = kh * 3 + kw, kh - 1, kw - 1
            for h in range(H):
                if not (0 <= h + dh < H):
                    continue
                for w in range(W):
                    if 0 <= w + dw < W:
                        m[k, h * W + w] = 1.0
    return m


def _select_np(H, W, s):
    """(H*W, Ho*Wo) 0/1 matrix picking stride-s conv output centers."""
    Ho, Wo = H // s, W // s
    S = np.zeros((H * W, Ho * Wo), np.float32)
    for ho in range(Ho):
        for wo in range(Wo):
            S[(ho * s) * W + (wo * s), ho * Wo + wo] = 1.0
    return S


def _avgpool_np(H, W, s):
    """(H*W, Ho*Wo) AvgPool2d(kernel=stride=s) matrix (entries 1/s^2)."""
    Ho, Wo = H // s, W // s
    P = np.zeros((H * W, Ho * Wo), np.float32)
    inv = 1.0 / (s * s)
    for ho in range(Ho):
        for wo in range(Wo):
            for dh in range(s):
                for dw in range(s):
                    P[(ho * s + dh) * W + (wo * s + dw), ho * Wo + wo] = inv
    return P


def _nn_upsample_np(H, W, s):
    """(H*W, Hs*Ws) nearest-neighbour upsample replication matrix (0/1)."""
    Ho, Wo = H * s, W * s
    R = np.zeros((H * W, Ho * Wo), np.float32)
    for ho in range(Ho):
        for wo in range(Wo):
            R[(ho // s) * W + (wo // s), ho * Wo + wo] = 1.0
    return R


def _subpix_masks_np(H, W, s):
    """(s*s, Hs*Ws) sub-pixel parity masks for ConvTranspose2d(k=s=2)."""
    Ho, Wo = H * s, W * s
    M = np.zeros((s * s, Ho * Wo), np.float32)
    for ho in range(Ho):
        for wo in range(Wo):
            M[(ho % s) * s + (wo % s), ho * Wo + wo] = 1.0
    return M


def _bdiag(M, batch):
    return np.kron(np.eye(batch, dtype=np.float32), M)


def _btile(M, batch):
    return np.tile(M, (1, batch))


# ------------------------------ parameters ----------------------------------
def init_params(seed=0, batch=BATCH):
    rng = np.random.default_rng(seed)
    wpack = np.zeros((W_ROWS, W_COLS), np.float32)
    bpack = np.zeros((W_ROWS, 1), np.float32)
    for name, co, k, has_b in _WEIGHT_DEFS:
        off = _WSPEC[name][0]
        w = rng.standard_normal((co, k)).astype(np.float32) * np.sqrt(2.0 / k)
        if name == "stem":      # zero columns that multiply the padded channels
            w = w.reshape(co, 9, IN_CH_PAD)
            w[:, :, IN_CH:] = 0.0
            w = w.reshape(co, k)
        wpack[off:off + co, :k] = w
        if has_b:
            bpack[off:off + co, 0] = 0.01 * rng.standard_normal(co)

    return {
        "wpack": jnp.asarray(wpack, BF16),
        "bpack": jnp.asarray(bpack, F32),
        # conv boundary masks (tiled over batch along lanes)
        "m16": jnp.asarray(_btile(_conv_masks_np(16, 16), batch), F32),
        "m8":  jnp.asarray(_btile(_conv_masks_np(8, 8), batch), F32),
        "m4":  jnp.asarray(_btile(_conv_masks_np(4, 4), batch), F32),
        # stride-2 output selection + avg-pool (block-diagonal over batch)
        "s16": jnp.asarray(_bdiag(_select_np(16, 16, 2), batch), BF16),
        "s8":  jnp.asarray(_bdiag(_select_np(8, 8, 2), batch), BF16),
        "p16": jnp.asarray(_bdiag(_avgpool_np(16, 16, 2), batch), BF16),
        "p8":  jnp.asarray(_bdiag(_avgpool_np(8, 8, 2), batch), BF16),
        # transposed-conv nearest-upsample + sub-pixel parity masks
        "r0":  jnp.asarray(_bdiag(_nn_upsample_np(4, 4, 2), batch), BF16),
        "r1":  jnp.asarray(_bdiag(_nn_upsample_np(8, 8, 2), batch), BF16),
        "um0": jnp.asarray(_btile(_subpix_masks_np(4, 4, 2), batch), F32),
        "um1": jnp.asarray(_btile(_subpix_masks_np(8, 8, 2), batch), F32),
    }


# ------------------------------- forward ------------------------------------
def forward(params, x_nchw):
    B, C, H, W = x_nchw.shape
    assert (B, C, H, W) == (BATCH, IN_CH, H0, W0), \
        "geometry constants were built for batch=2, 4x16x16 inputs"
    # free reshape NCHW -> (B, C, HW); zero-pad channels 4 -> 8 (aligned concats)
    x = x_nchw.reshape(B, C, H * W).astype(F32)
    x = jnp.concatenate(
        [x, jnp.zeros((B, IN_CH_PAD - IN_CH, H * W), F32)], axis=1)

    out = pl.pallas_call(
        _unet_kernel,
        out_shape=jax.ShapeDtypeStruct((B, NUM_CLASSES, H * W), F32),
        compiler_params=pltpu.CompilerParams(vmem_limit_bytes=32 * 1024 * 1024),
    )(x, params["wpack"], params["bpack"],
      params["m16"], params["m8"], params["m4"],
      params["s16"], params["s8"], params["p16"], params["p8"],
      params["r0"], params["r1"], params["um0"], params["um1"])

    return out.reshape(B, NUM_CLASSES, H, W)       # NCHW, no host transpose


# --------------------------------- main --------------------------------------
if __name__ == "__main__":
    params = init_params(0)
    x = jax.random.normal(jax.random.PRNGKey(0), (BATCH, IN_CH, H0, W0), F32)
    out = jax.block_until_ready(jax.jit(forward)(params, x))
    assert out.shape == (BATCH, NUM_CLASSES, H0, W0), out.shape
    assert bool(jnp.all(jnp.isfinite(out)))
    print("KERNEL_OK")
</pallas_src>

<mosaic_0001>
module attributes {stable_mosaic.version = 11 : i64} {
  func.func @_unet_kernel(%arg0: memref<2x8x256xf32, #tpu.memory_space<vmem>>, %arg1: memref<224x288xbf16, #tpu.memory_space<vmem>>, %arg2: memref<224x1xf32, #tpu.memory_space<vmem>>, %arg3: memref<9x512xf32, #tpu.memory_space<vmem>>, %arg4: memref<9x128xf32, #tpu.memory_space<vmem>>, %arg5: memref<9x32xf32, #tpu.memory_space<vmem>>, %arg6: memref<512x128xbf16, #tpu.memory_space<vmem>>, %arg7: memref<128x32xbf16, #tpu.memory_space<vmem>>, %arg8: memref<512x128xbf16, #tpu.memory_space<vmem>>, %arg9: memref<128x32xbf16, #tpu.memory_space<vmem>>, %arg10: memref<32x128xbf16, #tpu.memory_space<vmem>>, %arg11: memref<128x512xbf16, #tpu.memory_space<vmem>>, %arg12: memref<4x128xf32, #tpu.memory_space<vmem>>, %arg13: memref<4x512xf32, #tpu.memory_space<vmem>>, %arg14: memref<2x3x256xf32, #tpu.memory_space<vmem>>) attributes {dimension_semantics = [], scalar_prefetch = 0 : i64, scratch_operands = 0 : i64, tpu.core_type = #tpu.core_type<tc>} {
    %c0 = arith.constant 0 : index
    %c0_0 = arith.constant 0 : index
    %c0_1 = arith.constant 0 : index
    %0 = vector.load %arg0[%c0, %c0_0, %c0_1] : memref<2x8x256xf32, #tpu.memory_space<vmem>>, vector<1x8x256xf32>
    %1 = vector.shape_cast %0 : vector<1x8x256xf32> to vector<8x256xf32>
    %c1 = arith.constant 1 : index
    %c0_2 = arith.constant 0 : index
    %c0_3 = arith.constant 0 : index
    %2 = vector.load %arg0[%c1, %c0_2, %c0_3] : memref<2x8x256xf32, #tpu.memory_space<vmem>>, vector<1x8x256xf32>
    %3 = vector.shape_cast %2 : vector<1x8x256xf32> to vector<8x256xf32>
    %4 = tpu.concatenate %1, %3 in 1 : vector<8x256xf32>, vector<8x256xf32> -> vector<8x512xf32>
    %c0_4 = arith.constant 0 : index
    %c0_5 = arith.constant 0 : index
    %5 = vector.load %arg1[%c0_4, %c0_5] : memref<224x288xbf16, #tpu.memory_space<vmem>>, vector<8x72xbf16>
    %c0_6 = arith.constant 0 : index
    %c0_7 = arith.constant 0 : index
    %6 = vector.load %arg2[%c0_6, %c0_7] : memref<224x1xf32, #tpu.memory_space<vmem>>, vector<8x1xf32>
    %7 = vector.extract_strided_slice %4 {offsets = [0, 495], sizes = [8, 17], strides = [1, 1]} : vector<8x512xf32> to vector<8x17xf32>
    %8 = vector.extract_strided_slice %4 {offsets = [0, 0], sizes = [8, 495], strides = [1, 1]} : vector<8x512xf32> to vector<8x495xf32>
    %9 = tpu.concatenate %7, %8 in 1 : vector<8x17xf32>, vector<8x495xf32> -> vector<8x512xf32>
    %c0_8 = arith.constant 0 : index
    %c0_9 = arith.constant 0 : index
    %10 = vector.load %arg3[%c0_8, %c0_9] : memref<9x512xf32, #tpu.memory_space<vmem>>, vector<1x512xf32>
    %11 = vector.broadcast %10 : vector<1x512xf32> to vector<8x512xf32>
    %12 = arith.mulf %9, %11 : vector<8x512xf32>
    %13 = vector.extract_strided_slice %4 {offsets = [0, 496], sizes = [8, 16], strides = [1, 1]} : vector<8x512xf32> to vector<8x16xf32>
    %14 = vector.extract_strided_slice %4 {offsets = [0, 0], sizes = [8, 496], strides = [1, 1]} : vector<8x512xf32> to vector<8x496xf32>
    %15 = tpu.concatenate %13, %14 in 1 : vector<8x16xf32>, vector<8x496xf32> -> vector<8x512xf32>
    %c1_10 = arith.constant 1 : index
    %c0_11 = arith.constant 0 : index
    %16 = vector.load %arg3[%c1_10, %c0_11] : memref<9x512xf32, #tpu.memory_space<vmem>>, vector<1x512xf32>
    %17 = vector.broadcast %16 : vector<1x512xf32> to vector<8x512xf32>
    %18 = arith.mulf %15, %17 : vector<8x512xf32>
    %19 = vector.extract_strided_slice %4 {offsets = [0, 497], sizes = [8, 15], strides = [1, 1]} : vector<8x512xf32> to vector<8x15xf32>
    %20 = vector.extract_strided_slice %4 {offsets = [0, 0], sizes = [8, 497], strides = [1, 1]} : vector<8x512xf32> to vector<8x497xf32>
    %21 = tpu.concatenate %19, %20 in 1 : vector<8x15xf32>, vector<8x497xf32> -> vector<8x512xf32>
    %c2 = arith.constant 2 : index
    %c0_12 = arith.constant 0 : index
    %22 = vector.load %arg3[%c2, %c0_12] : memref<9x512xf32, #tpu.memory_space<vmem>>, vector<1x512xf32>
    %23 = vector.broadcast %22 : vector<1x512xf32> to vector<8x512xf32>
    %24 = arith.mulf %21, %23 : vector<8x512xf32>
    %25 = vector.extract_strided_slice %4 {offsets = [0, 511], sizes = [8, 1], strides = [1, 1]} : vector<8x512xf32> to vector<8x1xf32>
    %26 = vector.extract_strided_slice %4 {offsets = [0, 0], sizes = [8, 511], strides = [1, 1]} : vector<8x512xf32> to vector<8x511xf32>
    %27 = tpu.concatenate %25, %26 in 1 : vector<8x1xf32>, vector<8x511xf32> -> vector<8x512xf32>
    %c3 = arith.constant 3 : index
    %c0_13 = arith.constant 0 : index
    %28 = vector.load %arg3[%c3, %c0_13] : memref<9x512xf32, #tpu.memory_space<vmem>>, vector<1x512xf32>
    %29 = vector.broadcast %28 : vector<1x512xf32> to vector<8x512xf32>
    %30 = arith.mulf %27, %29 : vector<8x512xf32>
    %31 = vector.extract_strided_slice %4 {offsets = [0, 1], sizes = [8, 511], strides = [1, 1]} : vector<8x512xf32> to vector<8x511xf32>
    %32 = vector.extract_strided_slice %4 {offsets = [0, 0], sizes = [8, 1], strides = [1, 1]} : vector<8x512xf32> to vector<8x1xf32>
    %33 = tpu.concatenate %31, %32 in 1 : vector<8x511xf32>, vector<8x1xf32> -> vector<8x512xf32>
    %c5 = arith.constant 5 : index
    %c0_14 = arith.constant 0 : index
    %34 = vector.load %arg3[%c5, %c0_14] : memref<9x512xf32, #tpu.memory_space<vmem>>, vector<1x512xf32>
    %35 = vector.broadcast %34 : vector<1x512xf32> to vector<8x512xf32>
    %36 = arith.mulf %33, %35 : vector<8x512xf32>
    %37 = vector.extract_strided_slice %4 {offsets = [0, 15], sizes = [8, 497], strides = [1, 1]} : vector<8x512xf32> to vector<8x497xf32>
    %38 = vector.extract_strided_slice %4 {offsets = [0, 0], sizes = [8, 15], strides = [1, 1]} : vector<8x512xf32> to vector<8x15xf32>
    %39 = tpu.concatenate %37, %38 in 1 : vector<8x497xf32>, vector<8x15xf32> -> vector<8x512xf32>
    %c6 = arith.constant 6 : index
    %c0_15 = arith.constant 0 : index
    %40 = vector.load %arg3[%c6, %c0_15] : memref<9x512xf32, #tpu.memory_space<vmem>>, vector<1x512xf32>
    %41 = vector.broadcast %40 : vector<1x512xf32> to vector<8x512xf32>
    %42 = arith.mulf %39, %41 : vector<8x512xf32>
    %43 = vector.extract_strided_slice %4 {offsets = [0, 16], sizes = [8, 496], strides = [1, 1]} : vector<8x512xf32> to vector<8x496xf32>
    %44 = vector.extract_strided_slice %4 {offsets = [0, 0], sizes = [8, 16], strides = [1, 1]} : vector<8x512xf32> to vector<8x16xf32>
    %45 = tpu.concatenate %43, %44 in 1 : vector<8x496xf32>, vector<8x16xf32> -> vector<8x512xf32>
    %c7 = arith.constant 7 : index
    %c0_16 = arith.constant 0 : index
    %46 = vector.load %arg3[%c7, %c0_16] : memref<9x512xf32, #tpu.memory_space<vmem>>, vector<1x512xf32>
    %47 = vector.broadcast %46 : vector<1x512xf32> to vector<8x512xf32>
    %48 = arith.mulf %45, %47 : vector<8x512xf32>
    %49 = vector.extract_strided_slice %4 {offsets = [0, 17], sizes = [8, 495], strides = [1, 1]} : vector<8x512xf32> to vector<8x495xf32>
    %50 = vector.extract_strided_slice %4 {offsets = [0, 0], sizes = [8, 17], strides = [1, 1]} : vector<8x512xf32> to vector<8x17xf32>
    %51 = tpu.concatenate %49, %50 in 1 : vector<8x495xf32>, vector<8x17xf32> -> vector<8x512xf32>
    %c8 = arith.constant 8 : index
    %c0_17 = arith.constant 0 : index
    %52 = vector.load %arg3[%c8, %c0_17] : memref<9x512xf32, #tpu.memory_space<vmem>>, vector<1x512xf32>
    %53 = vector.broadcast %52 : vector<1x512xf32> to vector<8x512xf32>
    %54 = arith.mulf %51, %53 : vector<8x512xf32>
    %55 = tpu.concatenate %12, %18, %24, %30, %4, %36, %42, %48, %54 in 0 : vector<8x512xf32>, vector<8x512xf32>, vector<8x512xf32>, vector<8x512xf32>, vector<8x512xf32>, vector<8x512xf32>, vector<8x512xf32>, vector<8x512xf32>, vector<8x512xf32> -> vector<72x512xf32>
    %56 = arith.truncf %55 : vector<72x512xf32> to vector<72x512xbf16>
    %cst = arith.constant dense<0.000000e+00> : vector<8x512xf32>
    %57 = tpu.matmul %5, %56, %cst {dimension_numbers = #tpu.dot_dimension_numbers<[1], [0], [0], [1], [0, 0, 1, 1], [], []>} : vector<8x72xbf16>, vector<72x512xbf16>, vector<8x512xf32> -> vector<8x512xf32>
    %58 = vector.broadcast %6 : vector<8x1xf32> to vector<8x512xf32>
    %59 = arith.addf %57, %58 : vector<8x512xf32>
    %cst_18 = arith.constant 0.000000e+00 : f32
    %60 = vector.broadcast %cst_18 : f32 to vector<8x512xf32>
    %61 = arith.cmpf oge, %59, %60 : vector<8x512xf32>
    %cst_19 = arith.constant 0.00999999977 : f32
    %62 = vector.broadcast %cst_19 : f32 to vector<8x512xf32>
    %63 = arith.mulf %59, %62 : vector<8x512xf32>
    %64 = arith.select %61, %59, %63 : vector<8x512xi1>, vector<8x512xf32>
    %c8_20 = arith.constant 8 : index
    %c0_21 = arith.constant 0 : index
    %65 = vector.load %arg1[%c8_20, %c0_21] : memref<224x288xbf16, #tpu.memory_space<vmem>>, vector<8x72xbf16>
    %c8_22 = arith.constant 8 : index
    %c0_23 = arith.constant 0 : index
    %66 = vector.load %arg2[%c8_22, %c0_23] : memref<224x1xf32, #tpu.memory_space<vmem>>, vector<8x1xf32>
    %67 = vector.extract_strided_slice %64 {offsets = [0, 495], sizes = [8, 17], strides = [1, 1]} : vector<8x512xf32> to vector<8x17xf32>
    %68 = vector.extract_strided_slice %64 {offsets = [0, 0], sizes = [8, 495], strides = [1, 1]} : vector<8x512xf32> to vector<8x495xf32>
    %69 = tpu.concatenate %67, %68 in 1 : vector<8x17xf32>, vector<8x495xf32> -> vector<8x512xf32>
    %c0_24 = arith.constant 0 : index
    %c0_25 = arith.constant 0 : index
    %70 = vector.load %arg3[%c0_24, %c0_25] : memref<9x512xf32, #tpu.memory_space<vmem>>, vector<1x512xf32>
    %71 = vector.broadcast %70 : vector<1x512xf32> to vector<8x512xf32>
    %72 = arith.mulf %69, %71 : vector<8x512xf32>
    %73 = vector.extract_strided_slice %64 {offsets = [0, 496], sizes = [8, 16], strides = [1, 1]} : vector<8x512xf32> to vector<8x16xf32>
    %74 = vector.extract_strided_slice %64 {offsets = [0, 0], sizes = [8, 496], strides = [1, 1]} : vector<8x512xf32> to vector<8x496xf32>
    %75 = tpu.concatenate %73, %74 in 1 : vector<8x16xf32>, vector<8x496xf32> -> vector<8x512xf32>
    %c1_26 = arith.constant 1 : index
    %c0_27 = arith.constant 0 : index
    %76 = vector.load %arg3[%c1_26, %c0_27] : memref<9x512xf32, #tpu.memory_space<vmem>>, vector<1x512xf32>
    %77 = vector.broadcast %76 : vector<1x512xf32> to vector<8x512xf32>
    %78 = arith.mulf %75, %77 : vector<8x512xf32>
    %79 = vector.extract_strided_slice %64 {offsets = [0, 497], sizes = [8, 15], strides = [1, 1]} : vector<8x512xf32> to vector<8x15xf32>
    %80 = vector.extract_strided_slice %64 {offsets = [0, 0], sizes = [8, 497], strides = [1, 1]} : vector<8x512xf32> to vector<8x497xf32>
    %81 = tpu.concatenate %79, %80 in 1 : vector<8x15xf32>, vector<8x497xf32> -> vector<8x512xf32>
    %c2_28 = arith.constant 2 : index
    %c0_29 = arith.constant 0 : index
    %82 = vector.load %arg3[%c2_28, %c0_29] : memref<9x512xf32, #tpu.memory_space<vmem>>, vector<1x512xf32>
    %83 = vector.broadcast %82 : vector<1x512xf32> to vector<8x512xf32>
    %84 = arith.mulf %81, %83 : vector<8x512xf32>
    %85 = vector.extract_strided_slice %64 {offsets = [0, 511], sizes = [8, 1], strides = [1, 1]} : vector<8x512xf32> to vector<8x1xf32>
    %86 = vector.extract_strided_slice %64 {offsets = [0, 0], sizes = [8, 511], strides = [1, 1]} : vector<8x512xf32> to vector<8x511xf32>
    %87 = tpu.concatenate %85, %86 in 1 : vector<8x1xf32>, vector<8x511xf32> -> vector<8x512xf32>
    %c3_30 = arith.constant 3 : index
    %c0_31 = arith.constant 0 : index
    %88 = vector.load %arg3[%c3_30, %c0_31] : memref<9x512xf32, #tpu.memory_space<vmem>>, vector<1x512xf32>
    %89 = vector.broadcast %88 : vector<1x512xf32> to vector<8x512xf32>
    %90 = arith.mulf %87, %89 : vector<8x512xf32>
    %91 = vector.extract_strided_slice %64 {offsets = [0, 1], sizes = [8, 511], strides = [1, 1]} : vector<8x512xf32> to vector<8x511xf32>
    %92 = vector.extract_strided_slice %64 {offsets = [0, 0], sizes = [8, 1], strides = [1, 1]} : vector<8x512xf32> to vector<8x1xf32>
    %93 = tpu.concatenate %91, %92 in 1 : vector<8x511xf32>, vector<8x1xf32> -> vector<8x512xf32>
    %c5_32 = arith.constant 5 : index
    %c0_33 = arith.constant 0 : index
    %94 = vector.load %arg3[%c5_32, %c0_33] : memref<9x512xf32, #tpu.memory_space<vmem>>, vector<1x512xf32>
    %95 = vector.broadcast %94 : vector<1x512xf32> to vector<8x512xf32>
    %96 = arith.mulf %93, %95 : vector<8x512xf32>
    %97 = vector.extract_strided_slice %64 {offsets = [0, 15], sizes = [8, 497], strides = [1, 1]} : vector<8x512xf32> to vector<8x497xf32>
    %98 = vector.extract_strided_slice %64 {offsets = [0, 0], sizes = [8, 15], strides = [1, 1]} : vector<8x512xf32> to vector<8x15xf32>
    %99 = tpu.concatenate %97, %98 in 1 : vector<8x497xf32>, vector<8x15xf32> -> vector<8x512xf32>
    %c6_34 = arith.constant 6 : index
    %c0_35 = arith.constant 0 : index
    %100 = vector.load %arg3[%c6_34, %c0_35] : memref<9x512xf32, #tpu.memory_space<vmem>>, vector<1x512xf32>
    %101 = vector.broadcast %100 : vector<1x512xf32> to vector<8x512xf32>
    %102 = arith.mulf %99, %101 : vector<8x512xf32>
    %103 = vector.extract_strided_slice %64 {offsets = [0, 16], sizes = [8, 496], strides = [1, 1]} : vector<8x512xf32> to vector<8x496xf32>
    %104 = vector.extract_strided_slice %64 {offsets = [0, 0], sizes = [8, 16], strides = [1, 1]} : vector<8x512xf32> to vector<8x16xf32>
    %105 = tpu.concatenate %103, %104 in 1 : vector<8x496xf32>, vector<8x16xf32> -> vector<8x512xf32>
    %c7_36 = arith.constant 7 : index
    %c0_37 = arith.constant 0 : index
    %106 = vector.load %arg3[%c7_36, %c0_37] : memref<9x512xf32, #tpu.memory_space<vmem>>, vector<1x512xf32>
    %107 = vector.broadcast %106 : vector<1x512xf32> to vector<8x512xf32>
    %108 = arith.mulf %105, %107 : vector<8x512xf32>
    %109 = vector.extract_strided_slice %64 {offsets = [0, 17], sizes = [8, 495], strides = [1, 1]} : vector<8x512xf32> to vector<8x495xf32>
    %110 = vector.extract_strided_slice %64 {offsets = [0, 0], sizes = [8, 17], strides = [1, 1]} : vector<8x512xf32> to vector<8x17xf32>
    %111 = tpu.concatenate %109, %110 in 1 : vector<8x495xf32>, vector<8x17xf32> -> vector<8x512xf32>
    %c8_38 = arith.constant 8 : index
    %c0_39 = arith.constant 0 : index
    %112 = vector.load %arg3[%c8_38, %c0_39] : memref<9x512xf32, #tpu.memory_space<vmem>>, vector<1x512xf32>
    %113 = vector.broadcast %112 : vector<1x512xf32> to vector<8x512xf32>
    %114 = arith.mulf %111, %113 : vector<8x512xf32>
    %115 = tpu.concatenate %72, %78, %84, %90, %64, %96, %102, %108, %114 in 0 : vector<8x512xf32>, vector<8x512xf32>, vector<8x512xf32>, vector<8x512xf32>, vector<8x512xf32>, vector<8x512xf32>, vector<8x512xf32>, vector<8x512xf32>, vector<8x512xf32> -> vector<72x512xf32>
    %116 = arith.truncf %115 : vector<72x512xf32> to vector<72x512xbf16>
    %cst_40 = arith.constant dense<0.000000e+00> : vector<8x512xf32>
    %117 = tpu.matmul %65, %116, %cst_40 {dimension_numbers = #tpu.dot_dimension_numbers<[1], [0], [0], [1], [0, 0, 1, 1], [], []>} : vector<8x72xbf16>, vector<72x512xbf16>, vector<8x512xf32> -> vector<8x512xf32>
    %118 = vector.broadcast %66 : vector<8x1xf32> to vector<8x512xf32>
    %119 = arith.addf %117, %118 : vector<8x512xf32>
    %cst_41 = arith.constant 0.000000e+00 : f32
    %120 = vector.broadcast %cst_41 : f32 to vector<8x512xf32>
    %121 = arith.cmpf oge, %119, %120 : vector<8x512xf32>
    %cst_42 = arith.constant 0.00999999977 : f32
    %122 = vector.broadcast %cst_42 : f32 to vector<8x512xf32>
    %123 = arith.mulf %119, %122 : vector<8x512xf32>
    %124 = arith.select %121, %119, %123 : vector<8x512xi1>, vector<8x512xf32>
    %c16 = arith.constant 16 : index
    %c0_43 = arith.constant 0 : index
    %125 = vector.load %arg1[%c16, %c0_43] : memref<224x288xbf16, #tpu.memory_space<vmem>>, vector<8x72xbf16>
    %c16_44 = arith.constant 16 : index
    %c0_45 = arith.constant 0 : index
    %126 = vector.load %arg2[%c16_44, %c0_45] : memref<224x1xf32, #tpu.memory_space<vmem>>, vector<8x1xf32>
    %127 = vector.extract_strided_slice %124 {offsets = [0, 495], sizes = [8, 17], strides = [1, 1]} : vector<8x512xf32> to vector<8x17xf32>
    %128 = vector.extract_strided_slice %124 {offsets = [0, 0], sizes = [8, 495], strides = [1, 1]} : vector<8x512xf32> to vector<8x495xf32>
    %129 = tpu.concatenate %127, %128 in 1 : vector<8x17xf32>, vector<8x495xf32> -> vector<8x512xf32>
    %c0_46 = arith.constant 0 : index
    %c0_47 = arith.constant 0 : index
    %130 = vector.load %arg3[%c0_46, %c0_47] : memref<9x512xf32, #tpu.memory_space<vmem>>, vector<1x512xf32>
    %131 = vector.broadcast %130 : vector<1x512xf32> to vector<8x512xf32>
    %132 = arith.mulf %129, %131 : vector<8x512xf32>
    %133 = vector.extract_strided_slice %124 {offsets = [0, 496], sizes = [8, 16], strides = [1, 1]} : vector<8x512xf32> to vector<8x16xf32>
    %134 = vector.extract_strided_slice %124 {offsets = [0, 0], sizes = [8, 496], strides = [1, 1]} : vector<8x512xf32> to vector<8x496xf32>
    %135 = tpu.concatenate %133, %134 in 1 : vector<8x16xf32>, vector<8x496xf32> -> vector<8x512xf32>
    %c1_48 = arith.constant 1 : index
    %c0_49 = arith.constant 0 : index
    %136 = vector.load %arg3[%c1_48, %c0_49] : memref<9x512xf32, #tpu.memory_space<vmem>>, vector<1x512xf32>
    %137 = vector.broadcast %136 : vector<1x512xf32> to vector<8x512xf32>
    %138 = arith.mulf %135, %137 : vector<8x512xf32>
    %139 = vector.extract_strided_slice %124 {offsets = [0, 497], sizes = [8, 15], strides = [1, 1]} : vector<8x512xf32> to vector<8x15xf32>
    %140 = vector.extract_strided_slice %124 {offsets = [0, 0], sizes = [8, 497], strides = [1, 1]} : vector<8x512xf32> to vector<8x497xf32>
    %141 = tpu.concatenate %139, %140 in 1 : vector<8x15xf32>, vector<8x497xf32> -> vector<8x512xf32>
    %c2_50 = arith.constant 2 : index
    %c0_51 = arith.constant 0 : index
    %142 = vector.load %arg3[%c2_50, %c0_51] : memref<9x512xf32, #tpu.memory_space<vmem>>, vector<1x512xf32>
    %143 = vector.broadcast %142 : vector<1x512xf32> to vector<8x512xf32>
    %144 = arith.mulf %141, %143 : vector<8x512xf32>
    %145 = vector.extract_strided_slice %124 {offsets = [0, 511], sizes = [8, 1], strides = [1, 1]} : vector<8x512xf32> to vector<8x1xf32>
    %146 = vector.extract_strided_slice %124 {offsets = [0, 0], sizes = [8, 511], strides = [1, 1]} : vector<8x512xf32> to vector<8x511xf32>
    %147 = tpu.concatenate %145, %146 in 1 : vector<8x1xf32>, vector<8x511xf32> -> vector<8x512xf32>
    %c3_52 = arith.constant 3 : index
    %c0_53 = arith.constant 0 : index
    %148 = vector.load %arg3[%c3_52, %c0_53] : memref<9x512xf32, #tpu.memory_space<vmem>>, vector<1x512xf32>
    %149 = vector.broadcast %148 : vector<1x512xf32> to vector<8x512xf32>
    %150 = arith.mulf %147, %149 : vector<8x512xf32>
    %151 = vector.extract_strided_slice %124 {offsets = [0, 1], sizes = [8, 511], strides = [1, 1]} : vector<8x512xf32> to vector<8x511xf32>
    %152 = vector.extract_strided_slice %124 {offsets = [0, 0], sizes = [8, 1], strides = [1, 1]} : vector<8x512xf32> to vector<8x1xf32>
    %153 = tpu.concatenate %151, %152 in 1 : vector<8x511xf32>, vector<8x1xf32> -> vector<8x512xf32>
    %c5_54 = arith.constant 5 : index
    %c0_55 = arith.constant 0 : index
    %154 = vector.load %arg3[%c5_54, %c0_55] : memref<9x512xf32, #tpu.memory_space<vmem>>, vector<1x512xf32>
    %155 = vector.broadcast %154 : vector<1x512xf32> to vector<8x512xf32>
    %156 = arith.mulf %153, %155 : vector<8x512xf32>
    %157 = vector.extract_strided_slice %124 {offsets = [0, 15], sizes = [8, 497], strides = [1, 1]} : vector<8x512xf32> to vector<8x497xf32>
    %158 = vector.extract_strided_slice %124 {offsets = [0, 0], sizes = [8, 15], strides = [1, 1]} : vector<8x512xf32> to vector<8x15xf32>
    %159 = tpu.concatenate %157, %158 in 1 : vector<8x497xf32>, vector<8x15xf32> -> vector<8x512xf32>
    %c6_56 = arith.constant 6 : index
    %c0_57 = arith.constant 0 : index
    %160 = vector.load %arg3[%c6_56, %c0_57] : memref<9x512xf32, #tpu.memory_space<vmem>>, vector<1x512xf32>
    %161 = vector.broadcast %160 : vector<1x512xf32> to vector<8x512xf32>
    %162 = arith.mulf %159, %161 : vector<8x512xf32>
    %163 = vector.extract_strided_slice %124 {offsets = [0, 16], sizes = [8, 496], strides = [1, 1]} : vector<8x512xf32> to vector<8x496xf32>
    %164 = vector.extract_strided_slice %124 {offsets = [0, 0], sizes = [8, 16], strides = [1, 1]} : vector<8x512xf32> to vector<8x16xf32>
    %165 = tpu.concatenate %163, %164 in 1 : vector<8x496xf32>, vector<8x16xf32> -> vector<8x512xf32>
    %c7_58 = arith.constant 7 : index
    %c0_59 = arith.constant 0 : index
    %166 = vector.load %arg3[%c7_58, %c0_59] : memref<9x512xf32, #tpu.memory_space<vmem>>, vector<1x512xf32>
    %167 = vector.broadcast %166 : vector<1x512xf32> to vector<8x512xf32>
    %168 = arith.mulf %165, %167 : vector<8x512xf32>
    %169 = vector.extract_strided_slice %124 {offsets = [0, 17], sizes = [8, 495], strides = [1, 1]} : vector<8x512xf32> to vector<8x495xf32>
    %170 = vector.extract_strided_slice %124 {offsets = [0, 0], sizes = [8, 17], strides = [1, 1]} : vector<8x512xf32> to vector<8x17xf32>
    %171 = tpu.concatenate %169, %170 in 1 : vector<8x495xf32>, vector<8x17xf32> -> vector<8x512xf32>
    %c8_60 = arith.constant 8 : index
    %c0_61 = arith.constant 0 : index
    %172 = vector.load %arg3[%c8_60, %c0_61] : memref<9x512xf32, #tpu.memory_space<vmem>>, vector<1x512xf32>
    %173 = vector.broadcast %172 : vector<1x512xf32> to vector<8x512xf32>
    %174 = arith.mulf %171, %173 : vector<8x512xf32>
    %175 = tpu.concatenate %132, %138, %144, %150, %124, %156, %162, %168, %174 in 0 : vector<8x512xf32>, vector<8x512xf32>, vector<8x512xf32>, vector<8x512xf32>, vector<8x512xf32>, vector<8x512xf32>, vector<8x512xf32>, vector<8x512xf32>, vector<8x512xf32> -> vector<72x512xf32>
    %176 = arith.truncf %175 : vector<72x512xf32> to vector<72x512xbf16>
    %cst_62 = arith.constant dense<0.000000e+00> : vector<8x512xf32>
    %177 = tpu.matmul %125, %176, %cst_62 {dimension_numbers = #tpu.dot_dimension_numbers<[1], [0], [0], [1], [0, 0, 1, 1], [], []>} : vector<8x72xbf16>, vector<72x512xbf16>, vector<8x512xf32> -> vector<8x512xf32>
    %178 = vector.broadcast %126 : vector<8x1xf32> to vector<8x512xf32>
    %179 = arith.addf %177, %178 : vector<8x512xf32>
    %180 = arith.addf %179, %64 : vector<8x512xf32>
    %cst_63 = arith.constant 0.000000e+00 : f32
    %181 = vector.broadcast %cst_63 : f32 to vector<8x512xf32>
    %182 = arith.cmpf oge, %180, %181 : vector<8x512xf32>
    %cst_64 = arith.constant 0.00999999977 : f32
    %183 = vector.broadcast %cst_64 : f32 to vector<8x512xf32>
    %184 = arith.mulf %180, %183 : vector<8x512xf32>
    %185 = arith.select %182, %180, %184 : vector<8x512xi1>, vector<8x512xf32>
    %c24 = arith.constant 24 : index
    %c0_65 = arith.constant 0 : index
    %186 = vector.load %arg1[%c24, %c0_65] : memref<224x288xbf16, #tpu.memory_space<vmem>>, vector<16x72xbf16>
    %c24_66 = arith.constant 24 : index
    %c0_67 = arith.constant 0 : index
    %187 = vector.load %arg2[%c24_66, %c0_67] : memref<224x1xf32, #tpu.memory_space<vmem>>, vector<16x1xf32>
    %188 = vector.extract_strided_slice %185 {offsets = [0, 495], sizes = [8, 17], strides = [1, 1]} : vector<8x512xf32> to vector<8x17xf32>
    %189 = vector.extract_strided_slice %185 {offsets = [0, 0], sizes = [8, 495], strides = [1, 1]} : vector<8x512xf32> to vector<8x495xf32>
    %190 = tpu.concatenate %188, %189 in 1 : vector<8x17xf32>, vector<8x495xf32> -> vector<8x512xf32>
    %c0_68 = arith.constant 0 : index
    %c0_69 = arith.constant 0 : index
    %191 = vector.load %arg3[%c0_68, %c0_69] : memref<9x512xf32, #tpu.memory_space<vmem>>, vector<1x512xf32>
    %192 = vector.broadcast %191 : vector<1x512xf32> to vector<8x512xf32>
    %193 = arith.mulf %190, %192 : vector<8x512xf32>
    %194 = vector.extract_strided_slice %185 {offsets = [0, 496], sizes = [8, 16], strides = [1, 1]} : vector<8x512xf32> to vector<8x16xf32>
    %195 = vector.extract_strided_slice %185 {offsets = [0, 0], sizes = [8, 496], strides = [1, 1]} : vector<8x512xf32> to vector<8x496xf32>
    %196 = tpu.concatenate %194, %195 in 1 : vector<8x16xf32>, vector<8x496xf32> -> vector<8x512xf32>
    %c1_70 = arith.constant 1 : index
    %c0_71 = arith.constant 0 : index
    %197 = vector.load %arg3[%c1_70, %c0_71] : memref<9x512xf32, #tpu.memory_space<vmem>>, vector<1x512xf32>
    %198 = vector.broadcast %197 : vector<1x512xf32> to vector<8x512xf32>
    %199 = arith.mulf %196, %198 : vector<8x512xf32>
    %200 = vector.extract_strided_slice %185 {offsets = [0, 497], sizes = [8, 15], strides = [1, 1]} : vector<8x512xf32> to vector<8x15xf32>
    %201 = vector.extract_strided_slice %185 {offsets = [0, 0], sizes = [8, 497], strides = [1, 1]} : vector<8x512xf32> to vector<8x497xf32>
    %202 = tpu.concatenate %200, %201 in 1 : vector<8x15xf32>, vector<8x497xf32> -> vector<8x512xf32>
    %c2_72 = arith.constant 2 : index
    %c0_73 = arith.constant 0 : index
    %203 = vector.load %arg3[%c2_72, %c0_73] : memref<9x512xf32, #tpu.memory_space<vmem>>, vector<1x512xf32>
    %204 = vector.broadcast %203 : vector<1x512xf32> to vector<8x512xf32>
    %205 = arith.mulf %202, %204 : vector<8x512xf32>
    %206 = vector.extract_strided_slice %185 {offsets = [0, 511], sizes = [8, 1], strides = [1, 1]} : vector<8x512xf32> to vector<8x1xf32>
    %207 = vector.extract_strided_slice %185 {offsets = [0, 0], sizes = [8, 511], strides = [1, 1]} : vector<8x512xf32> to vector<8x511xf32>
    %208 = tpu.concatenate %206, %207 in 1 : vector<8x1xf32>, vector<8x511xf32> -> vector<8x512xf32>
    %c3_74 = arith.constant 3 : index
    %c0_75 = arith.constant 0 : index
    %209 = vector.load %arg3[%c3_74, %c0_75] : memref<9x512xf32, #tpu.memory_space<vmem>>, vector<1x512xf32>
    %210 = vector.broadcast %209 : vector<1x512xf32> to vector<8x512xf32>
    %211 = arith.mulf %208, %210 : vector<8x512xf32>
    %212 = vector.extract_strided_slice %185 {offsets = [0, 1], sizes = [8, 511], strides = [1, 1]} : vector<8x512xf32> to vector<8x511xf32>
    %213 = vector.extract_strided_slice %185 {offsets = [0, 0], sizes = [8, 1], strides = [1, 1]} : vector<8x512xf32> to vector<8x1xf32>
    %214 = tpu.concatenate %212, %213 in 1 : vector<8x511xf32>, vector<8x1xf32> -> vector<8x512xf32>
    %c5_76 = arith.constant 5 : index
    %c0_77 = arith.constant 0 : index
    %215 = vector.load %arg3[%c5_76, %c0_77] : memref<9x512xf32, #tpu.memory_space<vmem>>, vector<1x512xf32>
    %216 = vector.broadcast %215 : vector<1x512xf32> to vector<8x512xf32>
    %217 = arith.mulf %214, %216 : vector<8x512xf32>
    %218 = vector.extract_strided_slice %185 {offsets = [0, 15], sizes = [8, 497], strides = [1, 1]} : vector<8x512xf32> to vector<8x497xf32>
    %219 = vector.extract_strided_slice %185 {offsets = [0, 0], sizes = [8, 15], strides = [1, 1]} : vector<8x512xf32> to vector<8x15xf32>
    %220 = tpu.concatenate %218, %219 in 1 : vector<8x497xf32>, vector<8x15xf32> -> vector<8x512xf32>
    %c6_78 = arith.constant 6 : index
    %c0_79 = arith.constant 0 : index
    %221 = vector.load %arg3[%c6_78, %c0_79] : memref<9x512xf32, #tpu.memory_space<vmem>>, vector<1x512xf32>
    %222 = vector.broadcast %221 : vector<1x512xf32> to vector<8x512xf32>
    %223 = arith.mulf %220, %222 : vector<8x512xf32>
    %224 = vector.extract_strided_slice %185 {offsets = [0, 16], sizes = [8, 496], strides = [1, 1]} : vector<8x512xf32> to vector<8x496xf32>
    %225 = vector.extract_strided_slice %185 {offsets = [0, 0], sizes = [8, 16], strides = [1, 1]} : vector<8x512xf32> to vector<8x16xf32>
    %226 = tpu.concatenate %224, %225 in 1 : vector<8x496xf32>, vector<8x16xf32> -> vector<8x512xf32>
    %c7_80 = arith.constant 7 : index
    %c0_81 = arith.constant 0 : index
    %227 = vector.load %arg3[%c7_80, %c0_81] : memref<9x512xf32, #tpu.memory_space<vmem>>, vector<1x512xf32>
    %228 = vector.broadcast %227 : vector<1x512xf32> to vector<8x512xf32>
    %229 = arith.mulf %226, %228 : vector<8x512xf32>
    %230 = vector.extract_strided_slice %185 {offsets = [0, 17], sizes = [8, 495], strides = [1, 1]} : vector<8x512xf32> to vector<8x495xf32>
    %231 = vector.extract_strided_slice %185 {offsets = [0, 0], sizes = [8, 17], strides = [1, 1]} : vector<8x512xf32> to vector<8x17xf32>
    %232 = tpu.concatenate %230, %231 in 1 : vector<8x495xf32>, vector<8x17xf32> -> vector<8x512xf32>
    %c8_82 = arith.constant 8 : index
    %c0_83 = arith.constant 0 : index
    %233 = vector.load %arg3[%c8_82, %c0_83] : memref<9x512xf32, #tpu.memory_space<vmem>>, vector<1x512xf32>
    %234 = vector.broadcast %233 : vector<1x512xf32> to vector<8x512xf32>
    %235 = arith.mulf %232, %234 : vector<8x512xf32>
    %236 = tpu.concatenate %193, %199, %205, %211, %185, %217, %223, %229, %235 in 0 : vector<8x512xf32>, vector<8x512xf32>, vector<8x512xf32>, vector<8x512xf32>, vector<8x512xf32>, vector<8x512xf32>, vector<8x512xf32>, vector<8x512xf32>, vector<8x512xf32> -> vector<72x512xf32>
    %237 = arith.truncf %236 : vector<72x512xf32> to vector<72x512xbf16>
    %c0_84 = arith.constant 0 : index
    %c0_85 = arith.constant 0 : index
    %238 = vector.load %arg6[%c0_84, %c0_85] : memref<512x128xbf16, #tpu.memory_space<vmem>>, vector<512x128xbf16>
    %cst_86 = arith.constant dense<0.000000e+00> : vector<72x128xf32>
    %239 = tpu.matmul %237, %238, %cst_86 {dimension_numbers = #tpu.dot_dimension_numbers<[1], [0], [0], [1], [0, 0, 1, 1], [], []>} : vector<72x512xbf16>, vector<512x128xbf16>, vector<72x128xf32> -> vector<72x128xf32>
    %240 = arith.truncf %239 : vector<72x128xf32> to vector<72x128xbf16>
    %cst_87 = arith.constant dense<0.000000e+00> : vector<16x128xf32>
    %241 = tpu.matmul %186, %240, %cst_87 {dimension_numbers = #tpu.dot_dimension_numbers<[1], [0], [0], [1], [0, 0, 1, 1], [], []>} : vector<16x72xbf16>, vector<72x128xbf16>, vector<16x128xf32> -> vector<16x128xf32>
    %242 = vector.broadcast %187 : vector<16x1xf32> to vector<16x128xf32>
    %243 = arith.addf %241, %242 : vector<16x128xf32>
    %cst_88 = arith.constant 0.000000e+00 : f32
    %244 = vector.broadcast %cst_88 : f32 to vector<16x128xf32>
    %245 = arith.cmpf oge, %243, %244 : vector<16x128xf32>
    %cst_89 = arith.constant 0.00999999977 : f32
    %246 = vector.broadcast %cst_89 : f32 to vector<16x128xf32>
    %247 = arith.mulf %243, %246 : vector<16x128xf32>
    %248 = arith.select %245, %243, %247 : vector<16x128xi1>, vector<16x128xf32>
    %c40 = arith.constant 40 : index
    %c0_90 = arith.constant 0 : index
    %249 = vector.load %arg1[%c40, %c0_90] : memref<224x288xbf16, #tpu.memory_space<vmem>>, vector<16x144xbf16>
    %c40_91 = arith.constant 40 : index
    %c0_92 = arith.constant 0 : index
    %250 = vector.load %arg2[%c40_91, %c0_92] : memref<224x1xf32, #tpu.memory_space<vmem>>, vector<16x1xf32>
    %251 = vector.extract_strided_slice %248 {offsets = [0, 119], sizes = [16, 9], strides = [1, 1]} : vector<16x128xf32> to vector<16x9xf32>
    %252 = vector.extract_strided_slice %248 {offsets = [0, 0], sizes = [16, 119], strides = [1, 1]} : vector<16x128xf32> to vector<16x119xf32>
    %253 = tpu.concatenate %251, %252 in 1 : vector<16x9xf32>, vector<16x119xf32> -> vector<16x128xf32>
    %c0_93 = arith.constant 0 : index
    %c0_94 = arith.constant 0 : index
    %254 = vector.load %arg4[%c0_93, %c0_94] : memref<9x128xf32, #tpu.memory_space<vmem>>, vector<1x128xf32>
    %255 = vector.broadcast %254 : vector<1x128xf32> to vector<16x128xf32>
    %256 = arith.mulf %253, %255 : vector<16x128xf32>
    %257 = vector.extract_strided_slice %248 {offsets = [0, 120], sizes = [16, 8], strides = [1, 1]} : vector<16x128xf32> to vector<16x8xf32>
    %258 = vector.extract_strided_slice %248 {offsets = [0, 0], sizes = [16, 120], strides = [1, 1]} : vector<16x128xf32> to vector<16x120xf32>
    %259 = tpu.concatenate %257, %258 in 1 : vector<16x8xf32>, vector<16x120xf32> -> vector<16x128xf32>
    %c1_95 = arith.constant 1 : index
    %c0_96 = arith.constant 0 : index
    %260 = vector.load %arg4[%c1_95, %c0_96] : memref<9x128xf32, #tpu.memory_space<vmem>>, vector<1x128xf32>
    %261 = vector.broadcast %260 : vector<1x128xf32> to vector<16x128xf32>
    %262 = arith.mulf %259, %261 : vector<16x128xf32>
    %263 = vector.extract_strided_slice %248 {offsets = [0, 121], sizes = [16, 7], strides = [1, 1]} : vector<16x128xf32> to vector<16x7xf32>
    %264 = vector.extract_strided_slice %248 {offsets = [0, 0], sizes = [16, 121], strides = [1, 1]} : vector<16x128xf32> to vector<16x121xf32>
    %265 = tpu.concatenate %263, %264 in 1 : vector<16x7xf32>, vector<16x121xf32> -> vector<16x128xf32>
    %c2_97 = arith.constant 2 : index
    %c0_98 = arith.constant 0 : index
    %266 = vector.load %arg4[%c2_97, %c0_98] : memref<9x128xf32, #tpu.memory_space<vmem>>, vector<1x128xf32>
    %267 = vector.broadcast %266 : vector<1x128xf32> to vector<16x128xf32>
    %268 = arith.mulf %265, %267 : vector<16x128xf32>
    %269 = vector.extract_strided_slice %248 {offsets = [0, 127], sizes = [16, 1], strides = [1, 1]} : vector<16x128xf32> to vector<16x1xf32>
    %270 = vector.extract_strided_slice %248 {offsets = [0, 0], sizes = [16, 127], strides = [1, 1]} : vector<16x128xf32> to vector<16x127xf32>
    %271 = tpu.concatenate %269, %270 in 1 : vector<16x1xf32>, vector<16x127xf32> -> vector<16x128xf32>
    %c3_99 = arith.constant 3 : index
    %c0_100 = arith.constant 0 : index
    %272 = vector.load %arg4[%c3_99, %c0_100] : memref<9x128xf32, #tpu.memory_space<vmem>>, vector<1x128xf32>
    %273 = vector.broadcast %272 : vector<1x128xf32> to vector<16x128xf32>
    %274 = arith.mulf %271, %273 : vector<16x128xf32>
    %275 = vector.extract_strided_slice %248 {offsets = [0, 1], sizes = [16, 127], strides = [1, 1]} : vector<16x128xf32> to vector<16x127xf32>
    %276 = vector.extract_strided_slice %248 {offsets = [0, 0], sizes = [16, 1], strides = [1, 1]} : vector<16x128xf32> to vector<16x1xf32>
    %277 = tpu.concatenate %275, %276 in 1 : vector<16x127xf32>, vector<16x1xf32> -> vector<16x128xf32>
    %c5_101 = arith.constant 5 : index
    %c0_102 = arith.constant 0 : index
    %278 = vector.load %arg4[%c5_101, %c0_102] : memref<9x128xf32, #tpu.memory_space<vmem>>, vector<1x128xf32>
    %279 = vector.broadcast %278 : vector<1x128xf32> to vector<16x128xf32>
    %280 = arith.mulf %277, %279 : vector<16x128xf32>
    %281 = vector.extract_strided_slice %248 {offsets = [0, 7], sizes = [16, 121], strides = [1, 1]} : vector<16x128xf32> to vector<16x121xf32>
    %282 = vector.extract_strided_slice %248 {offsets = [0, 0], sizes = [16, 7], strides = [1, 1]} : vector<16x128xf32> to vector<16x7xf32>
    %283 = tpu.concatenate %281, %282 in 1 : vector<16x121xf32>, vector<16x7xf32> -> vector<16x128xf32>
    %c6_103 = arith.constant 6 : index
    %c0_104 = arith.constant 0 : index
    %284 = vector.load %arg4[%c6_103, %c0_104] : memref<9x128xf32, #tpu.memory_space<vmem>>, vector<1x128xf32>
    %285 = vector.broadcast %284 : vector<1x128xf32> to vector<16x128xf32>
    %286 = arith.mulf %283, %285 : vector<16x128xf32>
    %287 = vector.extract_strided_slice %248 {offsets = [0, 8], sizes = [16, 120], strides = [1, 1]} : vector<16x128xf32> to vector<16x120xf32>
    %288 = vector.extract_strided_slice %248 {offsets = [0, 0], sizes = [16, 8], strides = [1, 1]} : vector<16x128xf32> to vector<16x8xf32>
    %289 = tpu.concatenate %287, %288 in 1 : vector<16x120xf32>, vector<16x8xf32> -> vector<16x128xf32>
    %c7_105 = arith.constant 7 : index
    %c0_106 = arith.constant 0 : index
    %290 = vector.load %arg4[%c7_105, %c0_106] : memref<9x128xf32, #tpu.memory_space<vmem>>, vector<1x128xf32>
    %291 = vector.broadcast %290 : vector<1x128xf32> to vector<16x128xf32>
    %292 = arith.mulf %289, %291 : vector<16x128xf32>
    %293 = vector.extract_strided_slice %248 {offsets = [0, 9], sizes = [16, 119], strides = [1, 1]} : vector<16x128xf32> to vector<16x119xf32>
    %294 = vector.extract_strided_slice %248 {offsets = [0, 0], sizes = [16, 9], strides = [1, 1]} : vector<16x128xf32> to vector<16x9xf32>
    %295 = tpu.concatenate %293, %294 in 1 : vector<16x119xf32>, vector<16x9xf32> -> vector<16x128xf32>
    %c8_107 = arith.constant 8 : index
    %c0_108 = arith.constant 0 : index
    %296 = vector.load %arg4[%c8_107, %c0_108] : memref<9x128xf32, #tpu.memory_space<vmem>>, vector<1x128xf32>
    %297 = vector.broadcast %296 : vector<1x128xf32> to vector<16x128xf32>
    %298 = arith.mulf %295, %297 : vector<16x128xf32>
    %299 = tpu.concatenate %256, %262, %268, %274, %248, %280, %286, %292, %298 in 0 : vector<16x128xf32>, vector<16x128xf32>, vector<16x128xf32>, vector<16x128xf32>, vector<16x128xf32>, vector<16x128xf32>, vector<16x128xf32>, vector<16x128xf32>, vector<16x128xf32> -> vector<144x128xf32>
    %300 = arith.truncf %299 : vector<144x128xf32> to vector<144x128xbf16>
    %cst_109 = arith.constant dense<0.000000e+00> : vector<16x128xf32>
    %301 = tpu.matmul %249, %300, %cst_109 {dimension_numbers = #tpu.dot_dimension_numbers<[1], [0], [0], [1], [0, 0, 1, 1], [], []>} : vector<16x144xbf16>, vector<144x128xbf16>, vector<16x128xf32> -> vector<16x128xf32>
    %302 = vector.broadcast %250 : vector<16x1xf32> to vector<16x128xf32>
    %303 = arith.addf %301, %302 : vector<16x128xf32>
    %304 = arith.truncf %185 : vector<8x512xf32> to vector<8x512xbf16>
    %c0_110 = arith.constant 0 : index
    %c0_111 = arith.constant 0 : index
    %305 = vector.load %arg8[%c0_110, %c0_111] : memref<512x128xbf16, #tpu.memory_space<vmem>>, vector<512x128xbf16>
    %cst_112 = arith.constant dense<0.000000e+00> : vector<8x128xf32>
    %306 = tpu.matmul %304, %305, %cst_112 {dimension_numbers = #tpu.dot_dimension_numbers<[1], [0], [0], [1], [0, 0, 1, 1], [], []>} : vector<8x512xbf16>, vector<512x128xbf16>, vector<8x128xf32> -> vector<8x128xf32>
    %c56 = arith.constant 56 : index
    %c0_113 = arith.constant 0 : index
    %307 = vector.load %arg1[%c56, %c0_113] : memref<224x288xbf16, #tpu.memory_space<vmem>>, vector<16x8xbf16>
    %308 = arith.truncf %306 : vector<8x128xf32> to vector<8x128xbf16>
    %cst_114 = arith.constant dense<0.000000e+00> : vector<16x128xf32>
    %309 = tpu.matmul %307, %308, %cst_114 {dimension_numbers = #tpu.dot_dimension_numbers<[1], [0], [0], [1], [0, 0, 1, 1], [], []>} : vector<16x8xbf16>, vector<8x128xbf16>, vector<16x128xf32> -> vector<16x128xf32>
    %310 = arith.addf %303, %309 : vector<16x128xf32>
    %cst_115 = arith.constant 0.000000e+00 : f32
    %311 = vector.broadcast %cst_115 : f32 to vector<16x128xf32>
    %312 = arith.cmpf oge, %310, %311 : vector<16x128xf32>
    %cst_116 = arith.constant 0.00999999977 : f32
    %313 = vector.broadcast %cst_116 : f32 to vector<16x128xf32>
    %314 = arith.mulf %310, %313 : vector<16x128xf32>
    %315 = arith.select %312, %310, %314 : vector<16x128xi1>, vector<16x128xf32>
    %c72 = arith.constant 72 : index
    %c0_117 = arith.constant 0 : index
    %316 = vector.load %arg1[%c72, %c0_117] : memref<224x288xbf16, #tpu.memory_space<vmem>>, vector<32x144xbf16>
    %c72_118 = arith.constant 72 : index
    %c0_119 = arith.constant 0 : index
    %317 = vector.load %arg2[%c72_118, %c0_119] : memref<224x1xf32, #tpu.memory_space<vmem>>, vector<32x1xf32>
    %318 = vector.extract_strided_slice %315 {offsets = [0, 119], sizes = [16, 9], strides = [1, 1]} : vector<16x128xf32> to vector<16x9xf32>
    %319 = vector.extract_strided_slice %315 {offsets = [0, 0], sizes = [16, 119], strides = [1, 1]} : vector<16x128xf32> to vector<16x119xf32>
    %320 = tpu.concatenate %318, %319 in 1 : vector<16x9xf32>, vector<16x119xf32> -> vector<16x128xf32>
    %c0_120 = arith.constant 0 : index
    %c0_121 = arith.constant 0 : index
    %321 = vector.load %arg4[%c0_120, %c0_121] : memref<9x128xf32, #tpu.memory_space<vmem>>, vector<1x128xf32>
    %322 = vector.broadcast %321 : vector<1x128xf32> to vector<16x128xf32>
    %323 = arith.mulf %320, %322 : vector<16x128xf32>
    %324 = vector.extract_strided_slice %315 {offsets = [0, 120], sizes = [16, 8], strides = [1, 1]} : vector<16x128xf32> to vector<16x8xf32>
    %325 = vector.extract_strided_slice %315 {offsets = [0, 0], sizes = [16, 120], strides = [1, 1]} : vector<16x128xf32> to vector<16x120xf32>
    %326 = tpu.concatenate %324, %325 in 1 : vector<16x8xf32>, vector<16x120xf32> -> vector<16x128xf32>
    %c1_122 = arith.constant 1 : index
    %c0_123 = arith.constant 0 : index
    %327 = vector.load %arg4[%c1_122, %c0_123] : memref<9x128xf32, #tpu.memory_space<vmem>>, vector<1x128xf32>
    %328 = vector.broadcast %327 : vector<1x128xf32> to vector<16x128xf32>
    %329 = arith.mulf %326, %328 : vector<16x128xf32>
    %330 = vector.extract_strided_slice %315 {offsets = [0, 121], sizes = [16, 7], strides = [1, 1]} : vector<16x128xf32> to vector<16x7xf32>
    %331 = vector.extract_strided_slice %315 {offsets = [0, 0], sizes = [16, 121], strides = [1, 1]} : vector<16x128xf32> to vector<16x121xf32>
    %332 = tpu.concatenate %330, %331 in 1 : vector<16x7xf32>, vector<16x121xf32> -> vector<16x128xf32>
    %c2_124 = arith.constant 2 : index
    %c0_125 = arith.constant 0 : index
    %333 = vector.load %arg4[%c2_124, %c0_125] : memref<9x128xf32, #tpu.memory_space<vmem>>, vector<1x128xf32>
    %334 = vector.broadcast %333 : vector<1x128xf32> to vector<16x128xf32>
    %335 = arith.mulf %332, %334 : vector<16x128xf32>
    %336 = vector.extract_strided_slice %315 {offsets = [0, 127], sizes = [16, 1], strides = [1, 1]} : vector<16x128xf32> to vector<16x1xf32>
    %337 = vector.extract_strided_slice %315 {offsets = [0, 0], sizes = [16, 127], strides = [1, 1]} : vector<16x128xf32> to vector<16x127xf32>
    %338 = tpu.concatenate %336, %337 in 1 : vector<16x1xf32>, vector<16x127xf32> -> vector<16x128xf32>
    %c3_126 = arith.constant 3 : index
    %c0_127 = arith.constant 0 : index
    %339 = vector.load %arg4[%c3_126, %c0_127] : memref<9x128xf32, #tpu.memory_space<vmem>>, vector<1x128xf32>
    %340 = vector.broadcast %339 : vector<1x128xf32> to vector<16x128xf32>
    %341 = arith.mulf %338, %340 : vector<16x128xf32>
    %342 = vector.extract_strided_slice %315 {offsets = [0, 1], sizes = [16, 127], strides = [1, 1]} : vector<16x128xf32> to vector<16x127xf32>
    %343 = vector.extract_strided_slice %315 {offsets = [0, 0], sizes = [16, 1], strides = [1, 1]} : vector<16x128xf32> to vector<16x1xf32>
    %344 = tpu.concatenate %342, %343 in 1 : vector<16x127xf32>, vector<16x1xf32> -> vector<16x128xf32>
    %c5_128 = arith.constant 5 : index
    %c0_129 = arith.constant 0 : index
    %345 = vector.load %arg4[%c5_128, %c0_129] : memref<9x128xf32, #tpu.memory_space<vmem>>, vector<1x128xf32>
    %346 = vector.broadcast %345 : vector<1x128xf32> to vector<16x128xf32>
    %347 = arith.mulf %344, %346 : vector<16x128xf32>
    %348 = vector.extract_strided_slice %315 {offsets = [0, 7], sizes = [16, 121], strides = [1, 1]} : vector<16x128xf32> to vector<16x121xf32>
    %349 = vector.extract_strided_slice %315 {offsets = [0, 0], sizes = [16, 7], strides = [1, 1]} : vector<16x128xf32> to vector<16x7xf32>
    %350 = tpu.concatenate %348, %349 in 1 : vector<16x121xf32>, vector<16x7xf32> -> vector<16x128xf32>
    %c6_130 = arith.constant 6 : index
    %c0_131 = arith.constant 0 : index
    %351 = vector.load %arg4[%c6_130, %c0_131] : memref<9x128xf32, #tpu.memory_space<vmem>>, vector<1x128xf32>
    %352 = vector.broadcast %351 : vector<1x128xf32> to vector<16x128xf32>
    %353 = arith.mulf %350, %352 : vector<16x128xf32>
    %354 = vector.extract_strided_slice %315 {offsets = [0, 8], sizes = [16, 120], strides = [1, 1]} : vector<16x128xf32> to vector<16x120xf32>
    %355 = vector.extract_strided_slice %315 {offsets = [0, 0], sizes = [16, 8], strides = [1, 1]} : vector<16x128xf32> to vector<16x8xf32>
    %356 = tpu.concatenate %354, %355 in 1 : vector<16x120xf32>, vector<16x8xf32> -> vector<16x128xf32>
    %c7_132 = arith.constant 7 : index
    %c0_133 = arith.constant 0 : index
    %357 = vector.load %arg4[%c7_132, %c0_133] : memref<9x128xf32, #tpu.memory_space<vmem>>, vector<1x128xf32>
    %358 = vector.broadcast %357 : vector<1x128xf32> to vector<16x128xf32>
    %359 = arith.mulf %356, %358 : vector<16x128xf32>
    %360 = vector.extract_strided_slice %315 {offsets = [0, 9], sizes = [16, 119], strides = [1, 1]} : vector<16x128xf32> to vector<16x119xf32>
    %361 = vector.extract_strided_slice %315 {offsets = [0, 0], sizes = [16, 9], strides = [1, 1]} : vector<16x128xf32> to vector<16x9xf32>
    %362 = tpu.concatenate %360, %361 in 1 : vector<16x119xf32>, vector<16x9xf32> -> vector<16x128xf32>
    %c8_134 = arith.constant 8 : index
    %c0_135 = arith.constant 0 : index
    %363 = vector.load %arg4[%c8_134, %c0_135] : memref<9x128xf32, #tpu.memory_space<vmem>>, vector<1x128xf32>
    %364 = vector.broadcast %363 : vector<1x128xf32> to vector<16x128xf32>
    %365 = arith.mulf %362, %364 : vector<16x128xf32>
    %366 = tpu.concatenate %323, %329, %335, %341, %315, %347, %353, %359, %365 in 0 : vector<16x128xf32>, vector<16x128xf32>, vector<16x128xf32>, vector<16x128xf32>, vector<16x128xf32>, vector<16x128xf32>, vector<16x128xf32>, vector<16x128xf32>, vector<16x128xf32> -> vector<144x128xf32>
    %367 = arith.truncf %366 : vector<144x128xf32> to vector<144x128xbf16>
    %c0_136 = arith.constant 0 : index
    %c0_137 = arith.constant 0 : index
    %368 = vector.load %arg7[%c0_136, %c0_137] : memref<128x32xbf16, #tpu.memory_space<vmem>>, vector<128x32xbf16>
    %cst_138 = arith.constant dense<0.000000e+00> : vector<144x32xf32>
    %369 = tpu.matmul %367, %368, %cst_138 {dimension_numbers = #tpu.dot_dimension_numbers<[1], [0], [0], [1], [0, 0, 1, 1], [], []>} : vector<144x128xbf16>, vector<128x32xbf16>, vector<144x32xf32> -> vector<144x32xf32>
    %370 = arith.truncf %369 : vector<144x32xf32> to vector<144x32xbf16>
    %cst_139 = arith.constant dense<0.000000e+00> : vector<32x32xf32>
    %371 = tpu.matmul %316, %370, %cst_139 {dimension_numbers = #tpu.dot_dimension_numbers<[1], [0], [0], [1], [0, 0, 1, 1], [], []>} : vector<32x144xbf16>, vector<144x32xbf16>, vector<32x32xf32> -> vector<32x32xf32>
    %372 = vector.broadcast %317 : vector<32x1xf32> to vector<32x32xf32>
    %373 = arith.addf %371, %372 : vector<32x32xf32>
    %cst_140 = arith.constant 0.000000e+00 : f32
    %374 = vector.broadcast %cst_140 : f32 to vector<32x32xf32>
    %375 = arith.cmpf oge, %373, %374 : vector<32x32xf32>
    %cst_141 = arith.constant 0.00999999977 : f32
    %376 = vector.broadcast %cst_141 : f32 to vector<32x32xf32>
    %377 = arith.mulf %373, %376 : vector<32x32xf32>
    %378 = arith.select %375, %373, %377 : vector<32x32xi1>, vector<32x32xf32>
    %c104 = arith.constant 104 : index
    %c0_142 = arith.constant 0 : index
    %379 = vector.load %arg1[%c104, %c0_142] : memref<224x288xbf16, #tpu.memory_space<vmem>>, vector<32x288xbf16>
    %c104_143 = arith.constant 104 : index
    %c0_144 = arith.constant 0 : index
    %380 = vector.load %arg2[%c104_143, %c0_144] : memref<224x1xf32, #tpu.memory_space<vmem>>, vector<32x1xf32>
    %381 = vector.extract_strided_slice %378 {offsets = [0, 27], sizes = [32, 5], strides = [1, 1]} : vector<32x32xf32> to vector<32x5xf32>
    %382 = vector.extract_strided_slice %378 {offsets = [0, 0], sizes = [32, 27], strides = [1, 1]} : vector<32x32xf32> to vector<32x27xf32>
    %383 = tpu.concatenate %381, %382 in 1 : vector<32x5xf32>, vector<32x27xf32> -> vector<32x32xf32>
    %c0_145 = arith.constant 0 : index
    %c0_146 = arith.constant 0 : index
    %384 = vector.load %arg5[%c0_145, %c0_146] : memref<9x32xf32, #tpu.memory_space<vmem>>, vector<1x32xf32>
    %385 = vector.broadcast %384 : vector<1x32xf32> to vector<32x32xf32>
    %386 = arith.mulf %383, %385 : vector<32x32xf32>
    %387 = vector.extract_strided_slice %378 {offsets = [0, 28], sizes = [32, 4], strides = [1, 1]} : vector<32x32xf32> to vector<32x4xf32>
    %388 = vector.extract_strided_slice %378 {offsets = [0, 0], sizes = [32, 28], strides = [1, 1]} : vector<32x32xf32> to vector<32x28xf32>
    %389 = tpu.concatenate %387, %388 in 1 : vector<32x4xf32>, vector<32x28xf32> -> vector<32x32xf32>
    %c1_147 = arith.constant 1 : index
    %c0_148 = arith.constant 0 : index
    %390 = vector.load %arg5[%c1_147, %c0_148] : memref<9x32xf32, #tpu.memory_space<vmem>>, vector<1x32xf32>
    %391 = vector.broadcast %390 : vector<1x32xf32> to vector<32x32xf32>
    %392 = arith.mulf %389, %391 : vector<32x32xf32>
    %393 = vector.extract_strided_slice %378 {offsets = [0, 29], sizes = [32, 3], strides = [1, 1]} : vector<32x32xf32> to vector<32x3xf32>
    %394 = vector.extract_strided_slice %378 {offsets = [0, 0], sizes = [32, 29], strides = [1, 1]} : vector<32x32xf32> to vector<32x29xf32>
    %395 = tpu.concatenate %393, %394 in 1 : vector<32x3xf32>, vector<32x29xf32> -> vector<32x32xf32>
    %c2_149 = arith.constant 2 : index
    %c0_150 = arith.constant 0 : index
    %396 = vector.load %arg5[%c2_149, %c0_150] : memref<9x32xf32, #tpu.memory_space<vmem>>, vector<1x32xf32>
    %397 = vector.broadcast %396 : vector<1x32xf32> to vector<32x32xf32>
    %398 = arith.mulf %395, %397 : vector<32x32xf32>
    %399 = vector.extract_strided_slice %378 {offsets = [0, 31], sizes = [32, 1], strides = [1, 1]} : vector<32x32xf32> to vector<32x1xf32>
    %400 = vector.extract_strided_slice %378 {offsets = [0, 0], sizes = [32, 31], strides = [1, 1]} : vector<32x32xf32> to vector<32x31xf32>
    %401 = tpu.concatenate %399, %400 in 1 : vector<32x1xf32>, vector<32x31xf32> -> vector<32x32xf32>
    %c3_151 = arith.constant 3 : index
    %c0_152 = arith.constant 0 : index
    %402 = vector.load %arg5[%c3_151, %c0_152] : memref<9x32xf32, #tpu.memory_space<vmem>>, vector<1x32xf32>
    %403 = vector.broadcast %402 : vector<1x32xf32> to vector<32x32xf32>
    %404 = arith.mulf %401, %403 : vector<32x32xf32>
    %405 = vector.extract_strided_slice %378 {offsets = [0, 1], sizes = [32, 31], strides = [1, 1]} : vector<32x32xf32> to vector<32x31xf32>
    %406 = vector.extract_strided_slice %378 {offsets = [0, 0], sizes = [32, 1], strides = [1, 1]} : vector<32x32xf32> to vector<32x1xf32>
    %407 = tpu.concatenate %405, %406 in 1 : vector<32x31xf32>, vector<32x1xf32> -> vector<32x32xf32>
    %c5_153 = arith.constant 5 : index
    %c0_154 = arith.constant 0 : index
    %408 = vector.load %arg5[%c5_153, %c0_154] : memref<9x32xf32, #tpu.memory_space<vmem>>, vector<1x32xf32>
    %409 = vector.broadcast %408 : vector<1x32xf32> to vector<32x32xf32>
    %410 = arith.mulf %407, %409 : vector<32x32xf32>
    %411 = vector.extract_strided_slice %378 {offsets = [0, 3], sizes = [32, 29], strides = [1, 1]} : vector<32x32xf32> to vector<32x29xf32>
    %412 = vector.extract_strided_slice %378 {offsets = [0, 0], sizes = [32, 3], strides = [1, 1]} : vector<32x32xf32> to vector<32x3xf32>
    %413 = tpu.concatenate %411, %412 in 1 : vector<32x29xf32>, vector<32x3xf32> -> vector<32x32xf32>
    %c6_155 = arith.constant 6 : index
    %c0_156 = arith.constant 0 : index
    %414 = vector.load %arg5[%c6_155, %c0_156] : memref<9x32xf32, #tpu.memory_space<vmem>>, vector<1x32xf32>
    %415 = vector.broadcast %414 : vector<1x32xf32> to vector<32x32xf32>
    %416 = arith.mulf %413, %415 : vector<32x32xf32>
    %417 = vector.extract_strided_slice %378 {offsets = [0, 4], sizes = [32, 28], strides = [1, 1]} : vector<32x32xf32> to vector<32x28xf32>
    %418 = vector.extract_strided_slice %378 {offsets = [0, 0], sizes = [32, 4], strides = [1, 1]} : vector<32x32xf32> to vector<32x4xf32>
    %419 = tpu.concatenate %417, %418 in 1 : vector<32x28xf32>, vector<32x4xf32> -> vector<32x32xf32>
    %c7_157 = arith.constant 7 : index
    %c0_158 = arith.constant 0 : index
    %420 = vector.load %arg5[%c7_157, %c0_158] : memref<9x32xf32, #tpu.memory_space<vmem>>, vector<1x32xf32>
    %421 = vector.broadcast %420 : vector<1x32xf32> to vector<32x32xf32>
    %422 = arith.mulf %419, %421 : vector<32x32xf32>
    %423 = vector.extract_strided_slice %378 {offsets = [0, 5], sizes = [32, 27], strides = [1, 1]} : vector<32x32xf32> to vector<32x27xf32>
    %424 = vector.extract_strided_slice %378 {offsets = [0, 0], sizes = [32, 5], strides = [1, 1]} : vector<32x32xf32> to vector<32x5xf32>
    %425 = tpu.concatenate %423, %424 in 1 : vector<32x27xf32>, vector<32x5xf32> -> vector<32x32xf32>
    %c8_159 = arith.constant 8 : index
    %c0_160 = arith.constant 0 : index
    %426 = vector.load %arg5[%c8_159, %c0_160] : memref<9x32xf32, #tpu.memory_space<vmem>>, vector<1x32xf32>
    %427 = vector.broadcast %426 : vector<1x32xf32> to vector<32x32xf32>
    %428 = arith.mulf %425, %427 : vector<32x32xf32>
    %429 = tpu.concatenate %386, %392, %398, %404, %378, %410, %416, %422, %428 in 0 : vector<32x32xf32>, vector<32x32xf32>, vector<32x32xf32>, vector<32x32xf32>, vector<32x32xf32>, vector<32x32xf32>, vector<32x32xf32>, vector<32x32xf32>, vector<32x32xf32> -> vector<288x32xf32>
    %430 = arith.truncf %429 : vector<288x32xf32> to vector<288x32xbf16>
    %cst_161 = arith.constant dense<0.000000e+00> : vector<32x32xf32>
    %431 = tpu.matmul %379, %430, %cst_161 {dimension_numbers = #tpu.dot_dimension_numbers<[1], [0], [0], [1], [0, 0, 1, 1], [], []>} : vector<32x288xbf16>, vector<288x32xbf16>, vector<32x32xf32> -> vector<32x32xf32>
    %432 = vector.broadcast %380 : vector<32x1xf32> to vector<32x32xf32>
    %433 = arith.addf %431, %432 : vector<32x32xf32>
    %434 = arith.truncf %315 : vector<16x128xf32> to vector<16x128xbf16>
    %c0_162 = arith.constant 0 : index
    %c0_163 = arith.constant 0 : index
    %435 = vector.load %arg9[%c0_162, %c0_163] : memref<128x32xbf16, #tpu.memory_space<vmem>>, vector<128x32xbf16>
    %cst_164 = arith.constant dense<0.000000e+00> : vector<16x32xf32>
    %436 = tpu.matmul %434, %435, %cst_164 {dimension_numbers = #tpu.dot_dimension_numbers<[1], [0], [0], [1], [0, 0, 1, 1], [], []>} : vector<16x128xbf16>, vector<128x32xbf16>, vector<16x32xf32> -> vector<16x32xf32>
    %c136 = arith.constant 136 : index
    %c0_165 = arith.constant 0 : index
    %437 = vector.load %arg1[%c136, %c0_165] : memref<224x288xbf16, #tpu.memory_space<vmem>>, vector<32x16xbf16>
    %438 = arith.truncf %436 : vector<16x32xf32> to vector<16x32xbf16>
    %cst_166 = arith.constant dense<0.000000e+00> : vector<32x32xf32>
    %439 = tpu.matmul %437, %438, %cst_166 {dimension_numbers = #tpu.dot_dimension_numbers<[1], [0], [0], [1], [0, 0, 1, 1], [], []>} : vector<32x16xbf16>, vector<16x32xbf16>, vector<32x32xf32> -> vector<32x32xf32>
    %440 = arith.addf %433, %439 : vector<32x32xf32>
    %cst_167 = arith.constant 0.000000e+00 : f32
    %441 = vector.broadcast %cst_167 : f32 to vector<32x32xf32>
    %442 = arith.cmpf oge, %440, %441 : vector<32x32xf32>
    %cst_168 = arith.constant 0.00999999977 : f32
    %443 = vector.broadcast %cst_168 : f32 to vector<32x32xf32>
    %444 = arith.mulf %440, %443 : vector<32x32xf32>
    %445 = arith.select %442, %440, %444 : vector<32x32xi1>, vector<32x32xf32>
    %c168 = arith.constant 168 : index
    %c0_169 = arith.constant 0 : index
    %446 = vector.load %arg1[%c168, %c0_169] : memref<224x288xbf16, #tpu.memory_space<vmem>>, vector<16x128xbf16>
    %c168_170 = arith.constant 168 : index
    %c0_171 = arith.constant 0 : index
    %447 = vector.load %arg2[%c168_170, %c0_171] : memref<224x1xf32, #tpu.memory_space<vmem>>, vector<16x1xf32>
    %448 = arith.truncf %445 : vector<32x32xf32> to vector<32x32xbf16>
    %c0_172 = arith.constant 0 : index
    %c0_173 = arith.constant 0 : index
    %449 = vector.load %arg10[%c0_172, %c0_173] : memref<32x128xbf16, #tpu.memory_space<vmem>>, vector<32x128xbf16>
    %cst_174 = arith.constant dense<0.000000e+00> : vector<32x128xf32>
    %450 = tpu.matmul %448, %449, %cst_174 {dimension_numbers = #tpu.dot_dimension_numbers<[1], [0], [0], [1], [0, 0, 1, 1], [], []>} : vector<32x32xbf16>, vector<32x128xbf16>, vector<32x128xf32> -> vector<32x128xf32>
    %c0_175 = arith.constant 0 : index
    %c0_176 = arith.constant 0 : index
    %451 = vector.load %arg12[%c0_175, %c0_176] : memref<4x128xf32, #tpu.memory_space<vmem>>, vector<1x128xf32>
    %452 = vector.broadcast %451 : vector<1x128xf32> to vector<32x128xf32>
    %453 = arith.mulf %450, %452 : vector<32x128xf32>
    %c1_177 = arith.constant 1 : index
    %c0_178 = arith.constant 0 : index
    %454 = vector.load %arg12[%c1_177, %c0_178] : memref<4x128xf32, #tpu.memory_space<vmem>>, vector<1x128xf32>
    %455 = vector.broadcast %454 : vector<1x128xf32> to vector<32x128xf32>
    %456 = arith.mulf %450, %455 : vector<32x128xf32>
    %c2_179 = arith.constant 2 : index
    %c0_180 = arith.constant 0 : index
    %457 = vector.load %arg12[%c2_179, %c0_180] : memref<4x128xf32, #tpu.memory_space<vmem>>, vector<1x128xf32>
    %458 = vector.broadcast %457 : vector<1x128xf32> to vector<32x128xf32>
    %459 = arith.mulf %450, %458 : vector<32x128xf32>
    %c3_181 = arith.constant 3 : index
    %c0_182 = arith.constant 0 : index
    %460 = vector.load %arg12[%c3_181, %c0_182] : memref<4x128xf32, #tpu.memory_space<vmem>>, vector<1x128xf32>
    %461 = vector.broadcast %460 : vector<1x128xf32> to vector<32x128xf32>
    %462 = arith.mulf %450, %461 : vector<32x128xf32>
    %463 = tpu.concatenate %453, %456, %459, %462 in 0 : vector<32x128xf32>, vector<32x128xf32>, vector<32x128xf32>, vector<32x128xf32> -> vector<128x128xf32>
    %464 = arith.truncf %463 : vector<128x128xf32> to vector<128x128xbf16>
    %cst_183 = arith.constant dense<0.000000e+00> : vector<16x128xf32>
    %465 = tpu.matmul %446, %464, %cst_183 {dimension_numbers = #tpu.dot_dimension_numbers<[1], [0], [0], [1], [0, 0, 1, 1], [], []>} : vector<16x128xbf16>, vector<128x128xbf16>, vector<16x128xf32> -> vector<16x128xf32>
    %466 = vector.broadcast %447 : vector<16x1xf32> to vector<16x128xf32>
    %467 = arith.addf %465, %466 : vector<16x128xf32>
    %468 = tpu.concatenate %467, %315 in 0 : vector<16x128xf32>, vector<16x128xf32> -> vector<32x128xf32>
    %c184 = arith.constant 184 : index
    %c0_184 = arith.constant 0 : index
    %469 = vector.load %arg1[%c184, %c0_184] : memref<224x288xbf16, #tpu.memory_space<vmem>>, vector<16x288xbf16>
    %c184_185 = arith.constant 184 : index
    %c0_186 = arith.constant 0 : index
    %470 = vector.load %arg2[%c184_185, %c0_186] : memref<224x1xf32, #tpu.memory_space<vmem>>, vector<16x1xf32>
    %471 = vector.extract_strided_slice %468 {offsets = [0, 119], sizes = [32, 9], strides = [1, 1]} : vector<32x128xf32> to vector<32x9xf32>
    %472 = vector.extract_strided_slice %468 {offsets = [0, 0], sizes = [32, 119], strides = [1, 1]} : vector<32x128xf32> to vector<32x119xf32>
    %473 = tpu.concatenate %471, %472 in 1 : vector<32x9xf32>, vector<32x119xf32> -> vector<32x128xf32>
    %c0_187 = arith.constant 0 : index
    %c0_188 = arith.constant 0 : index
    %474 = vector.load %arg4[%c0_187, %c0_188] : memref<9x128xf32, #tpu.memory_space<vmem>>, vector<1x128xf32>
    %475 = vector.broadcast %474 : vector<1x128xf32> to vector<32x128xf32>
    %476 = arith.mulf %473, %475 : vector<32x128xf32>
    %477 = vector.extract_strided_slice %468 {offsets = [0, 120], sizes = [32, 8], strides = [1, 1]} : vector<32x128xf32> to vector<32x8xf32>
    %478 = vector.extract_strided_slice %468 {offsets = [0, 0], sizes = [32, 120], strides = [1, 1]} : vector<32x128xf32> to vector<32x120xf32>
    %479 = tpu.concatenate %477, %478 in 1 : vector<32x8xf32>, vector<32x120xf32> -> vector<32x128xf32>
    %c1_189 = arith.constant 1 : index
    %c0_190 = arith.constant 0 : index
    %480 = vector.load %arg4[%c1_189, %c0_190] : memref<9x128xf32, #tpu.memory_space<vmem>>, vector<1x128xf32>
    %481 = vector.broadcast %480 : vector<1x128xf32> to vector<32x128xf32>
    %482 = arith.mulf %479, %481 : vector<32x128xf32>
    %483 = vector.extract_strided_slice %468 {offsets = [0, 121], sizes = [32, 7], strides = [1, 1]} : vector<32x128xf32> to vector<32x7xf32>
    %484 = vector.extract_strided_slice %468 {offsets = [0, 0], sizes = [32, 121], strides = [1, 1]} : vector<32x128xf32> to vector<32x121xf32>
    %485 = tpu.concatenate %483, %484 in 1 : vector<32x7xf32>, vector<32x121xf32> -> vector<32x128xf32>
    %c2_191 = arith.constant 2 : index
    %c0_192 = arith.constant 0 : index
    %486 = vector.load %arg4[%c2_191, %c0_192] : memref<9x128xf32, #tpu.memory_space<vmem>>, vector<1x128xf32>
    %487 = vector.broadcast %486 : vector<1x128xf32> to vector<32x128xf32>
    %488 = arith.mulf %485, %487 : vector<32x128xf32>
    %489 = vector.extract_strided_slice %468 {offsets = [0, 127], sizes = [32, 1], strides = [1, 1]} : vector<32x128xf32> to vector<32x1xf32>
    %490 = vector.extract_strided_slice %468 {offsets = [0, 0], sizes = [32, 127], strides = [1, 1]} : vector<32x128xf32> to vector<32x127xf32>
    %491 = tpu.concatenate %489, %490 in 1 : vector<32x1xf32>, vector<32x127xf32> -> vector<32x128xf32>
    %c3_193 = arith.constant 3 : index
    %c0_194 = arith.constant 0 : index
    %492 = vector.load %arg4[%c3_193, %c0_194] : memref<9x128xf32, #tpu.memory_space<vmem>>, vector<1x128xf32>
    %493 = vector.broadcast %492 : vector<1x128xf32> to vector<32x128xf32>
    %494 = arith.mulf %491, %493 : vector<32x128xf32>
    %495 = vector.extract_strided_slice %468 {offsets = [0, 1], sizes = [32, 127], strides = [1, 1]} : vector<32x128xf32> to vector<32x127xf32>
    %496 = vector.extract_strided_slice %468 {offsets = [0, 0], sizes = [32, 1], strides = [1, 1]} : vector<32x128xf32> to vector<32x1xf32>
    %497 = tpu.concatenate %495, %496 in 1 : vector<32x127xf32>, vector<32x1xf32> -> vector<32x128xf32>
    %c5_195 = arith.constant 5 : index
    %c0_196 = arith.constant 0 : index
    %498 = vector.load %arg4[%c5_195, %c0_196] : memref<9x128xf32, #tpu.memory_space<vmem>>, vector<1x128xf32>
    %499 = vector.broadcast %498 : vector<1x128xf32> to vector<32x128xf32>
    %500 = arith.mulf %497, %499 : vector<32x128xf32>
    %501 = vector.extract_strided_slice %468 {offsets = [0, 7], sizes = [32, 121], strides = [1, 1]} : vector<32x128xf32> to vector<32x121xf32>
    %502 = vector.extract_strided_slice %468 {offsets = [0, 0], sizes = [32, 7], strides = [1, 1]} : vector<32x128xf32> to vector<32x7xf32>
    %503 = tpu.concatenate %501, %502 in 1 : vector<32x121xf32>, vector<32x7xf32> -> vector<32x128xf32>
    %c6_197 = arith.constant 6 : index
    %c0_198 = arith.constant 0 : index
    %504 = vector.load %arg4[%c6_197, %c0_198] : memref<9x128xf32, #tpu.memory_space<vmem>>, vector<1x128xf32>
    %505 = vector.broadcast %504 : vector<1x128xf32> to vector<32x128xf32>
    %506 = arith.mulf %503, %505 : vector<32x128xf32>
    %507 = vector.extract_strided_slice %468 {offsets = [0, 8], sizes = [32, 120], strides = [1, 1]} : vector<32x128xf32> to vector<32x120xf32>
    %508 = vector.extract_strided_slice %468 {offsets = [0, 0], sizes = [32, 8], strides = [1, 1]} : vector<32x128xf32> to vector<32x8xf32>
    %509 = tpu.concatenate %507, %508 in 1 : vector<32x120xf32>, vector<32x8xf32> -> vector<32x128xf32>
    %c7_199 = arith.constant 7 : index
    %c0_200 = arith.constant 0 : index
    %510 = vector.load %arg4[%c7_199, %c0_200] : memref<9x128xf32, #tpu.memory_space<vmem>>, vector<1x128xf32>
    %511 = vector.broadcast %510 : vector<1x128xf32> to vector<32x128xf32>
    %512 = arith.mulf %509, %511 : vector<32x128xf32>
    %513 = vector.extract_strided_slice %468 {offsets = [0, 9], sizes = [32, 119], strides = [1, 1]} : vector<32x128xf32> to vector<32x119xf32>
    %514 = vector.extract_strided_slice %468 {offsets = [0, 0], sizes = [32, 9], strides = [1, 1]} : vector<32x128xf32> to vector<32x9xf32>
    %515 = tpu.concatenate %513, %514 in 1 : vector<32x119xf32>, vector<32x9xf32> -> vector<32x128xf32>
    %c8_201 = arith.constant 8 : index
    %c0_202 = arith.constant 0 : index
    %516 = vector.load %arg4[%c8_201, %c0_202] : memref<9x128xf32, #tpu.memory_space<vmem>>, vector<1x128xf32>
    %517 = vector.broadcast %516 : vector<1x128xf32> to vector<32x128xf32>
    %518 = arith.mulf %515, %517 : vector<32x128xf32>
    %519 = tpu.concatenate %476, %482, %488, %494, %468, %500, %506, %512, %518 in 0 : vector<32x128xf32>, vector<32x128xf32>, vector<32x128xf32>, vector<32x128xf32>, vector<32x128xf32>, vector<32x128xf32>, vector<32x128xf32>, vector<32x128xf32>, vector<32x128xf32> -> vector<288x128xf32>
    %520 = arith.truncf %519 : vector<288x128xf32> to vector<288x128xbf16>
    %cst_203 = arith.constant dense<0.000000e+00> : vector<16x128xf32>
    %521 = tpu.matmul %469, %520, %cst_203 {dimension_numbers = #tpu.dot_dimension_numbers<[1], [0], [0], [1], [0, 0, 1, 1], [], []>} : vector<16x288xbf16>, vector<288x128xbf16>, vector<16x128xf32> -> vector<16x128xf32>
    %522 = vector.broadcast %470 : vector<16x1xf32> to vector<16x128xf32>
    %523 = arith.addf %521, %522 : vector<16x128xf32>
    %cst_204 = arith.constant 0.000000e+00 : f32
    %524 = vector.broadcast %cst_204 : f32 to vector<16x128xf32>
    %525 = arith.cmpf oge, %523, %524 : vector<16x128xf32>
    %cst_205 = arith.constant 0.00999999977 : f32
    %526 = vector.broadcast %cst_205 : f32 to vector<16x128xf32>
    %527 = arith.mulf %523, %526 : vector<16x128xf32>
    %528 = arith.select %525, %523, %527 : vector<16x128xi1>, vector<16x128xf32>
    %c200 = arith.constant 200 : index
    %c0_206 = arith.constant 0 : index
    %529 = vector.load %arg1[%c200, %c0_206] : memref<224x288xbf16, #tpu.memory_space<vmem>>, vector<8x64xbf16>
    %c200_207 = arith.constant 200 : index
    %c0_208 = arith.constant 0 : index
    %530 = vector.load %arg2[%c200_207, %c0_208] : memref<224x1xf32, #tpu.memory_space<vmem>>, vector<8x1xf32>
    %531 = arith.truncf %528 : vector<16x128xf32> to vector<16x128xbf16>
    %c0_209 = arith.constant 0 : index
    %c0_210 = arith.constant 0 : index
    %532 = vector.load %arg11[%c0_209, %c0_210] : memref<128x512xbf16, #tpu.memory_space<vmem>>, vector<128x512xbf16>
    %cst_211 = arith.constant dense<0.000000e+00> : vector<16x512xf32>
    %533 = tpu.matmul %531, %532, %cst_211 {dimension_numbers = #tpu.dot_dimension_numbers<[1], [0], [0], [1], [0, 0, 1, 1], [], []>} : vector<16x128xbf16>, vector<128x512xbf16>, vector<16x512xf32> -> vector<16x512xf32>
    %c0_212 = arith.constant 0 : index
    %c0_213 = arith.constant 0 : index
    %534 = vector.load %arg13[%c0_212, %c0_213] : memref<4x512xf32, #tpu.memory_space<vmem>>, vector<1x512xf32>
    %535 = vector.broadcast %534 : vector<1x512xf32> to vector<16x512xf32>
    %536 = arith.mulf %533, %535 : vector<16x512xf32>
    %c1_214 = arith.constant 1 : index
    %c0_215 = arith.constant 0 : index
    %537 = vector.load %arg13[%c1_214, %c0_215] : memref<4x512xf32, #tpu.memory_space<vmem>>, vector<1x512xf32>
    %538 = vector.broadcast %537 : vector<1x512xf32> to vector<16x512xf32>
    %539 = arith.mulf %533, %538 : vector<16x512xf32>
    %c2_216 = arith.constant 2 : index
    %c0_217 = arith.constant 0 : index
    %540 = vector.load %arg13[%c2_216, %c0_217] : memref<4x512xf32, #tpu.memory_space<vmem>>, vector<1x512xf32>
    %541 = vector.broadcast %540 : vector<1x512xf32> to vector<16x512xf32>
    %542 = arith.mulf %533, %541 : vector<16x512xf32>
    %c3_218 = arith.constant 3 : index
    %c0_219 = arith.constant 0 : index
    %543 = vector.load %arg13[%c3_218, %c0_219] : memref<4x512xf32, #tpu.memory_space<vmem>>, vector<1x512xf32>
    %544 = vector.broadcast %543 : vector<1x512xf32> to vector<16x512xf32>
    %545 = arith.mulf %533, %544 : vector<16x512xf32>
    %546 = tpu.concatenate %536, %539, %542, %545 in 0 : vector<16x512xf32>, vector<16x512xf32>, vector<16x512xf32>, vector<16x512xf32> -> vector<64x512xf32>
    %547 = arith.truncf %546 : vector<64x512xf32> to vector<64x512xbf16>
    %cst_220 = arith.constant dense<0.000000e+00> : vector<8x512xf32>
    %548 = tpu.matmul %529, %547, %cst_220 {dimension_numbers = #tpu.dot_dimension_numbers<[1], [0], [0], [1], [0, 0, 1, 1], [], []>} : vector<8x64xbf16>, vector<64x512xbf16>, vector<8x512xf32> -> vector<8x512xf32>
    %549 = vector.broadcast %530 : vector<8x1xf32> to vector<8x512xf32>
    %550 = arith.addf %548, %549 : vector<8x512xf32>
    %551 = tpu.concatenate %550, %185 in 0 : vector<8x512xf32>, vector<8x512xf32> -> vector<16x512xf32>
    %c208 = arith.constant 208 : index
    %c0_221 = arith.constant 0 : index
    %552 = vector.load %arg1[%c208, %c0_221] : memref<224x288xbf16, #tpu.memory_space<vmem>>, vector<8x144xbf16>
    %c208_222 = arith.constant 208 : index
    %c0_223 = arith.constant 0 : index
    %553 = vector.load %arg2[%c208_222, %c0_223] : memref<224x1xf32, #tpu.memory_space<vmem>>, vector<8x1xf32>
    %554 = vector.extract_strided_slice %551 {offsets = [0, 495], sizes = [16, 17], strides = [1, 1]} : vector<16x512xf32> to vector<16x17xf32>
    %555 = vector.extract_strided_slice %551 {offsets = [0, 0], sizes = [16, 495], strides = [1, 1]} : vector<16x512xf32> to vector<16x495xf32>
    %556 = tpu.concatenate %554, %555 in 1 : vector<16x17xf32>, vector<16x495xf32> -> vector<16x512xf32>
    %c0_224 = arith.constant 0 : index
    %c0_225 = arith.constant 0 : index
    %557 = vector.load %arg3[%c0_224, %c0_225] : memref<9x512xf32, #tpu.memory_space<vmem>>, vector<1x512xf32>
    %558 = vector.broadcast %557 : vector<1x512xf32> to vector<16x512xf32>
    %559 = arith.mulf %556, %558 : vector<16x512xf32>
    %560 = vector.extract_strided_slice %551 {offsets = [0, 496], sizes = [16, 16], strides = [1, 1]} : vector<16x512xf32> to vector<16x16xf32>
    %561 = vector.extract_strided_slice %551 {offsets = [0, 0], sizes = [16, 496], strides = [1, 1]} : vector<16x512xf32> to vector<16x496xf32>
    %562 = tpu.concatenate %560, %561 in 1 : vector<16x16xf32>, vector<16x496xf32> -> vector<16x512xf32>
    %c1_226 = arith.constant 1 : index
    %c0_227 = arith.constant 0 : index
    %563 = vector.load %arg3[%c1_226, %c0_227] : memref<9x512xf32, #tpu.memory_space<vmem>>, vector<1x512xf32>
    %564 = vector.broadcast %563 : vector<1x512xf32> to vector<16x512xf32>
    %565 = arith.mulf %562, %564 : vector<16x512xf32>
    %566 = vector.extract_strided_slice %551 {offsets = [0, 497], sizes = [16, 15], strides = [1, 1]} : vector<16x512xf32> to vector<16x15xf32>
    %567 = vector.extract_strided_slice %551 {offsets = [0, 0], sizes = [16, 497], strides = [1, 1]} : vector<16x512xf32> to vector<16x497xf32>
    %568 = tpu.concatenate %566, %567 in 1 : vector<16x15xf32>, vector<16x497xf32> -> vector<16x512xf32>
    %c2_228 = arith.constant 2 : index
    %c0_229 = arith.constant 0 : index
    %569 = vector.load %arg3[%c2_228, %c0_229] : memref<9x512xf32, #tpu.memory_space<vmem>>, vector<1x512xf32>
    %570 = vector.broadcast %569 : vector<1x512xf32> to vector<16x512xf32>
    %571 = arith.mulf %568, %570 : vector<16x512xf32>
    %572 = vector.extract_strided_slice %551 {offsets = [0, 511], sizes = [16, 1], strides = [1, 1]} : vector<16x512xf32> to vector<16x1xf32>
    %573 = vector.extract_strided_slice %551 {offsets = [0, 0], sizes = [16, 511], strides = [1, 1]} : vector<16x512xf32> to vector<16x511xf32>
    %574 = tpu.concatenate %572, %573 in 1 : vector<16x1xf32>, vector<16x511xf32> -> vector<16x512xf32>
    %c3_230 = arith.constant 3 : index
    %c0_231 = arith.constant 0 : index
    %575 = vector.load %arg3[%c3_230, %c0_231] : memref<9x512xf32, #tpu.memory_space<vmem>>, vector<1x512xf32>
    %576 = vector.broadcast %575 : vector<1x512xf32> to vector<16x512xf32>
    %577 = arith.mulf %574, %576 : vector<16x512xf32>
    %578 = vector.extract_strided_slice %551 {offsets = [0, 1], sizes = [16, 511], strides = [1, 1]} : vector<16x512xf32> to vector<16x511xf32>
    %579 = vector.extract_strided_slice %551 {offsets = [0, 0], sizes = [16, 1], strides = [1, 1]} : vector<16x512xf32> to vector<16x1xf32>
    %580 = tpu.concatenate %578, %579 in 1 : vector<16x511xf32>, vector<16x1xf32> -> vector<16x512xf32>
    %c5_232 = arith.constant 5 : index
    %c0_233 = arith.constant 0 : index
    %581 = vector.load %arg3[%c5_232, %c0_233] : memref<9x512xf32, #tpu.memory_space<vmem>>, vector<1x512xf32>
    %582 = vector.broadcast %581 : vector<1x512xf32> to vector<16x512xf32>
    %583 = arith.mulf %580, %582 : vector<16x512xf32>
    %584 = vector.extract_strided_slice %551 {offsets = [0, 15], sizes = [16, 497], strides = [1, 1]} : vector<16x512xf32> to vector<16x497xf32>
    %585 = vector.extract_strided_slice %551 {offsets = [0, 0], sizes = [16, 15], strides = [1, 1]} : vector<16x512xf32> to vector<16x15xf32>
    %586 = tpu.concatenate %584, %585 in 1 : vector<16x497xf32>, vector<16x15xf32> -> vector<16x512xf32>
    %c6_234 = arith.constant 6 : index
    %c0_235 = arith.constant 0 : index
    %587 = vector.load %arg3[%c6_234, %c0_235] : memref<9x512xf32, #tpu.memory_space<vmem>>, vector<1x512xf32>
    %588 = vector.broadcast %587 : vector<1x512xf32> to vector<16x512xf32>
    %589 = arith.mulf %586, %588 : vector<16x512xf32>
    %590 = vector.extract_strided_slice %551 {offsets = [0, 16], sizes = [16, 496], strides = [1, 1]} : vector<16x512xf32> to vector<16x496xf32>
    %591 = vector.extract_strided_slice %551 {offsets = [0, 0], sizes = [16, 16], strides = [1, 1]} : vector<16x512xf32> to vector<16x16xf32>
    %592 = tpu.concatenate %590, %591 in 1 : vector<16x496xf32>, vector<16x16xf32> -> vector<16x512xf32>
    %c7_236 = arith.constant 7 : index
    %c0_237 = arith.constant 0 : index
    %593 = vector.load %arg3[%c7_236, %c0_237] : memref<9x512xf32, #tpu.memory_space<vmem>>, vector<1x512xf32>
    %594 = vector.broadcast %593 : vector<1x512xf32> to vector<16x512xf32>
    %595 = arith.mulf %592, %594 : vector<16x512xf32>
    %596 = vector.extract_strided_slice %551 {offsets = [0, 17], sizes = [16, 495], strides = [1, 1]} : vector<16x512xf32> to vector<16x495xf32>
    %597 = vector.extract_strided_slice %551 {offsets = [0, 0], sizes = [16, 17], strides = [1, 1]} : vector<16x512xf32> to vector<16x17xf32>
    %598 = tpu.concatenate %596, %597 in 1 : vector<16x495xf32>, vector<16x17xf32> -> vector<16x512xf32>
    %c8_238 = arith.constant 8 : index
    %c0_239 = arith.constant 0 : index
    %599 = vector.load %arg3[%c8_238, %c0_239] : memref<9x512xf32, #tpu.memory_space<vmem>>, vector<1x512xf32>
    %600 = vector.broadcast %599 : vector<1x512xf32> to vector<16x512xf32>
    %601 = arith.mulf %598, %600 : vector<16x512xf32>
    %602 = tpu.concatenate %559, %565, %571, %577, %551, %583, %589, %595, %601 in 0 : vector<16x512xf32>, vector<16x512xf32>, vector<16x512xf32>, vector<16x512xf32>, vector<16x512xf32>, vector<16x512xf32>, vector<16x512xf32>, vector<16x512xf32>, vector<16x512xf32> -> vector<144x512xf32>
    %603 = arith.truncf %602 : vector<144x512xf32> to vector<144x512xbf16>
    %cst_240 = arith.constant dense<0.000000e+00> : vector<8x512xf32>
    %604 = tpu.matmul %552, %603, %cst_240 {dimension_numbers = #tpu.dot_dimension_numbers<[1], [0], [0], [1], [0, 0, 1, 1], [], []>} : vector<8x144xbf16>, vector<144x512xbf16>, vector<8x512xf32> -> vector<8x512xf32>
    %605 = vector.broadcast %553 : vector<8x1xf32> to vector<8x512xf32>
    %606 = arith.addf %604, %605 : vector<8x512xf32>
    %cst_241 = arith.constant 0.000000e+00 : f32
    %607 = vector.broadcast %cst_241 : f32 to vector<8x512xf32>
    %608 = arith.cmpf oge, %606, %607 : vector<8x512xf32>
    %cst_242 = arith.constant 0.00999999977 : f32
    %609 = vector.broadcast %cst_242 : f32 to vector<8x512xf32>
    %610 = arith.mulf %606, %609 : vector<8x512xf32>
    %611 = arith.select %608, %606, %610 : vector<8x512xi1>, vector<8x512xf32>
    %c216 = arith.constant 216 : index
    %c0_243 = arith.constant 0 : index
    %612 = vector.load %arg1[%c216, %c0_243] : memref<224x288xbf16, #tpu.memory_space<vmem>>, vector<3x8xbf16>
    %c216_244 = arith.constant 216 : index
    %c0_245 = arith.constant 0 : index
    %613 = vector.load %arg2[%c216_244, %c0_245] : memref<224x1xf32, #tpu.memory_space<vmem>>, vector<3x1xf32>
    %614 = arith.truncf %611 : vector<8x512xf32> to vector<8x512xbf16>
    %cst_246 = arith.constant dense<0.000000e+00> : vector<3x512xf32>
    %615 = tpu.matmul %612, %614, %cst_246 {dimension_numbers = #tpu.dot_dimension_numbers<[1], [0], [0], [1], [0, 0, 1, 1], [], []>} : vector<3x8xbf16>, vector<8x512xbf16>, vector<3x512xf32> -> vector<3x512xf32>
    %616 = vector.broadcast %613 : vector<3x1xf32> to vector<3x512xf32>
    %617 = arith.addf %615, %616 : vector<3x512xf32>
    %618 = vector.extract_strided_slice %617 {offsets = [0, 0], sizes = [3, 256], strides = [1, 1]} : vector<3x512xf32> to vector<3x256xf32>
    %c0_247 = arith.constant 0 : index
    %c0_248 = arith.constant 0 : index
    %c0_249 = arith.constant 0 : index
    %619 = vector.load %arg14[%c0_247, %c0_248, %c0_249] : memref<2x3x256xf32, #tpu.memory_space<vmem>>, vector<1x3x256xf32>
    %620 = vector.shape_cast %619 : vector<1x3x256xf32> to vector<3x256xf32>
    %621 = vector.shape_cast %618 : vector<3x256xf32> to vector<1x3x256xf32>
    tpu.vector_store %arg14[%c0_247, %c0_248, %c0_249], %621 {strides = array<i32>} : memref<2x3x256xf32, #tpu.memory_space<vmem>>, vector<1x3x256xf32>,
    %622 = vector.extract_strided_slice %617 {offsets = [0, 256], sizes = [3, 256], strides = [1, 1]} : vector<3x512xf32> to vector<3x256xf32>
    %c1_250 = arith.constant 1 : index
    %c0_251 = arith.constant 0 : index
    %c0_252 = arith.constant 0 : index
    %623 = vector.load %arg14[%c1_250, %c0_251, %c0_252] : memref<2x3x256xf32, #tpu.memory_space<vmem>>, vector<1x3x256xf32>
    %624 = vector.shape_cast %623 : vector<1x3x256xf32> to vector<3x256xf32>
    %625 = vector.shape_cast %622 : vector<3x256xf32> to vector<1x3x256xf32>
    tpu.vector_store %arg14[%c1_250, %c0_251, %c0_252], %625 {strides = array<i32>} : memref<2x3x256xf32, #tpu.memory_space<vmem>>, vector<1x3x256xf32>,
    return
  }
}

</mosaic_0001>

<bundles_post_ra>
// kernel: forward.1
= control target key start
LH: loop header
LB: loop body
LE: loop exit
PB: predicated region body
PF: predicated region fallthrough
CT: control target
= control target key end

     0   :  { %s5604_s17 = smov 17   ;;  %s7889_s22 = smov 16   ;;  %v7829_v4 = vmov 0   ;;  %v79_v6 = vlaneseq  ;;  %vm68_vm0 = vcmask 138240   ;;  %vm112_vm1 = vcmask 130048   ;;  %s7814_s0 = inlined_call_operand.vmem [shape: f32[2,8,256], index: 0, kind: input, shape index: {}]   ;;  %s7815_s1 = inlined_call_operand.vmem [shape: bf16[224,288], index: 1, kind: input, shape index: {}]   ;;  %s7816_s2 = inlined_call_operand.vmem [shape: f32[224,1], index: 2, kind: input, shape index: {}]   ;;  %s7817_s3 = inlined_call_operand.vmem [shape: f32[9,512], index: 3, kind: input, shape index: {}]   ;;  %s7818_s6 = inlined_call_operand.vmem [shape: bf16[512,128], index: 6, kind: input, shape index: {}]   ;;  %s7819_s8 = inlined_call_operand.vmem [shape: bf16[512,128], index: 8, kind: input, shape index: {}]   ;;  %s7820_s4 = inlined_call_operand.vmem [shape: f32[9,128], index: 4, kind: input, shape index: {}]   ;;  %s7821_s7 = inlined_call_operand.vmem [shape: bf16[128,32], index: 7, kind: input, shape index: {}]   ;;  %s7822_s9 = inlined_call_operand.vmem [shape: bf16[128,32], index: 9, kind: input, shape index: {}]   ;;  %s7823_s5 = inlined_call_operand.vmem [shape: f32[9,32], index: 5, kind: input, shape index: {}]   ;;  %s7824_s10 = inlined_call_operand.vmem [shape: bf16[32,128], index: 10, kind: input, shape index: {}]   ;;  %s7825_s12 = inlined_call_operand.vmem [shape: f32[4,128], index: 12, kind: input, shape index: {}]   ;;  %s7826_s11 = inlined_call_operand.vmem [shape: bf16[128,512], index: 11, kind: input, shape index: {}]   ;;  %s7827_s13 = inlined_call_operand.vmem [shape: f32[4,512], index: 13, kind: input, shape index: {}]   ;;  %s7828_s14 = inlined_call_operand.vmem [shape: f32[2,3,256], index: 14, kind: output, shape index: {}]  }
   0x1   :  { %v5713_v0 = vld [vmem:[%s7814_s0 + $0x18] sm:$0xff]  ;;  %v5718_v1 = vld [vmem:[%s7814_s0 + $0x8] sm:$0xff]  ;;  %v5727_v2 = vld [vmem:[%s7814_s0 + $0x10] sm:$0xff]  ;;  %s5607_s23 = smov 1   ;;  %s5608_s24 = smov 127   ;;  %492 = vmatprep.mubr.bf16.mxu0 %v7829_v4  ;;  %533 = vmatprep.mubr.bf16.mxu1 %v7829_v4  ;;  %vm202_vm2 = vcmask 7168  }
   0x2   :  { %56 = vrot.lane.b32.xlu0 %v5713_v0, %s5604_s17  ;;  %64 = vrot.lane.b32.xlu1 %v5718_v1, %s5604_s17  ;;  %v5732_v3 = vld [vmem:[%s7814_s0] sm:$0xff]  ;;  %s7887_s0 = smov 15   ;;  %s7891_s25 = smov 113   ;;  %v80_v9 = vshrl.u32 %v79_v6, 7  ;;  %vm157_vm3 = vcmask 121856   ;;  %vm246_vm4 = vcmask 1039360  }
   0x3   :  { %s7885_s26 = smov 112   ;;  %5436 = vset.pattern.permute.xlu0 %v7829_v4  ;;  %5437 = vset.pattern.permute.xlu1 %v7829_v4  ;;  %s7883_s27 = smov 111   ;;  %v54_v5 = vld [vmem:[%s7816_s2] sm:$0xff]  ;;  %vm336_vm5 = vcmask 916480   ;;  %vm291_vm6 = vcmask 924672   ;;  %vm381_vm7 = vcmask 908288  }
   0x4   :  { %v5801_v12 = vsub.s32 1, %v80_v9  ;;  %v5803_v13 = vsub.s32 3, %v80_v9  ;;  %v77_v14 = vld [vmem:[%s7817_s3] ss:$8 sm:$0xf]  ;;  %v5811_v16 = vsub.s32 2, %v80_v9 }
   0x5   :  { %v4807_v15 = vld [vmem:[%s7817_s3 + $0x1] ss:$8 sm:$0xf]  ;;  %v5813_v17 = vsub.s32 0, %v80_v9  ;;  %vm447_vm8 = vcmask 1043456   ;;  %vm443_vm9 = vcmask 588800  }
   0x6   :  { %66 = vrot.lane.b32.xlu1 %v5727_v2, %s5604_s17  ;;  %62 = vrot.lane.b32.xlu0 %v5732_v3, %s5604_s17  ;;  %7924 = vst [vmem:[#allocation2_spill] sm:$0xff] %v5801_v12  ;;  %7925 = vst [vmem:[#allocation3_spill] sm:$0xff] %v5803_v13  ;;  %v5816_v20 = vrot.slane %v77_v14, %v5801_v12  ;;  %v5819_v21 = vrot.slane %v77_v14, %v5803_v13  ;;  %v4809_v54 = vld [vmem:[%s7817_s3 + $0x3] ss:$8 sm:$0xf]  ;;  %s5615_s20 = smov 9  }
   0x7   :  { %7926 = vst [vmem:[#allocation4_spill] sm:$0xff] %v5811_v16  ;;  %7927 = vst [vmem:[#allocation5_spill] sm:$0xff] %v5813_v17  ;;  %v5823_v23 = vrot.slane %v4807_v15, %v5801_v12  ;;  %v5827_v25 = vrot.slane %v4807_v15, %v5813_v17  ;;  %v5831_v27 = vrot.slane %v4807_v15, %v5803_v13  ;;  %v4808_v55 = vld [vmem:[%s7817_s3 + $0x2] ss:$8 sm:$0xf]  ;;  %s5616_s21 = smov 8  }
   0x8   :  { %v5834_v28 = vrot.slane %v77_v14, %v5811_v16  ;;  %v5837_v29 = vrot.slane %v4807_v15, %v5811_v16  ;;  %v5841_v31 = vrot.slane %v77_v14, %v5813_v17  ;;  %v5862_v56 = vrot.slane %v4808_v55, %v5803_v13  ;;  %s5618_s28 = smov 121   ;;  %s5619_s29 = smov 120  }
   0x9   :  { %7928 = vst [vmem:[#allocation6_spill] sm:$0xff] %v5823_v23  ;;  %7929 = vst [vmem:[#allocation7_spill] sm:$0xff] %v5827_v25  ;;  %v5865_v57 = vrot.slane %v4808_v55, %v5801_v12  ;;  %v5869_v61 = vrot.slane %v4808_v55, %v5811_v16  ;;  %v5873_v63 = vrot.slane %v4809_v54, %v5813_v17  ;;  %s5620_s15 = smov 119   ;;  %s5625_s19 = smov 4  }
   0xa   :  { %106 = vrot.lane.b32.xlu1 %v5732_v3, %s7889_s22  ;;  %103 = vrot.lane.b32.xlu0 %v5713_v0, %s7889_s22  ;;  %7930 = vst [vmem:[#allocation8_spill] sm:$0xff] %v5831_v27  ;;  %7931 = vst [vmem:[#allocation9_spill] sm:$0xff] %v5837_v29  ;;  %v5877_v6 = vrot.slane %v4809_v54, %v5803_v13  ;;  %v5886_v9 = vrot.slane %v4808_v55, %v5813_v17  ;;  %s5628_s30 = smov 99   ;;  %s5630_s16 = smov 124  }
   0xb   :  { %7932 = vst [vmem:[#allocation10_spill] sm:$0xff] %v5862_v56  ;;  %7933 = vst [vmem:[#allocation11_spill] sm:$0xff] %v5865_v57  ;;  %s5631_s18 = smov 28  }
   0xc   :  { %7934 = vst [vmem:[#allocation12_spill] sm:$0xff] %v5869_v61  ;;  %7935 = vst [vmem:[#allocation13_spill] sm:$0xff] %v5873_v63 }
   0xd   :  { %7936 = vst [vmem:[#allocation14_spill] sm:$0xff] %v5877_v6  ;;  %7939 = vst [vmem:[#allocation17_spill] sm:$0xff] %v5886_v9 }
   0xe   :  { %110 = vrot.lane.b32.xlu1 %v5727_v2, %s7889_s22  ;;  %108 = vrot.lane.b32.xlu0 %v5718_v1, %s7889_s22 }
  0x12   :  { %151 = vrot.lane.b32.xlu1 %v5732_v3, %s7887_s0  ;;  %148 = vrot.lane.b32.xlu0 %v5713_v0, %s7887_s0 }
  0x16   :  { %155 = vrot.lane.b32.xlu1 %v5727_v2, %s7887_s0  ;;  %153 = vrot.lane.b32.xlu0 %v5718_v1, %s7887_s0 }
  0x1a   :  { %196 = vrot.lane.b32.xlu1 %v5732_v3, %s5607_s23  ;;  %193 = vrot.lane.b32.xlu0 %v5713_v0, %s5607_s23 }
  0x1e   :  { %200 = vrot.lane.b32.xlu1 %v5727_v2, %s5607_s23  ;;  %198 = vrot.lane.b32.xlu0 %v5718_v1, %s5607_s23 }
  0x22   :  { %240 = vrot.lane.b32.xlu1 %v5718_v1, %s5608_s24  ;;  %238 = vrot.lane.b32.xlu0 %v5732_v3, %s5608_s24 }
  0x26   :  { %244 = vrot.lane.b32.xlu1 %v5713_v0, %s5608_s24  ;;  %242 = vrot.lane.b32.xlu0 %v5727_v2, %s5608_s24 }
  0x2a   :  { %285 = vrot.lane.b32.xlu1 %v5718_v1, %s7891_s25  ;;  %283 = vrot.lane.b32.xlu0 %v5732_v3, %s7891_s25 }
  0x2e   :  { %289 = vrot.lane.b32.xlu1 %v5713_v0, %s7891_s25  ;;  %287 = vrot.lane.b32.xlu0 %v5727_v2, %s7891_s25 }
  0x32   :  { %330 = vrot.lane.b32.xlu1 %v5718_v1, %s7885_s26  ;;  %328 = vrot.lane.b32.xlu0 %v5732_v3, %s7885_s26 }
  0x36   :  { %334 = vrot.lane.b32.xlu1 %v5713_v0, %s7885_s26  ;;  %332 = vrot.lane.b32.xlu0 %v5727_v2, %s7885_s26 }
  0x3a   :  { %375 = vrot.lane.b32.xlu1 %v5718_v1, %s7883_s27  ;;  %373 = vrot.lane.b32.xlu0 %v5732_v3, %s7883_s27 }
  0x3e   :  { %379 = vrot.lane.b32.xlu1 %v5713_v0, %s7883_s27  ;;  %377 = vrot.lane.b32.xlu0 %v5727_v2, %s7883_s27 }
  0x42   :  { %440 = vperm.xlu0 %5436, %v54_v5  }
  0x74   :  { %v57_v7 = vpop.permute.xlu0 %56  ;;  %v65_v8 = vpop.permute.xlu1 %64 }
  0x78   :  { %v67_v10 = vpop.permute.xlu1 %66  ;;  %v63_v11 = vpop.permute.xlu0 %62 }
  0x79   :  { %v69_v22 = vsel %vm68_vm0, %v63_v11, %v65_v8  ;;  %v71_v24 = vsel %vm68_vm0, %v67_v10, %v57_v7  ;;  %v70_v30 = vsel %vm68_vm0, %v65_v8, %v67_v10  ;;  %v76_v32 = vsel %vm68_vm0, %v57_v7, %v63_v11 }
  0x7a   :  { %v100_v35 = vmul.f32 %v5816_v20, %v69_v22  ;;  %v102_v36 = vmul.f32 %v5819_v21, %v71_v24  ;;  %v101_v43 = vmul.f32 %v5834_v28, %v70_v30  ;;  %v99_v45 = vmul.f32 %v5841_v31, %v76_v32 }
  0x7b   :  { %v5880_v7 = vrot.slane %v4809_v54, %v5801_v12  ;;  %v5883_v8 = vrot.slane %v4809_v54, %v5811_v16 }
  0x7c   :  { %v107_v18 = vpop.permute.xlu1 %106  ;;  %v104_v19 = vpop.permute.xlu0 %103 }
  0x7d   :  { %v120_v26 = vsel %vm112_vm1, %v104_v19, %v107_v18  ;;  %7937 = vst [vmem:[#allocation15_spill] sm:$0xff] %v5880_v7  ;;  %7938 = vst [vmem:[#allocation16_spill] sm:$0xff] %v5883_v8 }
  0x7e   :  { %v144_v40 = vmul.f32 %v5827_v25, %v120_v26 }
  0x80   :  { %v111_v33 = vpop.permute.xlu1 %110  ;;  %v109_v34 = vpop.permute.xlu0 %108  ;;  %v418_v51 = vpack.c.bf16 %v144_v40, %v99_v45 }
  0x81   :  { %v114_v37 = vsel %vm112_vm1, %v109_v34, %v111_v33  ;;  %v113_v38 = vsel %vm112_vm1, %v107_v18, %v109_v34  ;;  %v115_v39 = vsel %vm112_vm1, %v111_v33, %v104_v19 }
  0x82   :  { %v145_v41 = vmul.f32 %v5823_v23, %v113_v38  ;;  %v147_v42 = vmul.f32 %v5831_v27, %v115_v39  ;;  %v146_v44 = vmul.f32 %v5837_v29, %v114_v37 }
  0x84   :  { %v152_v46 = vpop.permute.xlu1 %151  ;;  %v149_v47 = vpop.permute.xlu0 %148  ;;  %v419_v48 = vpack.c.bf16 %v145_v41, %v100_v35  ;;  %v421_v49 = vpack.c.bf16 %v147_v42, %v102_v36  ;;  %v420_v50 = vpack.c.bf16 %v146_v44, %v101_v43  ;;  %v4810_v36 = vld [vmem:[%s7817_s3 + $0x5] ss:$8 sm:$0xf] }
  0x85   :  { %v165_v11 = vsel %vm157_vm3, %v149_v47, %v152_v46  ;;  %v5905_v43 = vrot.slane %v4810_v36, %v5813_v17  ;;  %v5908_v45 = vrot.slane %v4810_v36, %v5803_v13 }
  0x86   :  { %460 = vmatprep.subr.bf16.mxu0 %v419_v48  ;;  %501 = vmatprep.subr.bf16.mxu1 %v421_v49  ;;  %v189_v37 = vmul.f32 %v5886_v9, %v165_v11  ;;  %v5915_v48 = vrot.slane %v4810_v36, %v5811_v16 }
  0x87   :  { %461 = vmatpush1.bf16.msra.mxu0 %v418_v51  ;;  %502 = vmatpush1.bf16.msra.mxu1 %v420_v50  ;;  %7940 = vst [vmem:[#allocation18_spill] sm:$0xff] %v5905_v43  ;;  %7941 = vst [vmem:[#allocation19_spill] sm:$0xff] %v5908_v45 }
  0x88   :  { %v156_v52 = vpop.permute.xlu1 %155  ;;  %v154_v53 = vpop.permute.xlu0 %153  ;;  %7943 = vst [vmem:[#allocation21_spill] sm:$0xff] %v5915_v48 }
  0x89   :  { %v160_v60 = vsel %vm157_vm3, %v156_v52, %v149_v47  ;;  %v158_v62 = vsel %vm157_vm3, %v152_v46, %v154_v53  ;;  %v159_v10 = vsel %vm157_vm3, %v154_v53, %v156_v52  ;;  %v5912_v47 = vrot.slane %v4810_v36, %v5801_v12 }
  0x8a   :  { %v192_v14 = vmul.f32 %v5862_v56, %v160_v60  ;;  %v190_v15 = vmul.f32 %v5865_v57, %v158_v62  ;;  %v191_v32 = vmul.f32 %v5869_v61, %v159_v10 }
  0x8b   :  { %7942 = vst [vmem:[#allocation20_spill] sm:$0xff] %v5912_v47 }
  0x8c   :  { %v197_v58 = vpop.permute.xlu1 %196  ;;  %v194_v59 = vpop.permute.xlu0 %193 }
  0x8d   :  { %v210_v5 = vsel %vm202_vm2, %v194_v59, %v197_v58 }
  0x8e   :  { %v234_v22 = vmul.f32 %v5873_v63, %v210_v5 }
  0x90   :  { %v201_v18 = vpop.permute.xlu1 %200  ;;  %v199_v19 = vpop.permute.xlu0 %198  ;;  %v422_v44 = vpack.c.bf16 %v234_v22, %v189_v37 }
  0x91   :  { %v205_v24 = vsel %vm202_vm2, %v201_v18, %v194_v59  ;;  %v203_v26 = vsel %vm202_vm2, %v197_v58, %v199_v19  ;;  %v204_v30 = vsel %vm202_vm2, %v199_v19, %v201_v18  ;;  %v4812_v19 = vld [vmem:[%s7817_s3 + $0x7] ss:$8 sm:$0xf] }
  0x92   :  { %v237_v33 = vmul.f32 %v5877_v6, %v205_v24  ;;  %v235_v34 = vmul.f32 %v5880_v7, %v203_v26  ;;  %v236_v35 = vmul.f32 %v5883_v8, %v204_v30  ;;  %v5956_v36 = vrot.slane %v4812_v19, %v5801_v12 }
  0x93   :  { %v5959_v37 = vrot.slane %v4812_v19, %v5811_v16 }
  0x94   :  { %v241_v38 = vpop.permute.xlu1 %240  ;;  %v239_v39 = vpop.permute.xlu0 %238  ;;  %v423_v40 = vpack.c.bf16 %v235_v34, %v190_v15  ;;  %v425_v41 = vpack.c.bf16 %v237_v33, %v192_v14  ;;  %v424_v42 = vpack.c.bf16 %v236_v35, %v191_v32  ;;  %v5946_v32 = vrot.slane %v4812_v19, %v5813_v17  ;;  %v4813_v33 = vld [vmem:[%s7817_s3 + $0x20] ss:$8 sm:$0xf]  ;;  %7949 = vst [vmem:[#allocation27_spill] sm:$0xff] %v5956_v36 }
  0x95   :  { %v247_v46 = vsel %vm246_vm4, %v239_v39, %v241_v38  ;;  %v5953_v35 = vrot.slane %v4812_v19, %v5803_v13  ;;  %7950 = vst [vmem:[#allocation28_spill] sm:$0xff] %v5959_v37  ;;  %v5982_v19 = vrot.slane %v4813_v33, %v5803_v13 }
  0x96   :  { %462 = vmatprep.subr.bf16.mxu0 %v423_v40  ;;  %503 = vmatprep.subr.bf16.mxu1 %v425_v41  ;;  %v279_v51 = vmul.f32 %v5905_v43, %v247_v46  ;;  %7947 = vst [vmem:[#allocation25_spill] sm:$0xff] %v5946_v32 }
  0x97   :  { %463 = vmatpush1.bf16.msra.mxu0 %v422_v44  ;;  %504 = vmatpush1.bf16.msra.mxu1 %v424_v42  ;;  %7948 = vst [vmem:[#allocation26_spill] sm:$0xff] %v5953_v35  ;;  %7953 = vst [vmem:[#allocation31_spill] sm:$0xff] %v5982_v19 }
  0x98   :  { %v245_v49 = vpop.permute.xlu1 %244  ;;  %v243_v50 = vpop.permute.xlu0 %242  ;;  %v426_v14 = vpack.c.bf16 %v279_v51, %v5732_v3 }
  0x99   :  { %v255_v52 = vsel %vm246_vm4, %v245_v49, %v239_v39  ;;  %v248_v53 = vsel %vm246_vm4, %v241_v38, %v243_v50  ;;  %v249_v54 = vsel %vm246_vm4, %v243_v50, %v245_v49  ;;  %v5969_v49 = vrot.slane %v4813_v33, %v5813_v17 }
  0x9a   :  { %v282_v55 = vmul.f32 %v5908_v45, %v255_v52  ;;  %v280_v58 = vmul.f32 %v5912_v47, %v248_v53  ;;  %v281_v59 = vmul.f32 %v5915_v48, %v249_v54 }
  0x9b   :  { %7952 = vst [vmem:[#allocation30_spill] sm:$0xff] %v5969_v49 }
  0x9c   :  { %v286_v60 = vpop.permute.xlu1 %285  ;;  %v284_v62 = vpop.permute.xlu0 %283  ;;  %v427_v5 = vpack.c.bf16 %v280_v58, %v5718_v1  ;;  %v429_v10 = vpack.c.bf16 %v282_v55, %v5713_v0  ;;  %v428_v11 = vpack.c.bf16 %v281_v59, %v5727_v2  ;;  %v4811_v1 = vld [vmem:[%s7817_s3 + $0x6] ss:$8 sm:$0xf]  ;;  %s5617_s3 = smov 7  }
  0x9d   :  { %v5935_v0 = vrot.slane %v4811_v1, %v5803_v13  ;;  %v5938_v2 = vrot.slane %v4811_v1, %v5801_v12  ;;  %v5942_v26 = vrot.slane %v4811_v1, %v5811_v16  ;;  %v5962_v38 = vrot.slane %v4811_v1, %v5813_v17 }
  0x9e   :  { %464 = vmatprep.subr.bf16.mxu0 %v427_v5  ;;  %505 = vmatprep.subr.bf16.mxu1 %v429_v10  ;;  %v292_v40 = vsel %vm291_vm6, %v284_v62, %v286_v60  ;;  %v5985_v1 = vrot.slane %v4813_v33, %v5801_v12 }
  0x9f   :  { %465 = vmatpush1.bf16.msra.mxu0 %v426_v14  ;;  %506 = vmatpush1.bf16.msra.mxu1 %v428_v11  ;;  %7944 = vst [vmem:[#allocation22_spill] sm:$0xff] %v5935_v0  ;;  %7945 = vst [vmem:[#allocation23_spill] sm:$0xff] %v5938_v2 }
  0xa0   :  { %v290_v15 = vpop.permute.xlu1 %289  ;;  %v288_v18 = vpop.permute.xlu0 %287  ;;  %7946 = vst [vmem:[#allocation24_spill] sm:$0xff] %v5942_v26  ;;  %7951 = vst [vmem:[#allocation29_spill] sm:$0xff] %v5962_v38 }
  0xa1   :  { %v300_v24 = vsel %vm291_vm6, %v290_v15, %v284_v62  ;;  %v293_v30 = vsel %vm291_vm6, %v286_v60, %v288_v18  ;;  %v294_v39 = vsel %vm291_vm6, %v288_v18, %v290_v15  ;;  %v324_v60 = vmul.f32 %v5962_v38, %v292_v40  ;;  %7954 = vst [vmem:[#allocation32_spill] sm:$0xff] %v5985_v1 }
  0xa2   :  { %v327_v41 = vmul.f32 %v5935_v0, %v300_v24  ;;  %v325_v42 = vmul.f32 %v5938_v2, %v293_v30  ;;  %v326_v54 = vmul.f32 %v5942_v26, %v294_v39 }
  0xa4   :  { %v331_v3 = vpop.permute.xlu1 %330  ;;  %v329_v22 = vpop.permute.xlu0 %328 }
  0xa5   :  { %v337_v34 = vsel %vm336_vm5, %v329_v22, %v331_v3 }
  0xa6   :  { %v369_v50 = vmul.f32 %v5946_v32, %v337_v34 }
  0xa8   :  { %v335_v44 = vpop.permute.xlu1 %334  ;;  %v333_v46 = vpop.permute.xlu0 %332  ;;  %v430_v18 = vpack.c.bf16 %v369_v50, %v324_v60 }
  0xa9   :  { %v345_v51 = vsel %vm336_vm5, %v335_v44, %v329_v22  ;;  %v338_v52 = vsel %vm336_vm5, %v331_v3, %v333_v46  ;;  %v339_v53 = vsel %vm336_vm5, %v333_v46, %v335_v44  ;;  %v5989_v22 = vrot.slane %v4813_v33, %v5811_v16 }
  0xaa   :  { %v372_v55 = vmul.f32 %v5953_v35, %v345_v51  ;;  %v370_v58 = vmul.f32 %v5956_v36, %v338_v52  ;;  %v371_v59 = vmul.f32 %v5959_v37, %v339_v53 }
  0xab   :  { %7955 = vst [vmem:[#allocation33_spill] sm:$0xff] %v5989_v22 }
  0xac   :  { %v376_v62 = vpop.permute.xlu1 %375  ;;  %v374_v5 = vpop.permute.xlu0 %373  ;;  %v431_v10 = vpack.c.bf16 %v370_v58, %v325_v42  ;;  %v433_v11 = vpack.c.bf16 %v372_v55, %v327_v41  ;;  %v432_v14 = vpack.c.bf16 %v371_v59, %v326_v54  ;;  %v53_v54 = vld [vmem:[%s7815_s1] sm:$0xf] }
  0xad   :  { %v382_v15 = vsel %vm381_vm7, %v374_v5, %v376_v62 }
  0xae   :  { %466 = vmatprep.subr.bf16.mxu0 %v431_v10  ;;  %507 = vmatprep.subr.bf16.mxu1 %v433_v11  ;;  %v414_v3 = vmul.f32 %v5969_v49, %v382_v15 }
  0xaf   :  { %467 = vmatpush1.bf16.msra.mxu0 %v430_v18  ;;  %508 = vmatpush1.bf16.msra.mxu1 %v432_v14 }
  0xb0   :  { %v380_v24 = vpop.permute.xlu1 %379  ;;  %v378_v30 = vpop.permute.xlu0 %377  ;;  %v434_v44 = vpack.c.bf16 %v414_v3, %v414_v3 }
  0xb1   :  { %v390_v34 = vsel %vm381_vm7, %v380_v24, %v374_v5  ;;  %v383_v39 = vsel %vm381_vm7, %v376_v62, %v378_v30  ;;  %v384_v40 = vsel %vm381_vm7, %v378_v30, %v380_v24 }
  0xb2   :  { %v417_v41 = vmul.f32 %v5982_v19, %v390_v34  ;;  %v415_v42 = vmul.f32 %v5985_v1, %v383_v39  ;;  %v416_v46 = vmul.f32 %v5989_v22, %v384_v40  ;;  %v449_v52 = vsel %vm447_vm8, %v434_v44, 0 }
  0xb4   :  { %v437_v33 = vpack.c.bf16 %v417_v41, %v417_v41  ;;  %v435_v50 = vpack.c.bf16 %v415_v42, %v415_v42  ;;  %v436_v51 = vpack.c.bf16 %v416_v46, %v416_v46 }
  0xb6   :  { %4814 = vmatprep.subr.msk.bf16.mxu0 %vm447_vm8, %v435_v50  ;;  %4816 = vmatprep.subr.msk.bf16.mxu1 %vm447_vm8, %v437_v33  ;;  %v455_v53 = vsel %vm447_vm8, %v436_v51, 0  ;;  %v555_v33 = vld [vmem:[%s7816_s2 + $0x8] sm:$0xff] }
  0xb7   :  { %469 = vmatpush1.bf16.msra.mxu0 %v449_v52  ;;  %510 = vmatpush1.bf16.msra.mxu1 %v455_v53 }
  0xba   :  { %4815 = vmatmul.mubr.msk.bf16.vlgmr.msra.gmra.mrb[0].mxu0 %vm443_vm9, %v53_v54  ;;  %4817 = vmatmul.mubr.msk.bf16.vlgmr.msra.gmra.mrb[0].mxu1 %vm443_vm9, %v53_v54 }
  0xbb   :  { %800 = vmatprep.mubr.bf16.mxu0 %v7829_v4  ;;  %841 = vmatprep.mubr.bf16.mxu1 %v7829_v4 }
  0xc1   :  { %v441_v55 = vpop.permute.xlu0 %440 }
 0x18d   :  { %v494_v58 = vpop.f32.mrb[0].mxu0  ;;  %v535_v59 = vpop.f32.mrb[0].mxu1 }
 0x18e   :  { %v495_v60 = vadd.f32 %v494_v58, %v441_v55  ;;  %v536_v62 = vadd.f32 %v535_v59, %v441_v55  ;;  %v496_v5 = vpop.f32.mrb[1].mxu0  ;;  %v537_v10 = vpop.f32.mrb[1].mxu1 }
 0x18f   :  { %v498_v11 = vpop.f32.mrb[2].mxu0  ;;  %v539_v14 = vpop.f32.mrb[2].mxu1  ;;  %v497_v39 = vadd.f32 %v496_v5, %v441_v55  ;;  %v538_v41 = vadd.f32 %v537_v10, %v441_v55 }
 0x190   :  { %vm542_vm10 = vcmp.ge.f32.partialorder %v495_v60, 0.0  ;;  %v546_v15 = vmul.f32 0.01, %v495_v60  ;;  %v548_v18 = vmul.f32 0.01, %v536_v62  ;;  %v499_v24 = vpop.f32.mrb[3].mxu0 }
 0x191   :  { %v540_v30 = vpop.f32.mrb[3].mxu1  ;;  %vm544_vm11 = vcmp.ge.f32.partialorder %v536_v62, 0.0  ;;  %v547_v40 = vmul.f32 0.01, %v497_v39  ;;  %vm543_vm12 = vcmp.ge.f32.partialorder %v497_v39, 0.0  ;;  %vm545_vm13 = vcmp.ge.f32.partialorder %v538_v41, 0.0 }
 0x192   :  { %v6008_v3 = vsel %vm542_vm10, %v495_v60, %v546_v15  ;;  %v6014_v34 = vsel %vm544_vm11, %v536_v62, %v548_v18  ;;  %v549_v44 = vmul.f32 0.01, %v538_v41 }
 0x193   :  { %7956 = vst [vmem:[#allocation34_spill] sm:$0xff] %v6008_v3  ;;  %644 = vrot.lane.b32.xlu0 %v6008_v3, %s5608_s24  ;;  %563 = vrot.lane.b32.xlu1 %v6008_v3, %s5604_s17  ;;  %7957 = vst [vmem:[#allocation35_spill] sm:$0xff] %v6014_v34  ;;  %v6032_v42 = vsel %vm543_vm12, %v497_v39, %v547_v40 }
 0x194   :  { %7958 = vst [vmem:[#allocation36_spill] sm:$0xff] %v6032_v42  ;;  %v6038_v46 = vsel %vm545_vm13, %v538_v41, %v549_v44 }
 0x195   :  { %7959 = vst [vmem:[#allocation37_spill] sm:$0xff] %v6038_v46 }
 0x197   :  { %648 = vrot.lane.b32.xlu0 %v6014_v34, %s5608_s24  ;;  %567 = vrot.lane.b32.xlu1 %v6014_v34, %s5604_s17 }
 0x19b   :  { %665 = vrot.lane.b32.xlu0 %v6008_v3, %s7891_s25  ;;  %584 = vrot.lane.b32.xlu1 %v6008_v3, %s7889_s22 }
 0x19f   :  { %669 = vrot.lane.b32.xlu0 %v6014_v34, %s7891_s25  ;;  %588 = vrot.lane.b32.xlu1 %v6014_v34, %s7889_s22 }
 0x1a3   :  { %686 = vrot.lane.b32.xlu0 %v6008_v3, %s7885_s26  ;;  %605 = vrot.lane.b32.xlu1 %v6008_v3, %s7887_s0 }
 0x1a7   :  { %565 = vrot.lane.b32.xlu0 %v6032_v42, %s5604_s17  ;;  %609 = vrot.lane.b32.xlu1 %v6014_v34, %s7887_s0 }
 0x1ab   :  { %581 = vrot.lane.b32.xlu0 %v6038_v46, %s7889_s22  ;;  %626 = vrot.lane.b32.xlu1 %v6008_v3, %s5607_s23 }
 0x1af   :  { %586 = vrot.lane.b32.xlu0 %v6032_v42, %s7889_s22  ;;  %630 = vrot.lane.b32.xlu1 %v6014_v34, %s5607_s23 }
 0x1b3   :  { %602 = vrot.lane.b32.xlu0 %v6038_v46, %s7887_s0  ;;  %557 = vrot.lane.b32.xlu1 %v6038_v46, %s5604_s17 }
 0x1b7   :  { %607 = vrot.lane.b32.xlu0 %v6032_v42, %s7887_s0  ;;  %646 = vrot.lane.b32.xlu1 %v6032_v42, %s5608_s24 }
 0x1bb   :  { %623 = vrot.lane.b32.xlu0 %v6038_v46, %s5607_s23  ;;  %650 = vrot.lane.b32.xlu1 %v6038_v46, %s5608_s24 }
 0x1bf   :  { %628 = vrot.lane.b32.xlu0 %v6032_v42, %s5607_s23  ;;  %667 = vrot.lane.b32.xlu1 %v6032_v42, %s7891_s25 }
 0x1c3   :  { %690 = vrot.lane.b32.xlu0 %v6014_v34, %s7885_s26  ;;  %671 = vrot.lane.b32.xlu1 %v6038_v46, %s7891_s25 }
 0x1c7   :  { %707 = vrot.lane.b32.xlu0 %v6008_v3, %s7883_s27  ;;  %688 = vrot.lane.b32.xlu1 %v6032_v42, %s7885_s26 }
 0x1cb   :  { %711 = vrot.lane.b32.xlu0 %v6014_v34, %s7883_s27  ;;  %692 = vrot.lane.b32.xlu1 %v6038_v46, %s7885_s26 }
 0x1cf   :  { %750 = vperm.xlu0 %5436, %v555_v33   ;;  %709 = vrot.lane.b32.xlu1 %v6032_v42, %s7883_s27 }
 0x1d3   :  { %713 = vrot.lane.b32.xlu1 %v6038_v46, %s7883_s27 }
 0x205   :  { %v645_v50 = vpop.permute.xlu0 %644  ;;  %v564_v51 = vpop.permute.xlu1 %563 }
 0x209   :  { %v649_v52 = vpop.permute.xlu0 %648  ;;  %v568_v53 = vpop.permute.xlu1 %567 }
 0x20d   :  { %v6083_v54 = vpop.permute.xlu0 %665  ;;  %v585_v55 = vpop.permute.xlu1 %584 }
 0x211   :  { %v6085_v58 = vpop.permute.xlu0 %669  ;;  %v589_v59 = vpop.permute.xlu1 %588 }
 0x215   :  { %v6087_v60 = vpop.permute.xlu0 %686  ;;  %v606_v62 = vpop.permute.xlu1 %605 }
 0x219   :  { %v566_v5 = vpop.permute.xlu0 %565  ;;  %v610_v10 = vpop.permute.xlu1 %609 }
 0x21a   :  { %v569_v15 = vsel %vm68_vm0, %v564_v51, %v566_v5  ;;  %v570_v16 = vsel %vm68_vm0, %v566_v5, %v568_v53 }
 0x21b   :  { %v578_v39 = vmul.f32 %v569_v15, %v5816_v20 }
 0x21d   :  { %v582_v11 = vpop.permute.xlu0 %581  ;;  %v627_v14 = vpop.permute.xlu1 %626 }
 0x21e   :  { %v597_v40 = vsel %vm112_vm1, %v582_v11, %v585_v55  ;;  %v592_v44 = vsel %vm112_vm1, %v589_v59, %v582_v11 }
 0x21f   :  { %v598_v17 = vmul.f32 %v597_v40, %v5827_v25  ;;  %v601_v15 = vmul.f32 %v592_v44, %v5831_v27 }
 0x221   :  { %v587_v18 = vpop.permute.xlu0 %586  ;;  %v631_v24 = vpop.permute.xlu1 %630 }
 0x222   :  { %v590_v30 = vsel %vm112_vm1, %v585_v55, %v587_v18  ;;  %v591_v33 = vsel %vm112_vm1, %v587_v18, %v589_v59  ;;  %v579_v59 = vmul.f32 %v570_v16, %v5834_v28 }
 0x223   :  { %v599_v41 = vmul.f32 %v590_v30, %v5823_v23  ;;  %v600_v55 = vmul.f32 %v591_v33, %v5837_v29 }
 0x225   :  { %v603_v4 = vpop.permute.xlu0 %602  ;;  %v558_v13 = vpop.permute.xlu1 %557  ;;  %v729_v12 = vpack.c.bf16 %v599_v41, %v578_v39  ;;  %v730_v40 = vpack.c.bf16 %v600_v55, %v579_v59 }
 0x226   :  { %v571_v19 = vsel %vm68_vm0, %v568_v53, %v558_v13  ;;  %v576_v22 = vsel %vm68_vm0, %v558_v13, %v564_v51  ;;  %v613_v53 = vsel %vm157_vm3, %v610_v10, %v603_v4  ;;  %v618_v33 = vsel %vm157_vm3, %v603_v4, %v606_v62 }
 0x227   :  { %v577_v30 = vmul.f32 %v576_v22, %v5841_v31  ;;  %v580_v11 = vmul.f32 %v571_v19, %v5819_v21  ;;  %768 = vmatprep.subr.bf16.mxu0 %v729_v12  ;;  %v622_v12 = vmul.f32 %v613_v53, %v5862_v56 }
 0x229   :  { %v728_v18 = vpack.c.bf16 %v598_v17, %v577_v30  ;;  %v608_v39 = vpop.permute.xlu0 %607  ;;  %v647_v5 = vpop.permute.xlu1 %646  ;;  %v731_v41 = vpack.c.bf16 %v601_v15, %v580_v11 }
 0x22a   :  { %v611_v44 = vsel %vm157_vm3, %v606_v62, %v608_v39  ;;  %v612_v15 = vsel %vm157_vm3, %v608_v39, %v610_v10  ;;  %v653_v55 = vsel %vm246_vm4, %v647_v5, %v649_v52  ;;  %v652_v11 = vsel %vm246_vm4, %v645_v50, %v647_v5 }
 0x22b   :  { %769 = vmatpush1.bf16.msra.mxu0 %v728_v18  ;;  %809 = vmatprep.subr.bf16.mxu1 %v731_v41  ;;  %v620_v30 = vmul.f32 %v611_v44, %v5865_v57  ;;  %v621_v62 = vmul.f32 %v612_v15, %v5869_v61  ;;  %v662_v10 = vmul.f32 %v653_v55, %v5912_v47 }
 0x22c   :  { %810 = vmatpush1.bf16.msra.mxu1 %v730_v40 }
 0x22d   :  { %v624_v13 = vpop.permute.xlu0 %623  ;;  %v651_v51 = vpop.permute.xlu1 %650 }
 0x22e   :  { %v634_v22 = vsel %vm202_vm2, %v631_v24, %v624_v13  ;;  %v639_v16 = vsel %vm202_vm2, %v624_v13, %v627_v14  ;;  %v660_v19 = vsel %vm246_vm4, %v651_v51, %v645_v50  ;;  %v654_v59 = vsel %vm246_vm4, %v649_v52, %v651_v51 }
 0x22f   :  { %v643_v17 = vmul.f32 %v634_v22, %v5877_v6  ;;  %v640_v53 = vmul.f32 %v639_v16, %v5873_v63  ;;  %v664_v13 = vmul.f32 %v660_v19, %v5908_v45  ;;  %v619_v52 = vmul.f32 %v618_v33, %v5886_v9 }
 0x230   :  { %v663_v5 = vmul.f32 %v654_v59, %v5915_v48  ;;  %v737_v19 = vpack.c.bf16 %v662_v10, %v6032_v42 }
 0x231   :  { %v629_v18 = vpop.permute.xlu0 %628  ;;  %v668_v41 = vpop.permute.xlu1 %667  ;;  %v735_v40 = vpack.c.bf16 %v643_v17, %v622_v12  ;;  %v739_v17 = vpack.c.bf16 %v664_v13, %v6038_v46 }
 0x232   :  { %v632_v22 = vsel %vm202_vm2, %v627_v14, %v629_v18  ;;  %v633_v4 = vsel %vm202_vm2, %v629_v18, %v631_v24  ;;  %v661_v14 = vmul.f32 %v652_v11, %v5905_v43  ;;  %v732_v24 = vpack.c.bf16 %v640_v53, %v619_v52 }
 0x233   :  { %v641_v39 = vmul.f32 %v632_v22, %v5880_v7  ;;  %v642_v50 = vmul.f32 %v633_v4, %v5883_v8  ;;  %811 = vmatprep.subr.bf16.mxu1 %v735_v40  ;;  %v673_v15 = vsel %vm291_vm6, %v6083_v54, %v668_v41  ;;  %v674_v33 = vsel %vm291_vm6, %v668_v41, %v6085_v58 }
 0x234   :  { %v738_v55 = vpack.c.bf16 %v663_v5, %v6014_v34  ;;  %v736_v11 = vpack.c.bf16 %v661_v14, %v6008_v3  ;;  %v682_v40 = vmul.f32 %v673_v15, %v5962_v38  ;;  %v683_v53 = vmul.f32 %v674_v33, %v5938_v2 }
 0x235   :  { %v734_v51 = vpack.c.bf16 %v642_v50, %v621_v62  ;;  %v691_v44 = vpop.permute.xlu0 %690  ;;  %v672_v12 = vpop.permute.xlu1 %671  ;;  %v733_v16 = vpack.c.bf16 %v641_v39, %v620_v30 }
 0x236   :  { %v675_v4 = vsel %vm291_vm6, %v6085_v58, %v672_v12  ;;  %v681_v62 = vsel %vm291_vm6, %v672_v12, %v6083_v54 }
 0x237   :  { %770 = vmatprep.subr.bf16.mxu0 %v733_v16  ;;  %812 = vmatpush1.bf16.msra.mxu1 %v734_v51  ;;  %v684_v51 = vmul.f32 %v675_v4, %v5942_v26  ;;  %v685_v16 = vmul.f32 %v681_v62, %v5935_v0  ;;  %v554_v4 = vld [vmem:[%s7815_s1 + $0xc] sm:$0xf] }
 0x238   :  { %771 = vmatpush1.bf16.msra.mxu0 %v732_v24  ;;  %813 = vmatprep.subr.bf16.mxu1 %v739_v17 }
 0x239   :  { %772 = vmatprep.subr.bf16.mxu0 %v737_v19  ;;  %v689_v30 = vpop.permute.xlu1 %688  ;;  %v708_v13 = vpop.permute.xlu0 %707 }
 0x23a   :  { %v694_v59 = vsel %vm336_vm5, %v6087_v60, %v689_v30  ;;  %v695_v18 = vsel %vm336_vm5, %v689_v30, %v691_v44 }
 0x23b   :  { %v703_v41 = vmul.f32 %v694_v59, %v5946_v32  ;;  %v704_v22 = vmul.f32 %v695_v18, %v5956_v36  ;;  %814 = vmatpush1.bf16.msra.mxu1 %v738_v55  ;;  %v7960_v18 = vld [vmem:[#allocation33_spill] sm:$0xff] }
 0x23c   :  { %773 = vmatpush1.bf16.msra.mxu0 %v736_v11 }
 0x23d   :  { %v740_v10 = vpack.c.bf16 %v703_v41, %v682_v40  ;;  %v693_v39 = vpop.permute.xlu1 %692  ;;  %v741_v50 = vpack.c.bf16 %v704_v22, %v683_v53  ;;  %v712_v54 = vpop.permute.xlu0 %711  ;;  %v7961_v53 = vld [vmem:[#allocation31_spill] sm:$0xff] }
 0x23e   :  { %v696_v52 = vsel %vm336_vm5, %v691_v44, %v693_v39  ;;  %v702_v5 = vsel %vm336_vm5, %v693_v39, %v6087_v60  ;;  %v7962_v39 = vmov 0  }
 0x23f   :  { %v705_v14 = vmul.f32 %v696_v52, %v5959_v37  ;;  %v706_v58 = vmul.f32 %v702_v5, %v5953_v35  ;;  %774 = vmatprep.subr.bf16.mxu0 %v741_v50 }
 0x240   :  { %775 = vmatpush1.bf16.msra.mxu0 %v740_v10 }
 0x241   :  { %v742_v12 = vpack.c.bf16 %v705_v14, %v684_v51  ;;  %v710_v24 = vpop.permute.xlu1 %709  ;;  %v743_v17 = vpack.c.bf16 %v706_v58, %v685_v16 }
 0x242   :  { %v715_v19 = vsel %vm381_vm7, %v708_v13, %v710_v24  ;;  %v716_v44 = vsel %vm381_vm7, %v710_v24, %v712_v54 }
 0x243   :  { %v724_v60 = vmul.f32 %v715_v19, %v5969_v49  ;;  %v725_v15 = vmul.f32 %v716_v44, %v5985_v1  ;;  %815 = vmatprep.subr.bf16.mxu1 %v743_v17 }
 0x244   :  { %816 = vmatpush1.bf16.msra.mxu1 %v742_v12 }
 0x245   :  { %v744_v33 = vpack.c.bf16 %v724_v60, %v724_v60  ;;  %v745_v55 = vpack.c.bf16 %v725_v15, %v725_v15  ;;  %v714_v30 = vpop.permute.xlu1 %713 }
 0x246   :  { %v717_v11 = vsel %vm381_vm7, %v712_v54, %v714_v30  ;;  %v723_v59 = vsel %vm381_vm7, %v714_v30, %v708_v13 }
 0x247   :  { %v726_v40 = vmul.f32 %v717_v11, %v7960_v18  ;;  %v727_v41 = vmul.f32 %v723_v59, %v7961_v53  ;;  %4818 = vmatprep.subr.msk.bf16.mxu0 %vm447_vm8, %v745_v55  ;;  %v757_v22 = vsel %vm447_vm8, %v744_v33, 0 }
 0x248   :  { %777 = vmatpush1.bf16.msra.mxu0 %v757_v22 }
 0x249   :  { %v746_v62 = vpack.c.bf16 %v726_v40, %v726_v40  ;;  %v747_v10 = vpack.c.bf16 %v727_v41, %v727_v41  ;;  %v863_v41 = vld [vmem:[%s7816_s2 + $0x10] sm:$0xff] }
 0x24b   :  { %4819 = vmatmul.mubr.msk.bf16.vlgmr.msra.gmra.mrb[4].mxu0 %vm443_vm9, %v554_v4  ;;  %4820 = vmatprep.subr.msk.bf16.mxu1 %vm447_vm8, %v747_v10  ;;  %v763_v13 = vsel %vm447_vm8, %v746_v62, 0 }
 0x24c   :  { %818 = vmatpush1.bf16.msra.mxu1 %v763_v13  ;;  %1108 = vmatprep.mubr.bf16.mxu0 %v7962_v39 }
 0x24e   :  { %v751_v50 = vpop.permute.xlu0 %750 }
 0x24f   :  { %4821 = vmatmul.mubr.msk.bf16.vlgmr.msra.gmra.mrb[4].mxu1 %vm443_vm9, %v554_v4 }
 0x250   :  { %1149 = vmatprep.mubr.bf16.mxu1 %v7962_v39 }
 0x31e   :  { %v802_v52 = vpop.f32.mrb[4].mxu0 }
 0x31f   :  { %v803_v5 = vadd.f32 %v802_v52, %v751_v50  ;;  %v804_v51 = vpop.f32.mrb[5].mxu0 }
 0x320   :  { %v806_v16 = vpop.f32.mrb[6].mxu0  ;;  %v805_v55 = vadd.f32 %v804_v51, %v751_v50 }
 0x321   :  { %vm850_vm14 = vcmp.ge.f32.partialorder %v803_v5, 0.0  ;;  %v854_v14 = vmul.f32 0.01, %v803_v5  ;;  %v807_v58 = vpop.f32.mrb[7].mxu0 }
 0x322   :  { %v843_v54 = vpop.f32.mrb[4].mxu1  ;;  %v855_v11 = vmul.f32 0.01, %v805_v55  ;;  %vm851_vm11 = vcmp.ge.f32.partialorder %v805_v55, 0.0 }
 0x323   :  { %v6174_v12 = vsel %vm850_vm14, %v803_v5, %v854_v14  ;;  %v844_v24 = vadd.f32 %v843_v54, %v751_v50  ;;  %v845_v17 = vpop.f32.mrb[5].mxu1 }
 0x324   :  { %952 = vrot.lane.b32.xlu1 %v6174_v12, %s5608_s24  ;;  %871 = vrot.lane.b32.xlu0 %v6174_v12, %s5604_s17  ;;  %v847_v19 = vpop.f32.mrb[6].mxu1  ;;  %v846_v33 = vadd.f32 %v845_v17, %v751_v50  ;;  %v6204_v40 = vsel %vm851_vm11, %v805_v55, %v855_v11 }
 0x325   :  { %vm852_vm15 = vcmp.ge.f32.partialorder %v844_v24, 0.0  ;;  %v856_v44 = vmul.f32 0.01, %v844_v24  ;;  %v848_v60 = vpop.f32.mrb[7].mxu1 }
 0x326   :  { %v857_v30 = vmul.f32 0.01, %v846_v33  ;;  %vm853_vm10 = vcmp.ge.f32.partialorder %v846_v33, 0.0 }
 0x327   :  { %v6180_v15 = vsel %vm852_vm15, %v844_v24, %v856_v44 }
 0x328   :  { %956 = vrot.lane.b32.xlu1 %v6180_v15, %s5608_s24  ;;  %875 = vrot.lane.b32.xlu0 %v6180_v15, %s5604_s17  ;;  %v6198_v59 = vsel %vm853_vm10, %v846_v33, %v857_v30  ;;  %vm5614_vm10 = vmmov 0  }
 0x32c   :  { %973 = vrot.lane.b32.xlu1 %v6174_v12, %s7891_s25  ;;  %892 = vrot.lane.b32.xlu0 %v6174_v12, %s7889_s22 }
 0x330   :  { %977 = vrot.lane.b32.xlu1 %v6180_v15, %s7891_s25  ;;  %896 = vrot.lane.b32.xlu0 %v6180_v15, %s7889_s22 }
 0x334   :  { %994 = vrot.lane.b32.xlu1 %v6174_v12, %s7885_s26  ;;  %913 = vrot.lane.b32.xlu0 %v6174_v12, %s7887_s0 }
 0x338   :  { %865 = vrot.lane.b32.xlu1 %v6198_v59, %s5604_s17  ;;  %917 = vrot.lane.b32.xlu0 %v6180_v15, %s7887_s0 }
 0x33c   :  { %873 = vrot.lane.b32.xlu1 %v6204_v40, %s5604_s17  ;;  %934 = vrot.lane.b32.xlu0 %v6174_v12, %s5607_s23 }
 0x340   :  { %889 = vrot.lane.b32.xlu1 %v6198_v59, %s7889_s22  ;;  %938 = vrot.lane.b32.xlu0 %v6180_v15, %s5607_s23 }
 0x344   :  { %894 = vrot.lane.b32.xlu1 %v6204_v40, %s7889_s22  ;;  %954 = vrot.lane.b32.xlu0 %v6204_v40, %s5608_s24 }
 0x348   :  { %910 = vrot.lane.b32.xlu1 %v6198_v59, %s7887_s0  ;;  %958 = vrot.lane.b32.xlu0 %v6198_v59, %s5608_s24 }
 0x34c   :  { %915 = vrot.lane.b32.xlu1 %v6204_v40, %s7887_s0  ;;  %975 = vrot.lane.b32.xlu0 %v6204_v40, %s7891_s25 }
 0x350   :  { %931 = vrot.lane.b32.xlu1 %v6198_v59, %s5607_s23  ;;  %979 = vrot.lane.b32.xlu0 %v6198_v59, %s7891_s25 }
 0x354   :  { %936 = vrot.lane.b32.xlu1 %v6204_v40, %s5607_s23  ;;  %996 = vrot.lane.b32.xlu0 %v6204_v40, %s7885_s26 }
 0x358   :  { %998 = vrot.lane.b32.xlu1 %v6180_v15, %s7885_s26  ;;  %1000 = vrot.lane.b32.xlu0 %v6198_v59, %s7885_s26 }
 0x35c   :  { %1015 = vrot.lane.b32.xlu1 %v6174_v12, %s7883_s27  ;;  %1017 = vrot.lane.b32.xlu0 %v6204_v40, %s7883_s27 }
 0x360   :  { %1019 = vrot.lane.b32.xlu1 %v6180_v15, %s7883_s27  ;;  %1021 = vrot.lane.b32.xlu0 %v6198_v59, %s7883_s27 }
 0x364   :  { %1058 = vperm.xlu1 %5437, %v863_v41  }
 0x396   :  { %v872_v22 = vpop.permute.xlu0 %871  ;;  %v953_v4 = vpop.permute.xlu1 %952 }
 0x39a   :  { %v876_v62 = vpop.permute.xlu0 %875  ;;  %v957_v10 = vpop.permute.xlu1 %956 }
 0x39e   :  { %v893_v13 = vpop.permute.xlu0 %892  ;;  %v6249_v50 = vpop.permute.xlu1 %973 }
 0x3a2   :  { %v897_v52 = vpop.permute.xlu0 %896  ;;  %v6251_v5 = vpop.permute.xlu1 %977 }
 0x3a6   :  { %v914_v51 = vpop.permute.xlu0 %913  ;;  %v6253_v16 = vpop.permute.xlu1 %994 }
 0x3aa   :  { %v918_v14 = vpop.permute.xlu0 %917  ;;  %v866_v58 = vpop.permute.xlu1 %865 }
 0x3ab   :  { %v879_v17 = vsel %vm68_vm0, %v876_v62, %v866_v58  ;;  %v884_v39 = vsel %vm68_vm0, %v866_v58, %v872_v22 }
 0x3ac   :  { %v888_v33 = vmul.f32 %v879_v17, %v5819_v21 }
 0x3ae   :  { %v935_v54 = vpop.permute.xlu0 %934  ;;  %v874_v24 = vpop.permute.xlu1 %873 }
 0x3af   :  { %v877_v11 = vsel %vm68_vm0, %v872_v22, %v874_v24  ;;  %v878_v41 = vsel %vm68_vm0, %v874_v24, %v876_v62  ;;  %v885_v22 = vmul.f32 %v884_v39, %v5841_v31 }
 0x3b0   :  { %v886_v17 = vmul.f32 %v877_v11, %v5816_v20 }
 0x3b2   :  { %v939_v19 = vpop.permute.xlu0 %938  ;;  %v890_v44 = vpop.permute.xlu1 %889 }
 0x3b3   :  { %v900_v60 = vsel %vm112_vm1, %v897_v52, %v890_v44  ;;  %v905_v55 = vsel %vm112_vm1, %v890_v44, %v893_v13  ;;  %v887_v44 = vmul.f32 %v878_v41, %v5834_v28 }
 0x3b4   :  { %v909_v30 = vmul.f32 %v900_v60, %v5831_v27  ;;  %v906_v3 = vmul.f32 %v905_v55, %v5827_v25 }
 0x3b6   :  { %v955_v42 = vpop.permute.xlu0 %954  ;;  %v895_v46 = vpop.permute.xlu1 %894  ;;  %v1039_v34 = vpack.c.bf16 %v909_v30, %v888_v33  ;;  %v1036_v55 = vpack.c.bf16 %v906_v3, %v885_v22 }
 0x3b7   :  { %v898_v18 = vsel %vm112_vm1, %v893_v13, %v895_v46  ;;  %v899_v1 = vsel %vm112_vm1, %v895_v46, %v897_v52  ;;  %v961_v30 = vsel %vm246_vm4, %v955_v42, %v957_v10  ;;  %v960_v39 = vsel %vm246_vm4, %v953_v4, %v955_v42 }
 0x3b8   :  { %v907_v60 = vmul.f32 %v898_v18, %v5823_v23  ;;  %v908_v27 = vmul.f32 %v899_v1, %v5837_v29  ;;  %1117 = vmatprep.subr.bf16.mxu1 %v1039_v34 }
 0x3ba   :  { %v1038_v62 = vpack.c.bf16 %v908_v27, %v887_v44  ;;  %v959_v58 = vpop.permute.xlu0 %958  ;;  %v911_v24 = vpop.permute.xlu1 %910  ;;  %v1037_v33 = vpack.c.bf16 %v907_v60, %v886_v17  ;;  %v970_v17 = vmul.f32 %v961_v30, %v5912_v47 }
 0x3bb   :  { %v921_v52 = vsel %vm157_vm3, %v918_v14, %v911_v24  ;;  %v968_v18 = vsel %vm246_vm4, %v959_v58, %v953_v4  ;;  %v962_v42 = vsel %vm246_vm4, %v957_v10, %v959_v58  ;;  %v926_v4 = vsel %vm157_vm3, %v911_v24, %v914_v51 }
 0x3bc   :  { %1076 = vmatprep.subr.bf16.mxu0 %v1037_v33  ;;  %1118 = vmatpush1.bf16.msra.mxu1 %v1038_v62  ;;  %v930_v11 = vmul.f32 %v921_v52, %v5862_v56  ;;  %v972_v44 = vmul.f32 %v968_v18, %v5908_v45  ;;  %v969_v62 = vmul.f32 %v960_v39, %v5905_v43 }
 0x3bd   :  { %1077 = vmatpush1.bf16.msra.mxu0 %v1036_v55  ;;  %v971_v58 = vmul.f32 %v962_v42, %v5915_v48  ;;  %v927_v24 = vmul.f32 %v926_v4, %v5886_v9 }
 0x3be   :  { %v976_v46 = vpop.permute.xlu0 %975  ;;  %v916_v13 = vpop.permute.xlu1 %915  ;;  %v1047_v39 = vpack.c.bf16 %v972_v44, %v6198_v59 }
 0x3bf   :  { %v919_v60 = vsel %vm157_vm3, %v914_v51, %v916_v13  ;;  %v920_v22 = vsel %vm157_vm3, %v916_v13, %v918_v14  ;;  %v1046_v44 = vpack.c.bf16 %v971_v58, %v6180_v15 }
 0x3c0   :  { %v928_v14 = vmul.f32 %v919_v60, %v5865_v57  ;;  %v929_v13 = vmul.f32 %v920_v22, %v5869_v61 }
 0x3c2   :  { %v980_v1 = vpop.permute.xlu0 %979  ;;  %v932_v34 = vpop.permute.xlu1 %931 }
 0x3c3   :  { %v942_v27 = vsel %vm202_vm2, %v939_v19, %v932_v34  ;;  %v947_v3 = vsel %vm202_vm2, %v932_v34, %v935_v54  ;;  %v989_v34 = vsel %vm291_vm6, %v980_v1, %v6249_v50 }
 0x3c4   :  { %v951_v41 = vmul.f32 %v942_v27, %v5877_v6  ;;  %v948_v30 = vmul.f32 %v947_v3, %v5873_v63 }
 0x3c6   :  { %v997_v33 = vpop.permute.xlu0 %996  ;;  %v937_v55 = vpop.permute.xlu1 %936  ;;  %v1043_v52 = vpack.c.bf16 %v951_v41, %v930_v11  ;;  %v1045_v11 = vpack.c.bf16 %v970_v17, %v6204_v40 }
 0x3c7   :  { %v940_v18 = vsel %vm202_vm2, %v935_v54, %v937_v55  ;;  %v941_v27 = vsel %vm202_vm2, %v937_v55, %v939_v19  ;;  %v982_v54 = vsel %vm291_vm6, %v976_v46, %v6251_v5  ;;  %v993_v19 = vmul.f32 %v989_v34, %v5935_v0 }
 0x3c8   :  { %v949_v10 = vmul.f32 %v940_v18, %v5880_v7  ;;  %v950_v51 = vmul.f32 %v941_v27, %v5883_v8  ;;  %1119 = vmatprep.subr.bf16.mxu1 %v1043_v52  ;;  %v1040_v55 = vpack.c.bf16 %v948_v30, %v927_v24  ;;  %v1002_v59 = vsel %vm336_vm5, %v6253_v16, %v997_v33 }
 0x3c9   :  { %v983_v34 = vsel %vm291_vm6, %v6251_v5, %v980_v1  ;;  %v981_v30 = vsel %vm291_vm6, %v6249_v50, %v976_v46  ;;  %v991_v18 = vmul.f32 %v982_v54, %v5938_v2  ;;  %v1011_v15 = vmul.f32 %v1002_v59, %v5946_v32 }
 0x3ca   :  { %v1042_v3 = vpack.c.bf16 %v950_v51, %v929_v13  ;;  %v1001_v41 = vpop.permute.xlu0 %1000  ;;  %v999_v60 = vpop.permute.xlu1 %998  ;;  %v1041_v22 = vpack.c.bf16 %v949_v10, %v928_v14  ;;  %v1044_v13 = vpack.c.bf16 %v969_v62, %v6174_v12  ;;  %v992_v5 = vmul.f32 %v983_v34, %v5942_v26  ;;  %v5440_v34 = vld [vmem:[%s7818_s6 + $0x80] sm:$0xff]  }
 0x3cb   :  { %v1010_v52 = vsel %vm336_vm5, %v1001_v41, %v6253_v16  ;;  %v1003_v42 = vsel %vm336_vm5, %v997_v33, %v999_v60  ;;  %v1004_v4 = vsel %vm336_vm5, %v999_v60, %v1001_v41  ;;  %v990_v46 = vmul.f32 %v981_v30, %v5962_v38  ;;  %v7964_v60 = vld [vmem:[#allocation33_spill] sm:$0xff]  ;;  %v5441_v30 = vld [vmem:[%s7818_s6] sm:$0xff]  }
 0x3cc   :  { %v1014_v40 = vmul.f32 %v1010_v52, %v5953_v35  ;;  %v1012_v17 = vmul.f32 %v1003_v42, %v5956_v36  ;;  %1078 = vmatprep.subr.bf16.mxu0 %v1041_v22  ;;  %1120 = vmatpush1.bf16.msra.mxu1 %v1042_v3  ;;  %v1013_v16 = vmul.f32 %v1004_v4, %v5959_v37  ;;  %v7963_v3 = vld [vmem:[#allocation32_spill] sm:$0xff] }
 0x3cd   :  { %1079 = vmatpush1.bf16.msra.mxu0 %v1040_v55  ;;  %1121 = vmatprep.subr.bf16.mxu1 %v1047_v39  ;;  %v1048_v39 = vpack.c.bf16 %v1011_v15, %v990_v46  ;;  %v5448_v15 = vld [vmem:[%s7818_s6 + $0x90] sm:$0xff]   ;;  %v5452_v46 = vld [vmem:[%s7818_s6 + $0x98] sm:$0xff]  }
 0x3ce   :  { %v1018_v33 = vpop.permute.xlu0 %1017  ;;  %1080 = vmatprep.subr.bf16.mxu0 %v1045_v11  ;;  %v1016_v27 = vpop.permute.xlu1 %1015  ;;  %v1051_v14 = vpack.c.bf16 %v1014_v40, %v993_v19  ;;  %v1049_v50 = vpack.c.bf16 %v1012_v17, %v991_v18  ;;  %v1050_v51 = vpack.c.bf16 %v1013_v16, %v992_v5  ;;  %v862_v40 = vld [vmem:[%s7815_s1 + $0x18] sm:$0xf]  ;;  %v5438_v17 = vld [vmem:[%s7818_s6 + $0xc0] sm:$0xff]   ;;  %v5442_v18 = vld [vmem:[%s7818_s6 + $0xc8] sm:$0xff]  }
 0x3cf   :  { %v1023_v10 = vsel %vm381_vm7, %v1016_v27, %v1018_v33  ;;  %v5443_v16 = vld [vmem:[%s7818_s6 + $0x48] sm:$0xff]  }
 0x3d0   :  { %v1032_v1 = vmul.f32 %v1023_v10, %v5969_v49  ;;  %1122 = vmatpush1.bf16.msra.mxu1 %v1046_v44  ;;  %v5439_v44 = vld [vmem:[%s7818_s6 + $0x40] sm:$0xff]   ;;  %v5449_v10 = vld [vmem:[%s7818_s6 + $0x10] sm:$0xff]  }
 0x3d1   :  { %1081 = vmatpush1.bf16.msra.mxu0 %v1044_v13  ;;  %1123 = vmatprep.subr.bf16.mxu1 %v1051_v14  ;;  %v5446_v14 = vld [vmem:[%s7818_s6 + $0xd0] sm:$0xff]  }
 0x3d2   :  { %v1022_v58 = vpop.permute.xlu0 %1021  ;;  %1082 = vmatprep.subr.bf16.mxu0 %v1049_v50  ;;  %v1020_v24 = vpop.permute.xlu1 %1019  ;;  %v1052_v54 = vpack.c.bf16 %v1032_v1, %v1032_v1  ;;  %v5447_v13 = vld [vmem:[%s7818_s6 + $0x50] sm:$0xff]   ;;  %v5450_v1 = vld [vmem:[%s7818_s6 + $0xd8] sm:$0xff]  }
 0x3d3   :  { %v1031_v12 = vsel %vm381_vm7, %v1022_v58, %v1016_v27  ;;  %v1024_v62 = vsel %vm381_vm7, %v1018_v33, %v1020_v24  ;;  %v1025_v11 = vsel %vm381_vm7, %v1020_v24, %v1022_v58  ;;  %v5444_v33 = vld [vmem:[%s7818_s6 + $0x88] sm:$0xff]   ;;  %v5451_v50 = vld [vmem:[%s7818_s6 + $0x58] sm:$0xff]  }
 0x3d4   :  { %v1035_v19 = vmul.f32 %v1031_v12, %v7961_v53  ;;  %v1033_v41 = vmul.f32 %v1024_v62, %v7963_v3  ;;  %v1034_v22 = vmul.f32 %v1025_v11, %v7964_v60  ;;  %1124 = vmatpush1.bf16.msra.mxu1 %v1050_v51  ;;  %v1065_v4 = vsel %vm447_vm8, %v1052_v54, 0  ;;  %v5445_v27 = vld [vmem:[%s7818_s6 + $0x8] sm:$0xff]   ;;  %v5453_v51 = vld [vmem:[%s7818_s6 + $0x18] sm:$0xff]  }
 0x3d5   :  { %1083 = vmatpush1.bf16.msra.mxu0 %v1048_v39 }
 0x3d6   :  { %v1055_v55 = vpack.c.bf16 %v1035_v19, %v1035_v19  ;;  %v1053_v52 = vpack.c.bf16 %v1033_v41, %v1033_v41  ;;  %v1054_v42 = vpack.c.bf16 %v1034_v22, %v1034_v22  ;;  %v7965_v41 = vld [vmem:[#allocation34_spill] sm:$0xff] }
 0x3d8   :  { %4822 = vmatprep.subr.msk.bf16.mxu0 %vm447_vm8, %v1053_v52  ;;  %4824 = vmatprep.subr.msk.bf16.mxu1 %vm447_vm8, %v1055_v55  ;;  %v1071_v59 = vsel %vm447_vm8, %v1054_v42, 0  ;;  %v7966_v55 = vld [vmem:[#allocation35_spill] sm:$0xff] }
 0x3d9   :  { %1085 = vmatpush1.bf16.msra.mxu0 %v1065_v4  ;;  %1126 = vmatpush1.bf16.msra.mxu1 %v1071_v59 }
 0x3da   :  { %5052 = vmatprep.subr.bf16.mxu1 %v5438_v17  ;;  %5006 = vmatprep.subr.bf16.mxu0 %v5439_v44  ;;  %v5455_v17 = vld [vmem:[%s7818_s6 + $0x60] sm:$0xff]  }
 0x3db   :  { %v5456_v44 = vld [vmem:[%s7818_s6 + $0xa0] sm:$0xff]  }
 0x3dc   :  { %4823 = vmatmul.mubr.msk.bf16.vlgmr.msra.gmra.mrb[8].mxu0 %vm443_vm9, %v862_v40  ;;  %4825 = vmatmul.mubr.msk.bf16.vlgmr.msra.gmra.mrb[8].mxu1 %vm443_vm9, %v862_v40  ;;  %v5454_v40 = vld [vmem:[%s7818_s6 + $0xe0] sm:$0xff]  }
 0x3dd   :  { %5053 = vmatpush3.bf16.msra.mxu1 %v5440_v34  ;;  %5007 = vmatpush3.bf16.msra.mxu0 %v5441_v30 }
 0x3de   :  { %5054 = vmatprep.subr.bf16.mxu1 %v5442_v18  ;;  %5008 = vmatprep.subr.bf16.mxu0 %v5443_v16 }
 0x3e1   :  { %5055 = vmatpush3.bf16.msra.mxu1 %v5444_v33  ;;  %5009 = vmatpush3.bf16.msra.mxu0 %v5445_v27  ;;  %v7968_v33 = vld [vmem:[#allocation37_spill] sm:$0xff] }
 0x3e2   :  { %5056 = vmatprep.subr.bf16.mxu1 %v5446_v14  ;;  %5010 = vmatprep.subr.bf16.mxu0 %v5447_v13  ;;  %v5457_v14 = vld [vmem:[%s7818_s6 + $0x20] sm:$0xff]   ;;  %v5458_v13 = vld [vmem:[%s7818_s6 + $0xe8] sm:$0xff]  }
 0x3e3   :  { %v1059_v5 = vpop.permute.xlu1 %1058 }
 0x3e5   :  { %5057 = vmatpush3.bf16.msra.mxu1 %v5448_v15  ;;  %5011 = vmatpush3.bf16.msra.mxu0 %v5449_v10  ;;  %v5459_v15 = vld [vmem:[%s7818_s6 + $0x68] sm:$0xff]  }
 0x3e6   :  { %5058 = vmatprep.subr.bf16.mxu1 %v5450_v1  ;;  %5012 = vmatprep.subr.bf16.mxu0 %v5451_v50  ;;  %v5460_v10 = vld [vmem:[%s7818_s6 + $0xa8] sm:$0xff]   ;;  %v7970_v50 = vld [vmem:[#allocation36_spill] sm:$0xff] }
 0x3e9   :  { %5059 = vmatpush3.bf16.msra.mxu1 %v5452_v46  ;;  %5013 = vmatpush3.bf16.msra.mxu0 %v5453_v51 }
 0x3ea   :  { %5060 = vmatprep.subr.bf16.mxu1 %v5454_v40  ;;  %5014 = vmatprep.subr.bf16.mxu0 %v5455_v17 }
 0x3ed   :  { %5061 = vmatpush3.bf16.msra.mxu1 %v5456_v44  ;;  %5015 = vmatpush3.bf16.msra.mxu0 %v5457_v14 }
 0x3ee   :  { %5062 = vmatprep.subr.bf16.mxu1 %v5458_v13  ;;  %5016 = vmatprep.subr.bf16.mxu0 %v5459_v15 }
 0x3f1   :  { %5063 = vmatpush3.bf16.msra.mxu1 %v5460_v10 }
 0x4af   :  { %v1110_v58 = vpop.f32.mrb[8].mxu0  ;;  %v1151_v24 = vpop.f32.mrb[8].mxu1 }
 0x4b0   :  { %v1111_v39 = vadd.f32 %v1110_v58, %v1059_v5  ;;  %v1152_v12 = vadd.f32 %v1151_v24, %v1059_v5  ;;  %v1112_v62 = vpop.f32.mrb[9].mxu0  ;;  %v1153_v11 = vpop.f32.mrb[9].mxu1  ;;  %v5462_v58 = vld [vmem:[%s7818_s6 + $0xf0] sm:$0xff]  }
 0x4b1   :  { %v1114_v54 = vpop.f32.mrb[10].mxu0  ;;  %v1155_v19 = vpop.f32.mrb[10].mxu1  ;;  %v1154_v42 = vadd.f32 %v1153_v11, %v1059_v5  ;;  %v1113_v16 = vadd.f32 %v1112_v62, %v1059_v5  ;;  %v5461_v5 = vld [vmem:[%s7818_s6 + $0x28] sm:$0xff]   ;;  %v5463_v24 = vld [vmem:[%s7818_s6 + $0x70] sm:$0xff]   ;;  %5064 = vmatprep.subr.bf16.mxu1 %v5462_v58 }
 0x4b2   :  { %v1158_v22 = vadd.f32 %v1111_v39, %v7965_v41  ;;  %v1160_v52 = vadd.f32 %v1152_v12, %v7966_v55  ;;  %v1115_v4 = vpop.f32.mrb[11].mxu0  ;;  %v1156_v59 = vpop.f32.mrb[11].mxu1  ;;  %5017 = vmatpush3.bf16.msra.mxu0 %v5461_v5  ;;  %v5464_v39 = vld [vmem:[%s7818_s6 + $0xb0] sm:$0xff]   ;;  %v5466_v54 = vld [vmem:[%s7818_s6 + $0xf8] sm:$0xff]  }
 0x4b3   :  { %v1161_v27 = vadd.f32 %v1154_v42, %v7968_v33  ;;  %v1159_v46 = vadd.f32 %v1113_v16, %v7970_v50  ;;  %v5465_v12 = vld [vmem:[%s7818_s6 + $0x30] sm:$0xff]   ;;  %5018 = vmatprep.subr.bf16.mxu0 %v5463_v24  ;;  %5065 = vmatpush3.bf16.msra.mxu1 %v5464_v39  ;;  %v5467_v19 = vld [vmem:[%s7818_s6 + $0x78] sm:$0xff]   ;;  %v1177_v4 = vld [vmem:[%s7816_s2 + $0x20] sm:$0xff] }
 0x4b4   :  { %vm1162_vm12 = vcmp.ge.f32.partialorder %v1158_v22, 0.0  ;;  %v1166_v34 = vmul.f32 0.01, %v1158_v22  ;;  %v1168_v30 = vmul.f32 0.01, %v1160_v52  ;;  %vm1164_vm13 = vcmp.ge.f32.partialorder %v1160_v52, 0.0  ;;  %5066 = vmatprep.subr.bf16.mxu1 %v5466_v54 }
 0x4b5   :  { %v1169_v51 = vmul.f32 0.01, %v1161_v27  ;;  %vm1165_vm14 = vcmp.ge.f32.partialorder %v1161_v27, 0.0  ;;  %v1167_v62 = vmul.f32 0.01, %v1159_v46  ;;  %vm1163_vm15 = vcmp.ge.f32.partialorder %v1159_v46, 0.0 }
 0x4b6   :  { %v6397_v18 = vsel %vm1162_vm12, %v1158_v22, %v1166_v34  ;;  %v6419_v1 = vsel %vm1164_vm13, %v1160_v52, %v1168_v30  ;;  %5019 = vmatpush3.bf16.msra.mxu0 %v5465_v12  ;;  %v5468_v41 = vld [vmem:[%s7818_s6 + $0xb8] sm:$0xff]   ;;  %v7973_v52 = vmov 0   ;;  %v7974_v50 = vld [vmem:[#allocation8_spill] sm:$0xff]  ;;  %vm1868_vm12 = vcmask 64512  }
 0x4b7   :  { %7967 = vst [vmem:[#allocation34_spill] sm:$0xff] %v6397_v18  ;;  %1266 = vrot.lane.b32.xlu0 %v6397_v18, %s5608_s24  ;;  %1185 = vrot.lane.b32.xlu1 %v6397_v18, %s5604_s17  ;;  %7969 = vst [vmem:[#allocation35_spill] sm:$0xff] %v6419_v1  ;;  %v6438_v11 = vsel %vm1165_vm14, %v1161_v27, %v1169_v51  ;;  %v5469_v22 = vld [vmem:[%s7818_s6 + $0x38] sm:$0xff]   ;;  %v6456_v55 = vsel %vm1163_vm15, %v1159_v46, %v1167_v62  ;;  %s5629_s6 = smov 3  }
 0x4b8   :  { %7971 = vst [vmem:[#allocation37_spill] sm:$0xff] %v6438_v11  ;;  %7972 = vst [vmem:[#allocation36_spill] sm:$0xff] %v6456_v55  ;;  %5020 = vmatprep.subr.bf16.mxu0 %v5467_v19  ;;  %5067 = vmatpush3.bf16.msra.mxu1 %v5468_v41  ;;  %v1176_v42 = vld [vmem:[%s7816_s2 + $0x18] sm:$0xff] }
 0x4b9   :  { %1985 = vmatprep.subr.bf16.mxu1 %v7973_v52 }
 0x4ba   :  { %5021 = vmatpush3.bf16.msra.mxu0 %v5469_v22 }
 0x4bb   :  { %1270 = vrot.lane.b32.xlu0 %v6419_v1, %s5608_s24  ;;  %1189 = vrot.lane.b32.xlu1 %v6419_v1, %s5604_s17 }
 0x4bf   :  { %1179 = vrot.lane.b32.xlu0 %v6438_v11, %s5604_s17  ;;  %1206 = vrot.lane.b32.xlu1 %v6397_v18, %s7889_s22 }
 0x4c3   :  { %1187 = vrot.lane.b32.xlu0 %v6456_v55, %s5604_s17  ;;  %1210 = vrot.lane.b32.xlu1 %v6419_v1, %s7889_s22 }
 0x4c7   :  { %1203 = vrot.lane.b32.xlu0 %v6438_v11, %s7889_s22  ;;  %1227 = vrot.lane.b32.xlu1 %v6397_v18, %s7887_s0 }
 0x4cb   :  { %1208 = vrot.lane.b32.xlu0 %v6456_v55, %s7889_s22  ;;  %1231 = vrot.lane.b32.xlu1 %v6419_v1, %s7887_s0  ;;  %s5622_s22 = smov 5  }
 0x4cf   :  { %1224 = vrot.lane.b32.xlu0 %v6438_v11, %s7887_s0  ;;  %1248 = vrot.lane.b32.xlu1 %v6397_v18, %s5607_s23 }
 0x4d3   :  { %1229 = vrot.lane.b32.xlu0 %v6456_v55, %s7887_s0  ;;  %1252 = vrot.lane.b32.xlu1 %v6419_v1, %s5607_s23 }
 0x4d7   :  { %1245 = vrot.lane.b32.xlu0 %v6438_v11, %s5607_s23  ;;  %1268 = vrot.lane.b32.xlu1 %v6456_v55, %s5608_s24 }
 0x4db   :  { %1250 = vrot.lane.b32.xlu0 %v6456_v55, %s5607_s23  ;;  %1272 = vrot.lane.b32.xlu1 %v6438_v11, %s5608_s24 }
 0x4df   :  { %1287 = vrot.lane.b32.xlu0 %v6397_v18, %s7891_s25  ;;  %1289 = vrot.lane.b32.xlu1 %v6456_v55, %s7891_s25 }
 0x4e3   :  { %1291 = vrot.lane.b32.xlu0 %v6419_v1, %s7891_s25  ;;  %1293 = vrot.lane.b32.xlu1 %v6438_v11, %s7891_s25  ;;  %s5623_s25 = smov 31  }
 0x4e7   :  { %1308 = vrot.lane.b32.xlu0 %v6397_v18, %s7885_s26  ;;  %1310 = vrot.lane.b32.xlu1 %v6456_v55, %s7885_s26 }
 0x4eb   :  { %1312 = vrot.lane.b32.xlu0 %v6419_v1, %s7885_s26  ;;  %1314 = vrot.lane.b32.xlu1 %v6438_v11, %s7885_s26  ;;  %s5621_s26 = smov 101  }
 0x4ef   :  { %1329 = vrot.lane.b32.xlu0 %v6397_v18, %s7883_s27  ;;  %1331 = vrot.lane.b32.xlu1 %v6456_v55, %s7883_s27 }
 0x4f3   :  { %1333 = vrot.lane.b32.xlu0 %v6419_v1, %s7883_s27  ;;  %1335 = vrot.lane.b32.xlu1 %v6438_v11, %s7883_s27  ;;  %s5624_s27 = smov 100  }
 0x4f7   :  { %1777 = vperm.xlu0 %5436, %v1176_v42   ;;  %1782 = vperm.xlu1 %5437, %v1177_v4  }
 0x529   :  { %v6517_v59 = vpop.permute.xlu0 %1266  ;;  %v1186_v40 = vpop.permute.xlu1 %1185 }
 0x52d   :  { %v6519_v17 = vpop.permute.xlu0 %1270  ;;  %v1190_v44 = vpop.permute.xlu1 %1189 }
 0x531   :  { %v1180_v34 = vpop.permute.xlu0 %1179  ;;  %v1207_v30 = vpop.permute.xlu1 %1206 }
 0x532   :  { %v1193_v27 = vsel %vm68_vm0, %v1190_v44, %v1180_v34  ;;  %v1198_v24 = vsel %vm68_vm0, %v1180_v34, %v1186_v40 }
 0x533   :  { %v6524_v10 = vmul.f32 %v1193_v27, %v5819_v21 }
 0x535   :  { %v1188_v16 = vpop.permute.xlu0 %1187  ;;  %v1211_v33 = vpop.permute.xlu1 %1210 }
 0x536   :  { %v1191_v51 = vsel %vm68_vm0, %v1186_v40, %v1188_v16  ;;  %v1192_v58 = vsel %vm68_vm0, %v1188_v16, %v1190_v44  ;;  %v6553_v44 = vmul.f32 %v1198_v24, %v5841_v31 }
 0x537   :  { %v6541_v22 = vmul.f32 %v1191_v51, %v5816_v20  ;;  %v6544_v42 = vmul.f32 %v1192_v58, %v5834_v28 }
 0x539   :  { %v1204_v14 = vpop.permute.xlu0 %1203  ;;  %v1228_v13 = vpop.permute.xlu1 %1227 }
 0x53a   :  { %v1214_v15 = vsel %vm112_vm1, %v1211_v33, %v1204_v14  ;;  %v1219_v5 = vsel %vm112_vm1, %v1204_v14, %v1207_v30 }
 0x53b   :  { %v6528_v46 = vmul.f32 %v1214_v15, %v7974_v50  ;;  %v6536_v54 = vmul.f32 %v1219_v5, %v5827_v25 }
 0x53d   :  { %7975 = vst [vmem:[#allocation38_spill] sm:$0xff] %v6528_v46  ;;  %v1209_v39 = vpop.permute.xlu0 %1208  ;;  %v1232_v12 = vpop.permute.xlu1 %1231  ;;  %v1353_v62 = vpack.c.bf16 %v6528_v46, %v6524_v10  ;;  %7976 = vst [vmem:[#allocation39_spill] sm:$0xff] %v6536_v54  ;;  %v1350_v27 = vpack.c.bf16 %v6536_v54, %v6553_v44 }
 0x53e   :  { %v1212_v19 = vsel %vm112_vm1, %v1207_v30, %v1209_v39  ;;  %v1213_v41 = vsel %vm112_vm1, %v1209_v39, %v1211_v33 }
 0x53f   :  { %v6547_v4 = vmul.f32 %v1212_v19, %v5823_v23  ;;  %v6550_v40 = vmul.f32 %v1213_v41, %v5837_v29  ;;  %1730 = vmatprep.mubr.bf16.mxu1 %v1353_v62 }
 0x541   :  { %7977 = vst [vmem:[#allocation40_spill] sm:$0xff] %v6547_v4  ;;  %7978 = vst [vmem:[#allocation41_spill] sm:$0xff] %v6550_v40  ;;  %v1352_v34 = vpack.c.bf16 %v6550_v40, %v6544_v42  ;;  %v1225_v30 = vpop.permute.xlu0 %1224  ;;  %v1249_v16 = vpop.permute.xlu1 %1248  ;;  %v1351_v33 = vpack.c.bf16 %v6547_v4, %v6541_v22 }
 0x542   :  { %v1235_v5 = vsel %vm157_vm3, %v1232_v12, %v1225_v30 }
 0x543   :  { %1658 = vmatprep.mubr.bf16.mxu0 %v1351_v33  ;;  %1731 = vmatmul.mubr.bf16.vlgmr.msra.gmra.mrb[12].mxu1 %v1352_v34  ;;  %v6566_v19 = vmul.f32 %v1235_v5, %v5862_v56 }
 0x544   :  { %1659 = vmatmul.mubr.bf16.vlgmr.msra.gmra.mrb[12].mxu0 %v1350_v27  ;;  %v1240_v27 = vsel %vm157_vm3, %v1225_v30, %v1228_v13 }
 0x545   :  { %v1230_v14 = vpop.permute.xlu0 %1229  ;;  %v1253_v15 = vpop.permute.xlu1 %1252  ;;  %7979 = vst [vmem:[#allocation42_spill] sm:$0xff] %v6566_v19 }
 0x546   :  { %v1233_v24 = vsel %vm157_vm3, %v1228_v13, %v1230_v14  ;;  %v1234_v39 = vsel %vm157_vm3, %v1230_v14, %v1232_v12 }
 0x547   :  { %v6576_v54 = vmul.f32 %v1233_v24, %v5865_v57  ;;  %v6579_v12 = vmul.f32 %v1234_v39, %v5869_v61 }
 0x549   :  { %v1246_v51 = vpop.permute.xlu0 %1245  ;;  %v1269_v58 = vpop.permute.xlu1 %1268  ;;  %7981 = vst [vmem:[#allocation44_spill] sm:$0xff] %v6576_v54  ;;  %7982 = vst [vmem:[#allocation45_spill] sm:$0xff] %v6579_v12 }
 0x54a   :  { %v1256_v62 = vsel %vm202_vm2, %v1253_v15, %v1246_v51  ;;  %v1261_v41 = vsel %vm202_vm2, %v1246_v51, %v1249_v16  ;;  %v1275_v33 = vsel %vm246_vm4, %v1269_v58, %v6519_v17 }
 0x54b   :  { %v6570_v34 = vmul.f32 %v1256_v62, %v5877_v6  ;;  %v6584_v51 = vmul.f32 %v1261_v41, %v5873_v63  ;;  %v6591_v30 = vmul.f32 %v1275_v33, %v5912_v47 }
 0x54d   :  { %7980 = vst [vmem:[#allocation43_spill] sm:$0xff] %v6570_v34  ;;  %v1251_v14 = vpop.permute.xlu0 %1250  ;;  %v1273_v4 = vpop.permute.xlu1 %1272  ;;  %v1357_v5 = vpack.c.bf16 %v6570_v34, %v6566_v19  ;;  %7983 = vst [vmem:[#allocation46_spill] sm:$0xff] %v6584_v51 }
 0x54e   :  { %v1254_v62 = vsel %vm202_vm2, %v1249_v16, %v1251_v14  ;;  %v1255_v6 = vsel %vm202_vm2, %v1251_v14, %v1253_v15  ;;  %v1282_v13 = vsel %vm246_vm4, %v1273_v4, %v6517_v59  ;;  %7984 = vst [vmem:[#allocation47_spill] sm:$0xff] %v6591_v30  ;;  %v6603_v16 = vmul.f32 %v1240_v27, %v5886_v9 }
 0x54f   :  { %v6594_v24 = vmul.f32 %v1254_v62, %v5880_v7  ;;  %v6597_v39 = vmul.f32 %v1255_v6, %v5883_v8  ;;  %v6600_v34 = vmul.f32 %v1282_v13, %v5908_v45  ;;  %1738 = vmatprep.mubr.bf16.mxu1 %v1357_v5  ;;  %v1276_v6 = vsel %vm246_vm4, %v6519_v17, %v1273_v4 }
 0x550   :  { %7988 = vst [vmem:[#allocation51_spill] sm:$0xff] %v6603_v16  ;;  %v1354_v5 = vpack.c.bf16 %v6584_v51, %v6603_v16  ;;  %v1274_v27 = vsel %vm246_vm4, %v6517_v59, %v1269_v58  ;;  %v1359_v13 = vpack.c.bf16 %v6591_v30, %v6456_v55  ;;  %v6620_v47 = vmul.f32 %v1276_v6, %v5915_v48  ;;  %v4923_v16 = vld [vmem:[%s7823_s5 + $0x5] ss:$0 sm:$0xff] }
 0x551   :  { %7985 = vst [vmem:[#allocation48_spill] sm:$0xff] %v6594_v24  ;;  %7986 = vst [vmem:[#allocation49_spill] sm:$0xff] %v6597_v39  ;;  %v1288_v15 = vpop.permute.xlu0 %1287  ;;  %v1290_v41 = vpop.permute.xlu1 %1289  ;;  %v1355_v14 = vpack.c.bf16 %v6594_v24, %v6576_v54  ;;  %v1356_v33 = vpack.c.bf16 %v6597_v39, %v6579_v12  ;;  %v1361_v62 = vpack.c.bf16 %v6600_v34, %v6438_v11 }
 0x552   :  { %7987 = vst [vmem:[#allocation50_spill] sm:$0xff] %v6600_v34  ;;  %7989 = vst [vmem:[#allocation52_spill] sm:$0xff] %v6620_v47  ;;  %v6623_v17 = vmul.f32 %v1274_v27, %v5905_v43  ;;  %v1360_v59 = vpack.c.bf16 %v6620_v47, %v6419_v1 }
 0x553   :  { %1666 = vmatprep.mubr.bf16.mxu0 %v1355_v14  ;;  %1739 = vmatmul.mubr.bf16.gmra.mrb[16].mxu1 %v1356_v33 }
 0x554   :  { %1667 = vmatmul.mubr.bf16.gmra.mrb[16].mxu0 %v1354_v5  ;;  %1746 = vmatprep.mubr.bf16.mxu1 %v1361_v62  ;;  %7990 = vst [vmem:[#allocation53_spill] sm:$0xff] %v6623_v17  ;;  %v1358_v33 = vpack.c.bf16 %v6623_v17, %v6397_v18  ;;  %v1295_v5 = vsel %vm291_vm6, %v1288_v15, %v1290_v41 }
 0x555   :  { %v1292_v34 = vpop.permute.xlu0 %1291  ;;  %1674 = vmatprep.mubr.bf16.mxu0 %v1359_v13  ;;  %v1294_v45 = vpop.permute.xlu1 %1293 }
 0x556   :  { %v1296_v58 = vsel %vm291_vm6, %v1290_v41, %v1292_v34  ;;  %v1297_v14 = vsel %vm291_vm6, %v1292_v34, %v1294_v45  ;;  %v1303_v6 = vsel %vm291_vm6, %v1294_v45, %v1288_v15 }
 0x557   :  { %v6635_v27 = vmul.f32 %v1296_v58, %v5938_v2  ;;  %v6638_v13 = vmul.f32 %v1297_v14, %v5942_v26  ;;  %v6659_v14 = vmul.f32 %v1295_v5, %v5962_v38  ;;  %v2803_v26 = vld [vmem:[%s7816_s2 + $0x68] sm:$0xff] }
 0x559   :  { %v1309_v4 = vpop.permute.xlu0 %1308  ;;  %v1311_v51 = vpop.permute.xlu1 %1310  ;;  %7991 = vst [vmem:[#allocation54_spill] sm:$0xff] %v6635_v27  ;;  %7992 = vst [vmem:[#allocation55_spill] sm:$0xff] %v6638_v13 }
 0x55a   :  { %v1316_v62 = vsel %vm336_vm5, %v1309_v4, %v1311_v51  ;;  %7998 = vst [vmem:[#allocation61_spill] sm:$0xff] %v6659_v14 }
 0x55b   :  { %1747 = vmatmul.mubr.bf16.gmra.mrb[20].mxu1 %v1360_v59  ;;  %v6641_v34 = vmul.f32 %v1316_v62, %v5946_v32 }
 0x55c   :  { %1675 = vmatmul.mubr.bf16.gmra.mrb[20].mxu0 %v1358_v33  ;;  %v6647_v33 = vmul.f32 %v1303_v6, %v5935_v0 }
 0x55d   :  { %v1313_v47 = vpop.permute.xlu0 %1312  ;;  %v1315_v30 = vpop.permute.xlu1 %1314  ;;  %7993 = vst [vmem:[#allocation56_spill] sm:$0xff] %v6641_v34 }
 0x55e   :  { %v1317_v17 = vsel %vm336_vm5, %v1311_v51, %v1313_v47  ;;  %v1318_v59 = vsel %vm336_vm5, %v1313_v47, %v1315_v30  ;;  %v1324_v45 = vsel %vm336_vm5, %v1315_v30, %v1309_v4  ;;  %7994 = vst [vmem:[#allocation57_spill] sm:$0xff] %v6647_v33  ;;  %v1362_v4 = vpack.c.bf16 %v6641_v34, %v6659_v14 }
 0x55f   :  { %v6650_v15 = vmul.f32 %v1317_v17, %v5956_v36  ;;  %v6653_v41 = vmul.f32 %v1318_v59, %v5959_v37  ;;  %v6656_v58 = vmul.f32 %v1324_v45, %v5953_v35 }
 0x561   :  { %7995 = vst [vmem:[#allocation58_spill] sm:$0xff] %v6650_v15  ;;  %7996 = vst [vmem:[#allocation59_spill] sm:$0xff] %v6653_v41  ;;  %v1330_v51 = vpop.permute.xlu0 %1329  ;;  %v1332_v62 = vpop.permute.xlu1 %1331  ;;  %v1363_v47 = vpack.c.bf16 %v6650_v15, %v6635_v27  ;;  %v1365_v30 = vpack.c.bf16 %v6656_v58, %v6647_v33  ;;  %v1364_v17 = vpack.c.bf16 %v6653_v41, %v6638_v13 }
 0x562   :  { %7997 = vst [vmem:[#allocation60_spill] sm:$0xff] %v6656_v58  ;;  %v1337_v6 = vsel %vm381_vm7, %v1330_v51, %v1332_v62 }
 0x563   :  { %1682 = vmatprep.mubr.bf16.mxu0 %v1363_v47  ;;  %1754 = vmatprep.mubr.bf16.mxu1 %v1365_v30  ;;  %v6671_v45 = vmul.f32 %v1337_v6, %v5969_v49 }
 0x564   :  { %1683 = vmatmul.mubr.bf16.gmra.mrb[24].mxu0 %v1362_v4  ;;  %1755 = vmatmul.mubr.bf16.gmra.mrb[24].mxu1 %v1364_v17 }
 0x565   :  { %v1334_v5 = vpop.permute.xlu0 %1333  ;;  %v1336_v59 = vpop.permute.xlu1 %1335  ;;  %7999 = vst [vmem:[#allocation62_spill] sm:$0xff] %v6671_v45 }
 0x566   :  { %v1338_v15 = vsel %vm381_vm7, %v1332_v62, %v1334_v5  ;;  %v1339_v58 = vsel %vm381_vm7, %v1334_v5, %v1336_v59  ;;  %v1345_v41 = vsel %vm381_vm7, %v1336_v59, %v1330_v51  ;;  %v1366_v51 = vpack.c.bf16 %v6671_v45, %v6671_v45 }
 0x567   :  { %v6677_v37 = vmul.f32 %v1338_v15, %v7963_v3  ;;  %v6680_v34 = vmul.f32 %v1339_v58, %v7964_v60  ;;  %v6683_v47 = vmul.f32 %v1345_v41, %v7961_v53  ;;  %v7880_v15 = vmov 0.0  }
 0x568   :  { %5249 = vmatprep.subr.bf16.mxu0 %v7880_v15 }
 0x569   :  { %8000 = vst [vmem:[#allocation63_spill] sm:$0xff] %v6677_v37  ;;  %8001 = vst [vmem:[#allocation64_spill] sm:$0xff] %v6680_v34  ;;  %v1367_v30 = vpack.c.bf16 %v6677_v37, %v6677_v37  ;;  %v1369_v17 = vpack.c.bf16 %v6683_v47, %v6683_v47  ;;  %v1368_v62 = vpack.c.bf16 %v6680_v34, %v6680_v34 }
 0x56a   :  { %8002 = vst [vmem:[#allocation65_spill] sm:$0xff] %v6683_v47 }
 0x56b   :  { %1690 = vmatprep.mubr.bf16.mxu0 %v1367_v30  ;;  %1762 = vmatprep.mubr.bf16.mxu1 %v1369_v17 }
 0x56c   :  { %1691 = vmatmul.mubr.bf16.gmra.mrb[28].mxu0 %v1366_v51  ;;  %1763 = vmatmul.mubr.bf16.gmra.mrb[28].mxu1 %v1368_v62 }
 0x56d   :  { %5259 = vmatprep.mubr.msk.bf16.mxu0 %vm5614_vm10, %v7880_v15 }
 0x616   :  { %v5068_v41 = vpop.f32.mrb[12].mxu1 }
 0x617   :  { %v5022_v58 = vpop.f32.mrb[12].mxu0  ;;  %v5069_v4 = vpop.f32.mrb[13].mxu1 }
 0x618   :  { %v5070_v6 = vadd.f32 %v5069_v4, %v5068_v41  ;;  %v5023_v5 = vpop.f32.mrb[13].mxu0  ;;  %v5071_v59 = vpop.f32.mrb[14].mxu1 }
 0x619   :  { %v5024_v47 = vadd.f32 %v5023_v5, %v5022_v58  ;;  %v5025_v37 = vpop.f32.mrb[14].mxu0  ;;  %v5072_v45 = vpop.f32.mrb[15].mxu1 }
 0x61a   :  { %v5073_v30 = vadd.f32 %v5072_v45, %v5071_v59  ;;  %v5026_v17 = vpop.f32.mrb[15].mxu0 }
 0x61b   :  { %v1733_v51 = vadd.f32 %v5070_v6, %v5024_v47  ;;  %v5027_v62 = vadd.f32 %v5026_v17, %v5025_v37 }
 0x61d   :  { %v1736_v34 = vadd.f32 %v5073_v30, %v5027_v62 }
 0x61f   :  { %v1770_v53 = vpack.c.bf16 %v1736_v34, %v1733_v51 }
 0x621   :  { %5250 = vmatpush3.bf16.msra.mxu0 %v1770_v53 }
 0x622   :  { %5251 = vmatprep.subr.bf16.mxu0 %v7880_v15 }
 0x626   :  { %v5074_v60 = vpop.f32.mrb[16].mxu1 }
 0x627   :  { %v5028_v3 = vpop.f32.mrb[16].mxu0  ;;  %v5075_v49 = vpop.f32.mrb[17].mxu1 }
 0x628   :  { %v5076_v14 = vadd.f32 %v5075_v49, %v5074_v60  ;;  %v5029_v32 = vpop.f32.mrb[17].mxu0  ;;  %v5077_v41 = vpop.f32.mrb[18].mxu1 }
 0x629   :  { %v5030_v4 = vadd.f32 %v5029_v32, %v5028_v3  ;;  %v5031_v13 = vpop.f32.mrb[18].mxu0  ;;  %v5078_v58 = vpop.f32.mrb[19].mxu1  ;;  %v8003_v3 = vmov 0.0  }
 0x62a   :  { %v5079_v5 = vadd.f32 %v5078_v58, %v5077_v41  ;;  %v5032_v27 = vpop.f32.mrb[19].mxu0 }
 0x62b   :  { %v1741_v45 = vadd.f32 %v5076_v14, %v5030_v4  ;;  %v5033_v59 = vadd.f32 %v5032_v27, %v5031_v13 }
 0x62d   :  { %v1744_v47 = vadd.f32 %v5079_v5, %v5033_v59 }
 0x62e   :  { %v5080_v37 = vpop.f32.mrb[20].mxu1 }
 0x62f   :  { %v1771_v6 = vpack.c.bf16 %v1744_v47, %v1741_v45  ;;  %v5034_v34 = vpop.f32.mrb[20].mxu0  ;;  %v5081_v53 = vpop.f32.mrb[21].mxu1 }
 0x630   :  { %v5082_v30 = vadd.f32 %v5081_v53, %v5080_v37  ;;  %v5035_v17 = vpop.f32.mrb[21].mxu0  ;;  %v5083_v51 = vpop.f32.mrb[22].mxu1 }
 0x631   :  { %v5036_v62 = vadd.f32 %v5035_v17, %v5034_v34  ;;  %v5037_v15 = vpop.f32.mrb[22].mxu0  ;;  %v5084_v49 = vpop.f32.mrb[23].mxu1  ;;  %5252 = vmatpush3.bf16.msra.mxu0 %v1771_v6 }
 0x632   :  { %v5085_v60 = vadd.f32 %v5084_v49, %v5083_v51  ;;  %v5038_v32 = vpop.f32.mrb[23].mxu0  ;;  %5253 = vmatprep.subr.bf16.mxu0 %v8003_v3 }
 0x633   :  { %v1749_v41 = vadd.f32 %v5082_v30, %v5036_v62  ;;  %v5039_v58 = vadd.f32 %v5038_v32, %v5037_v15 }
 0x635   :  { %v1752_v14 = vadd.f32 %v5085_v60, %v5039_v58 }
 0x637   :  { %v1772_v27 = vpack.c.bf16 %v1752_v14, %v1749_v41  ;;  %v5040_v13 = vpop.f32.mrb[24].mxu0  ;;  %v5086_v4 = vpop.f32.mrb[24].mxu1 }
 0x638   :  { %v5041_v5 = vpop.f32.mrb[25].mxu0  ;;  %v5087_v45 = vpop.f32.mrb[25].mxu1 }
 0x639   :  { %v5042_v59 = vadd.f32 %v5041_v5, %v5040_v13  ;;  %v5088_v47 = vadd.f32 %v5087_v45, %v5086_v4  ;;  %v5043_v37 = vpop.f32.mrb[26].mxu0  ;;  %v5089_v53 = vpop.f32.mrb[26].mxu1  ;;  %5254 = vmatpush3.bf16.msra.mxu0 %v1772_v27 }
 0x63a   :  { %v5044_v34 = vpop.f32.mrb[27].mxu0  ;;  %v5090_v17 = vpop.f32.mrb[27].mxu1  ;;  %5255 = vmatprep.subr.bf16.mxu0 %v8003_v3 }
 0x63b   :  { %v1757_v6 = vadd.f32 %v5088_v47, %v5042_v59  ;;  %v5045_v51 = vadd.f32 %v5044_v34, %v5043_v37  ;;  %v5091_v49 = vadd.f32 %v5090_v17, %v5089_v53  ;;  %v5471_v59 = vld [vmem:[%s7819_s8 + $0x40] sm:$0xff]   ;;  %v5473_v34 = vld [vmem:[%s7819_s8 + $0x48] sm:$0xff]   ;;  %v2027_v17 = vpack.c.bf16 %v6456_v55, %v6456_v55 }
 0x63c   :  { %v5470_v37 = vld [vmem:[%s7815_s1 + $0x24] ss:$12 sps:$4 sm:$0xff]  }
 0x63d   :  { %v1760_v30 = vadd.f32 %v5091_v49, %v5045_v51  ;;  %v5472_v53 = vld [vmem:[%s7819_s8] sm:$0xff]   ;;  %v5476_v51 = vld [vmem:[%s7819_s8 + $0x10] sm:$0xff]   ;;  %v5477_v49 = vld [vmem:[%s7819_s8 + $0x58] sm:$0xff]  }
 0x63f   :  { %v1773_v15 = vpack.c.bf16 %v1760_v30, %v1757_v6  ;;  %v5046_v62 = vpop.f32.mrb[28].mxu0  ;;  %v5092_v60 = vpop.f32.mrb[28].mxu1  ;;  %v5475_v6 = vld [vmem:[%s7819_s8 + $0x50] sm:$0xff]   ;;  %v5478_v30 = vld [vmem:[%s7819_s8 + $0x18] sm:$0xff]  }
 0x640   :  { %v5047_v32 = vpop.f32.mrb[29].mxu0  ;;  %v5093_v41 = vpop.f32.mrb[29].mxu1 }
 0x641   :  { %v5048_v58 = vadd.f32 %v5047_v32, %v5046_v62  ;;  %v5094_v14 = vadd.f32 %v5093_v41, %v5092_v60  ;;  %v5049_v13 = vpop.f32.mrb[30].mxu0  ;;  %v5095_v4 = vpop.f32.mrb[30].mxu1  ;;  %5256 = vmatpush3.bf16.msra.mxu0 %v1773_v15  ;;  %v5479_v15 = vld [vmem:[%s7819_s8 + $0x60] sm:$0xff]   ;;  %v5481_v60 = vld [vmem:[%s7819_s8 + $0x68] sm:$0xff]   ;;  %v5483_v41 = vld [vmem:[%s7819_s8 + $0x70] sm:$0xff]  }
 0x642   :  { %v5050_v5 = vpop.f32.mrb[31].mxu0  ;;  %v5096_v27 = vpop.f32.mrb[31].mxu1  ;;  %5257 = vmatprep.subr.bf16.mxu0 %v8003_v3  ;;  %v5480_v62 = vld [vmem:[%s7819_s8 + $0x20] sm:$0xff]   ;;  %v5482_v32 = vld [vmem:[%s7819_s8 + $0x28] sm:$0xff]   ;;  %v5486_v13 = vld [vmem:[%s7819_s8 + $0x38] sm:$0xff]   ;;  %v2026_v4 = vpack.c.bf16 %v6397_v18, %v6397_v18 }
 0x643   :  { %v1765_v45 = vadd.f32 %v5094_v14, %v5048_v58  ;;  %v5484_v58 = vld [vmem:[%s7819_s8 + $0x30] sm:$0xff]   ;;  %v5485_v14 = vld [vmem:[%s7819_s8 + $0x78] sm:$0xff]   ;;  %v1778_v5 = vpop.permute.xlu0 %1777 }
 0x645   :  { %v1774_v35 = vpack.c.bf16 %v1765_v45, %v1765_v45 }
 0x647   :  { %v1794_v47 = vsel %vm447_vm8, %v1774_v35, 0  ;;  %v5474_v35 = vld [vmem:[%s7819_s8 + $0x8] sm:$0xff]  }
 0x648   :  { %5258 = vmatpush3.bf16.msra.mxu0 %v1794_v47  ;;  %v1783_v47 = vpop.permute.xlu1 %1782 }
 0x649   :  { %5104 = vmatprep.subr.bf16.mxu0 %v5471_v59 }
 0x64b   :  { %5260 = vmatmul.mubr.msk.bf16.vlgmr.msra.gmra.mrb[32].mxu0 %vm443_vm9, %v5470_v37 }
 0x64c   :  { %5105 = vmatpush3.bf16.msra.mxu0 %v5472_v53  ;;  %2318 = vmatprep.mubr.bf16.mxu0 %v2027_v17 }
 0x64d   :  { %5106 = vmatprep.subr.bf16.mxu0 %v5473_v34 }
 0x650   :  { %5107 = vmatpush3.bf16.msra.mxu0 %v5474_v35 }
 0x651   :  { %5108 = vmatprep.subr.bf16.mxu0 %v5475_v6 }
 0x654   :  { %5109 = vmatpush3.bf16.msra.mxu0 %v5476_v51 }
 0x655   :  { %5110 = vmatprep.subr.bf16.mxu0 %v5477_v49 }
 0x658   :  { %5111 = vmatpush3.bf16.msra.mxu0 %v5478_v30  ;;  %v5489_v30 = vld [vmem:[%s7815_s1 + $0x40] ss:$12 sps:$4 sm:$0xff]  }
 0x659   :  { %5112 = vmatprep.subr.bf16.mxu0 %v5479_v15  ;;  %4870 = vmatprep.mubr.msk.bf16.mxu1 %vm112_vm1, %v5489_v30 }
 0x65c   :  { %5113 = vmatpush3.bf16.msra.mxu0 %v5480_v62 }
 0x65d   :  { %5114 = vmatprep.subr.bf16.mxu0 %v5481_v60 }
 0x660   :  { %5115 = vmatpush3.bf16.msra.mxu0 %v5482_v32 }
 0x661   :  { %5116 = vmatprep.subr.bf16.mxu0 %v5483_v41 }
 0x664   :  { %5117 = vmatpush3.bf16.msra.mxu0 %v5484_v58  ;;  %v1845_v58 = vld [vmem:[%s7816_s2 + $0x28] sm:$0xff] }
 0x665   :  { %5118 = vmatprep.subr.bf16.mxu0 %v5485_v14  ;;  %v1846_v14 = vld [vmem:[%s7816_s2 + $0x30] sm:$0xff] }
 0x668   :  { %5119 = vmatpush3.bf16.msra.mxu0 %v5486_v13  ;;  %v6813_v13 = vld [vmem:[%s7820_s4] ss:$0 sm:$0xff] }
 0x669   :  { %5269 = vmatprep.subr.bf16.mxu0 %v8003_v3 }
 0x66b   :  { %2319 = vmatmul.mubr.bf16.vlgmr.msra.gmra.mrb[36].mxu0 %v2026_v4 }
 0x66c   :  { %5285 = vmatprep.mubr.msk.bf16.mxu0 %vm5614_vm10, %v8003_v3 }
 0x71e   :  { %v1830_v27 = vpop.f32.mrb[32].mxu0 }
 0x71f   :  { %v1831_v45 = vadd.f32 %v1830_v27, %v1778_v5  ;;  %v5261_v59 = vpop.f32.mrb[33].mxu0 }
 0x720   :  { %v1833_v37 = vpop.f32.mrb[34].mxu0  ;;  %v6820_v59 = vld [vmem:[%s7820_s4 + $0x1] ss:$0 sm:$0xff] }
 0x721   :  { %vm1837_vm9 = vcmp.ge.f32.partialorder %v1831_v45, 0.0  ;;  %v1839_v53 = vmul.f32 0.01, %v1831_v45  ;;  %v1834_v34 = vadd.f32 %v1833_v37, %v1783_v47  ;;  %v5262_v17 = vpop.f32.mrb[35].mxu0 }
 0x723   :  { %v6760_v35 = vsel %vm1837_vm9, %v1831_v45, %v1839_v53  ;;  %vm1838_vm11 = vcmp.ge.f32.partialorder %v1834_v34, 0.0  ;;  %v1840_v6 = vmul.f32 0.01, %v1834_v34 }
 0x724   :  { %1849 = vrot.lane.b32.xlu0 %v6760_v35, %s5615_s20 }
 0x725   :  { %v6764_v51 = vsel %vm1838_vm11, %v1834_v34, %v1840_v6  ;;  %v6827_v6 = vld [vmem:[%s7820_s4 + $0x2] ss:$0 sm:$0xff] }
 0x726   :  { %1851 = vrot.lane.b32.xlu1 %v6764_v51, %s5615_s20  ;;  %v1958_v49 = vpack.c.bf16 %v6764_v51, %v6760_v35 }
 0x728   :  { %1862 = vrot.lane.b32.xlu0 %v6760_v35, %s5616_s21 }
 0x72a   :  { %1864 = vrot.lane.b32.xlu1 %v6764_v51, %s5616_s21 }
 0x72c   :  { %1876 = vrot.lane.b32.xlu0 %v6760_v35, %s5617_s3 }
 0x72e   :  { %1878 = vrot.lane.b32.xlu1 %v6764_v51, %s5617_s3 }
 0x730   :  { %1889 = vrot.lane.b32.xlu0 %v6760_v35, %s5607_s23 }
 0x732   :  { %1891 = vrot.lane.b32.xlu1 %v6764_v51, %s5607_s23 }
 0x734   :  { %1902 = vrot.lane.b32.xlu0 %v6760_v35, %s5608_s24 }
 0x736   :  { %1904 = vrot.lane.b32.xlu1 %v6764_v51, %s5608_s24 }
 0x738   :  { %1915 = vrot.lane.b32.xlu0 %v6760_v35, %s5618_s28 }
 0x73a   :  { %1917 = vrot.lane.b32.xlu1 %v6764_v51, %s5618_s28 }
 0x73c   :  { %1928 = vrot.lane.b32.xlu0 %v6760_v35, %s5619_s29 }
 0x73e   :  { %1930 = vrot.lane.b32.xlu1 %v6764_v51, %s5619_s29  ;;  %v5120_v15 = vpop.f32.mrb[36].mxu0 }
 0x73f   :  { %v5121_v62 = vpop.f32.mrb[37].mxu0 }
 0x740   :  { %v6798_v60 = vadd.f32 %v5121_v62, %v5120_v15  ;;  %1941 = vrot.lane.b32.xlu0 %v6760_v35, %s5620_s15  ;;  %v5123_v32 = vpop.f32.mrb[38].mxu0  ;;  %v6863_v35 = vld [vmem:[%s7820_s4 + $0x7] ss:$0 sm:$0xff] }
 0x741   :  { %v5124_v41 = vpop.f32.mrb[39].mxu0 }
 0x742   :  { %1943 = vrot.lane.b32.xlu1 %v6764_v51, %s5620_s15 }
 0x744   :  { %1965 = vperm.xlu0 %5436, %v1845_v58   ;;  %v6835_v58 = vld [vmem:[%s7820_s4 + $0x3] ss:$0 sm:$0xff] }
 0x746   :  { %1970 = vperm.xlu1 %5437, %v1846_v14  }
 0x796   :  { %v1850_v4 = vpop.permute.xlu0 %1849 }
 0x797   :  { %v1860_v27 = vmul.f32 %v6813_v13, %v1850_v4 }
 0x798   :  { %v1852_v5 = vpop.permute.xlu1 %1851 }
 0x799   :  { %v1861_v45 = vmul.f32 %v6813_v13, %v1852_v5 }
 0x79a   :  { %v1863_v47 = vpop.permute.xlu0 %1862 }
 0x79b   :  { %v1954_v37 = vpack.c.bf16 %v1861_v45, %v1860_v27  ;;  %v1874_v34 = vmul.f32 %v6820_v59, %v1863_v47 }
 0x79c   :  { %v1865_v53 = vpop.permute.xlu1 %1864 }
 0x79d   :  { %v1875_v17 = vmul.f32 %v6820_v59, %v1865_v53  ;;  %1986 = vmatpush1.bf16.msra.mxu1 %v1954_v37 }
 0x79e   :  { %v1877_v30 = vpop.permute.xlu0 %1876  ;;  %1987 = vmatprep.subr.bf16.mxu1 %v7973_v52 }
 0x79f   :  { %v1955_v15 = vpack.c.bf16 %v1875_v17, %v1874_v34  ;;  %v1887_v32 = vmul.f32 %v6827_v6, %v1877_v30  ;;  %v6844_v34 = vld [vmem:[%s7820_s4 + $0x5] ss:$0 sm:$0xff] }
 0x7a0   :  { %v1879_v62 = vpop.permute.xlu1 %1878 }
 0x7a1   :  { %v1888_v41 = vmul.f32 %v6827_v6, %v1879_v62  ;;  %1988 = vmatpush1.bf16.msra.mxu1 %v1955_v15 }
 0x7a2   :  { %v1890_v14 = vpop.permute.xlu0 %1889  ;;  %1989 = vmatprep.subr.bf16.mxu1 %v7973_v52 }
 0x7a3   :  { %v1956_v4 = vpack.c.bf16 %v1888_v41, %v1887_v32  ;;  %v1900_v27 = vmul.f32 %v6835_v58, %v1890_v14  ;;  %v6855_v32 = vld [vmem:[%s7820_s4 + $0x6] ss:$0 sm:$0xff] }
 0x7a4   :  { %v1892_v5 = vpop.permute.xlu1 %1891 }
 0x7a5   :  { %v1901_v45 = vmul.f32 %v6835_v58, %v1892_v5  ;;  %1990 = vmatpush1.bf16.msra.mxu1 %v1956_v4 }
 0x7a6   :  { %v1903_v47 = vpop.permute.xlu0 %1902  ;;  %1991 = vmatprep.subr.bf16.mxu1 %v7973_v52 }
 0x7a7   :  { %v1957_v37 = vpack.c.bf16 %v1901_v45, %v1900_v27  ;;  %v1913_v62 = vmul.f32 %v6844_v34, %v1903_v47 }
 0x7a8   :  { %v1905_v53 = vpop.permute.xlu1 %1904 }
 0x7a9   :  { %1992 = vmatpush1.bf16.msra.mxu1 %v1957_v37  ;;  %v1914_v30 = vmul.f32 %v6844_v34, %v1905_v53  ;;  %v6871_v37 = vld [vmem:[%s7820_s4 + $0x8] ss:$0 sm:$0xff] }
 0x7aa   :  { %v1916_v17 = vpop.permute.xlu0 %1915  ;;  %1993 = vmatprep.subr.bf16.mxu1 %v7973_v52 }
 0x7ab   :  { %v1959_v41 = vpack.c.bf16 %v1914_v30, %v1913_v62  ;;  %v1926_v27 = vmul.f32 %v6855_v32, %v1916_v17  ;;  %v5490_v62 = vld [vmem:[%s7819_s8 + $0xc0] sm:$0xff]  }
 0x7ac   :  { %v1918_v15 = vpop.permute.xlu1 %1917 }
 0x7ad   :  { %1994 = vmatpush1.bf16.msra.mxu1 %v1958_v49  ;;  %v1927_v14 = vmul.f32 %v6855_v32, %v1918_v15 }
 0x7ae   :  { %1995 = vmatprep.subr.bf16.mxu1 %v7973_v52  ;;  %v1929_v4 = vpop.permute.xlu0 %1928 }
 0x7af   :  { %v1960_v51 = vpack.c.bf16 %v1927_v14, %v1926_v27  ;;  %v1939_v47 = vmul.f32 %v6863_v35, %v1929_v4  ;;  %v5487_v14 = vld [vmem:[%s7815_s1 + $0x3c] ss:$12 sps:$4 sm:$0xff]   ;;  %v5491_v4 = vld [vmem:[%s7819_s8 + $0x80] sm:$0xff]   ;;  %v2029_v27 = vpack.c.bf16 %v6438_v11, %v6438_v11 }
 0x7b0   :  { %v1931_v5 = vpop.permute.xlu1 %1930 }
 0x7b1   :  { %1996 = vmatpush1.bf16.msra.mxu1 %v1959_v41  ;;  %v1940_v49 = vmul.f32 %v6863_v35, %v1931_v5  ;;  %v5492_v5 = vld [vmem:[%s7819_s8 + $0xc8] sm:$0xff]  }
 0x7b2   :  { %1997 = vmatprep.subr.bf16.mxu1 %v7973_v52  ;;  %v1942_v53 = vpop.permute.xlu0 %1941 }
 0x7b3   :  { %v1961_v17 = vpack.c.bf16 %v1940_v49, %v1939_v47  ;;  %v1952_v15 = vmul.f32 %v6871_v37, %v1942_v53  ;;  %v5494_v49 = vld [vmem:[%s7819_s8 + $0xd0] sm:$0xff]   ;;  %v5496_v47 = vld [vmem:[%s7819_s8 + $0xd8] sm:$0xff]  }
 0x7b4   :  { %v1944_v45 = vpop.permute.xlu1 %1943  ;;  %v5497_v53 = vld [vmem:[%s7819_s8 + $0x98] sm:$0xff]  }
 0x7b5   :  { %1998 = vmatpush1.bf16.msra.mxu1 %v1960_v51  ;;  %v1953_v30 = vmul.f32 %v6871_v37, %v1944_v45  ;;  %v5493_v51 = vld [vmem:[%s7819_s8 + $0x88] sm:$0xff]   ;;  %v5495_v45 = vld [vmem:[%s7819_s8 + $0x90] sm:$0xff]  }
 0x7b6   :  { %1999 = vmatprep.subr.bf16.mxu1 %v7973_v52 }
 0x7b7   :  { %v1962_v41 = vpack.c.bf16 %v1953_v30, %v1952_v15  ;;  %v5499_v30 = vld [vmem:[%s7819_s8 + $0xa0] sm:$0xff]   ;;  %v5500_v15 = vld [vmem:[%s7819_s8 + $0xe8] sm:$0xff]  }
 0x7b9   :  { %2000 = vmatpush1.bf16.msra.mxu1 %v1961_v17  ;;  %v5498_v17 = vld [vmem:[%s7819_s8 + $0xe0] sm:$0xff]  }
 0x7ba   :  { %2001 = vmatprep.subr.bf16.mxu1 %v7973_v52 }
 0x7bd   :  { %2002 = vmatpush1.bf16.msra.mxu1 %v1962_v41  ;;  %v5502_v41 = vld [vmem:[%s7819_s8 + $0xf0] sm:$0xff]  }
 0x7be   :  { %5126 = vmatprep.subr.bf16.mxu1 %v5490_v62  ;;  %v5501_v62 = vld [vmem:[%s7819_s8 + $0xa8] sm:$0xff]  }
 0x7c0   :  { %2018 = vmatmul.mubr.bf16.vlgmr.msra.gmra.mrb[32].mxu1 %v5487_v14  ;;  %v5503_v14 = vld [vmem:[%s7819_s8 + $0xb0] sm:$0xff]  }
 0x7c1   :  { %5127 = vmatpush3.bf16.msra.mxu1 %v5491_v4  ;;  %2358 = vmatprep.mubr.bf16.mxu1 %v2029_v27  ;;  %v5504_v4 = vld [vmem:[%s7819_s8 + $0xf8] sm:$0xff]   ;;  %v2028_v27 = vpack.c.bf16 %v6419_v1, %v6419_v1 }
 0x7c2   :  { %5128 = vmatprep.subr.bf16.mxu1 %v5492_v5  ;;  %v5505_v5 = vld [vmem:[%s7819_s8 + $0xb8] sm:$0xff]   ;;  %s5632_s8 = smov 97  }
 0x7c5   :  { %5129 = vmatpush3.bf16.msra.mxu1 %v5493_v51 }
 0x7c6   :  { %5130 = vmatprep.subr.bf16.mxu1 %v5494_v49 }
 0x7c9   :  { %5131 = vmatpush3.bf16.msra.mxu1 %v5495_v45 }
 0x7ca   :  { %5132 = vmatprep.subr.bf16.mxu1 %v5496_v47 }
 0x7cd   :  { %5133 = vmatpush3.bf16.msra.mxu1 %v5497_v53 }
 0x7ce   :  { %5134 = vmatprep.subr.bf16.mxu1 %v5498_v17 }
 0x7d1   :  { %5135 = vmatpush3.bf16.msra.mxu1 %v5499_v30 }
 0x7d2   :  { %5136 = vmatprep.subr.bf16.mxu1 %v5500_v15 }
 0x7d5   :  { %5137 = vmatpush3.bf16.msra.mxu1 %v5501_v62  ;;  %v5506_v62 = vld [vmem:[%s7815_s1 + $0x54] ss:$12 sps:$4 sm:$0xff]  }
 0x7d6   :  { %5138 = vmatprep.subr.bf16.mxu1 %v5502_v41  ;;  %v5507_v41 = vld [vmem:[%s7821_s7] sm:$0xff]  }
 0x7d7   :  { %5270 = vmatpush3.bf16.msra.mxu0 %v5507_v41 }
 0x7d8   :  { %5271 = vmatprep.subr.bf16.mxu0 %v8003_v3 }
 0x7d9   :  { %5139 = vmatpush3.bf16.msra.mxu1 %v5503_v14  ;;  %v5509_v14 = vld [vmem:[%s7821_s7 + $0x10] sm:$0xff]  }
 0x7da   :  { %5140 = vmatprep.subr.bf16.mxu1 %v5504_v4  ;;  %v5510_v4 = vld [vmem:[%s7821_s7 + $0x18] sm:$0xff]  }
 0x7dd   :  { %5141 = vmatpush3.bf16.msra.mxu1 %v5505_v5  ;;  %v5511_v5 = vld [vmem:[%s7821_s7 + $0x20] sm:$0xff]  }
 0x7de   :  { %5263 = vmatprep.subr.bf16.mxu1 %v8003_v3 }
 0x7e0   :  { %2359 = vmatmul.mubr.bf16.vlgmr.msra.gmra.mrb[36].mxu1 %v2028_v27  ;;  %v5512_v27 = vld [vmem:[%s7821_s7 + $0x28] sm:$0xff]  }
 0x7e1   :  { %5265 = vmatprep.mubr.msk.bf16.mxu1 %vm5614_vm10, %v8003_v3 }
 0x8b3   :  { %v5142_v51 = vpop.f32.mrb[36].mxu1 }
 0x8b4   :  { %v5143_v49 = vpop.f32.mrb[37].mxu1 }
 0x8b5   :  { %v5144_v45 = vadd.f32 %v5143_v49, %v5142_v51  ;;  %v5145_v47 = vpop.f32.mrb[38].mxu1  ;;  %v5513_v51 = vld [vmem:[%s7821_s7 + $0x30] sm:$0xff]   ;;  %v5514_v49 = vld [vmem:[%s7821_s7 + $0x38] sm:$0xff]  }
 0x8b6   :  { %v5146_v53 = vpop.f32.mrb[39].mxu1 }
 0x8b7   :  { %v2361_v17 = vadd.f32 %v5144_v45, %v6798_v60  ;;  %v5508_v60 = vld [vmem:[%s7821_s7 + $0x8] sm:$0xff]   ;;  %v1966_v45 = vpop.permute.xlu0 %1965  ;;  %s5627_s7 = smov 29  }
 0x8b8   :  { %5272 = vmatpush3.bf16.msra.mxu0 %v5508_v60 }
 0x8b9   :  { %v2368_v30 = vpack.c.bf16 %v2361_v17, %v2361_v17  ;;  %5273 = vmatprep.subr.bf16.mxu0 %v8003_v3 }
 0x8bb   :  { %v2378_v15 = vsel %vm447_vm8, %v2368_v30, 0  ;;  %v1971_v30 = vpop.permute.xlu1 %1970 }
 0x8bc   :  { %5264 = vmatpush3.bf16.msra.mxu1 %v2378_v15  ;;  %5274 = vmatpush3.bf16.msra.mxu0 %v5509_v14 }
 0x8bd   :  { %2734 = vmatprep.subr.bf16.mxu1 %v7973_v52  ;;  %5275 = vmatprep.subr.bf16.mxu0 %v8003_v3 }
 0x8bf   :  { %5266 = vmatmul.mubr.msk.bf16.vlgmr.msra.gmra.mrb[32].mxu1 %vm1868_vm12, %v5506_v62 }
 0x8c0   :  { %5276 = vmatpush3.bf16.msra.mxu0 %v5510_v4 }
 0x8c1   :  { %5277 = vmatprep.subr.bf16.mxu0 %v8003_v3 }
 0x8c4   :  { %5278 = vmatpush3.bf16.msra.mxu0 %v5511_v5 }
 0x8c5   :  { %5279 = vmatprep.subr.bf16.mxu0 %v8003_v3 }
 0x8c8   :  { %5280 = vmatpush3.bf16.msra.mxu0 %v5512_v27 }
 0x8c9   :  { %5281 = vmatprep.subr.bf16.mxu0 %v8003_v3 }
 0x8cc   :  { %5282 = vmatpush3.bf16.msra.mxu0 %v5513_v51  ;;  %v2433_v51 = vld [vmem:[%s7816_s2 + $0x48] sm:$0xff] }
 0x8cd   :  { %5283 = vmatprep.subr.bf16.mxu0 %v8003_v3 }
 0x8d0   :  { %5284 = vmatpush3.bf16.msra.mxu0 %v5514_v49  ;;  %v2434_v49 = vld [vmem:[%s7816_s2 + $0x50] sm:$0xff] }
 0x8d1   :  { %5329 = vmatprep.subr.bf16.mxu0 %v8003_v3 }
 0x992   :  { %v2414_v47 = vpop.f32.mrb[32].mxu1 }
 0x993   :  { %v5391_v53 = vadd.f32 %v2414_v47, %v1966_v45  ;;  %v5267_v17 = vpop.f32.mrb[33].mxu1  ;;  %v2435_v45 = vld [vmem:[%s7816_s2 + $0x58] sm:$0xff]  ;;  %v2436_v47 = vld [vmem:[%s7816_s2 + $0x60] sm:$0xff] }
 0x994   :  { %v2417_v15 = vpop.f32.mrb[34].mxu1 }
 0x995   :  { %vm2423_vm13 = vcmp.ge.f32.partialorder %v5391_v53, 0.0  ;;  %v2425_v62 = vmul.f32 0.01, %v5391_v53  ;;  %v5392_v41 = vadd.f32 %v2417_v15, %v1971_v30  ;;  %v5268_v60 = vpop.f32.mrb[35].mxu1 }
 0x997   :  { %v2427_v14 = vsel %vm2423_vm13, %v5391_v53, %v2425_v62  ;;  %vm2424_vm14 = vcmp.ge.f32.partialorder %v5392_v41, 0.0  ;;  %v2426_v4 = vmul.f32 0.01, %v5392_v41  ;;  %v5515_v62 = vld [vmem:[%s7822_s9] sm:$0xff]  }
 0x998   :  { %2439 = vrot.lane.b32.xlu0 %v2427_v14, %s5615_s20 }
 0x999   :  { %v2428_v5 = vsel %vm2424_vm14, %v5392_v41, %v2426_v4  ;;  %v5516_v4 = vld [vmem:[%s7822_s9 + $0x8] sm:$0xff]   ;;  %vm2835_vm14 = vcmask 39936  }
 0x99a   :  { %2441 = vrot.lane.b32.xlu1 %v2428_v5, %s5615_s20  ;;  %v6976_v27 = vpack.c.bf16 %v2428_v5, %v2427_v14 }
 0x99c   :  { %2447 = vrot.lane.b32.xlu0 %v2427_v14, %s5616_s21 }
 0x99e   :  { %2449 = vrot.lane.b32.xlu1 %v2428_v5, %s5616_s21 }
 0x9a0   :  { %2455 = vrot.lane.b32.xlu0 %v2427_v14, %s5617_s3 }
 0x9a2   :  { %2457 = vrot.lane.b32.xlu1 %v2428_v5, %s5617_s3 }
 0x9a4   :  { %2463 = vrot.lane.b32.xlu0 %v2427_v14, %s5607_s23 }
 0x9a6   :  { %2465 = vrot.lane.b32.xlu1 %v2428_v5, %s5607_s23 }
 0x9a8   :  { %2471 = vrot.lane.b32.xlu0 %v2427_v14, %s5608_s24 }
 0x9aa   :  { %2473 = vrot.lane.b32.xlu1 %v2428_v5, %s5608_s24 }
 0x9ac   :  { %2479 = vrot.lane.b32.xlu0 %v2427_v14, %s5618_s28 }
 0x9ae   :  { %2481 = vrot.lane.b32.xlu1 %v2428_v5, %s5618_s28 }
 0x9b0   :  { %2487 = vrot.lane.b32.xlu0 %v2427_v14, %s5619_s29 }
 0x9b2   :  { %2489 = vrot.lane.b32.xlu1 %v2428_v5, %s5619_s29 }
 0x9b4   :  { %2495 = vrot.lane.b32.xlu0 %v2427_v14, %s5620_s15 }
 0x9b6   :  { %2497 = vrot.lane.b32.xlu1 %v2428_v5, %s5620_s15 }
 0x9b8   :  { %2692 = vperm.xlu0 %5436, %v2433_v51   ;;  %v5517_v51 = vld [vmem:[%s7822_s9 + $0x10] sm:$0xff]  }
 0x9ba   :  { %2697 = vperm.xlu1 %5437, %v2434_v49  }
 0x9bc   :  { %2702 = vperm.xlu0 %5436, %v2435_v45  }
 0x9be   :  { %2707 = vperm.xlu1 %5437, %v2436_v47  }
 0xa0a   :  { %v2440_v53 = vpop.permute.xlu0 %2439 }
 0xa0b   :  { %v2445_v30 = vmul.f32 %v6813_v13, %v2440_v53 }
 0xa0c   :  { %v2442_v17 = vpop.permute.xlu1 %2441 }
 0xa0d   :  { %v2446_v15 = vmul.f32 %v6813_v13, %v2442_v17 }
 0xa0e   :  { %v2448_v14 = vpop.permute.xlu0 %2447 }
 0xa0f   :  { %v7009_v41 = vpack.c.bf16 %v2446_v15, %v2445_v30  ;;  %v2453_v5 = vmul.f32 %v6820_v59, %v2448_v14  ;;  %v5519_v30 = vld [vmem:[%s7822_s9 + $0x20] sm:$0xff]  }
 0xa10   :  { %v2450_v60 = vpop.permute.xlu1 %2449 }
 0xa11   :  { %5286 = vmatmul.mubr.bf16.vlgmr.msra.gmra.mrb[40].mxu0 %v7009_v41  ;;  %v2454_v13 = vmul.f32 %v6820_v59, %v2450_v60  ;;  %v5518_v59 = vld [vmem:[%s7822_s9 + $0x18] sm:$0xff]  }
 0xa12   :  { %5289 = vmatprep.mubr.msk.bf16.mxu0 %vm5614_vm10, %v8003_v3  ;;  %5330 = vmatpush3.bf16.msra.mxu0 %v5515_v62  ;;  %v2456_v47 = vpop.permute.xlu0 %2455 }
 0xa13   :  { %5331 = vmatprep.subr.bf16.mxu0 %v8003_v3  ;;  %v7023_v49 = vpack.c.bf16 %v2454_v13, %v2453_v5  ;;  %v2461_v17 = vmul.f32 %v6827_v6, %v2456_v47  ;;  %v5521_v13 = vld [vmem:[%s7822_s9 + $0x30] sm:$0xff]  }
 0xa14   :  { %v2458_v45 = vpop.permute.xlu1 %2457 }
 0xa15   :  { %v2462_v53 = vmul.f32 %v6827_v6, %v2458_v45  ;;  %v5520_v6 = vld [vmem:[%s7822_s9 + $0x28] sm:$0xff]  }
 0xa16   :  { %5332 = vmatpush3.bf16.msra.mxu0 %v5516_v4  ;;  %v2464_v60 = vpop.permute.xlu0 %2463 }
 0xa17   :  { %5333 = vmatprep.subr.bf16.mxu0 %v8003_v3  ;;  %v7038_v15 = vpack.c.bf16 %v2462_v53, %v2461_v17  ;;  %v2469_v4 = vmul.f32 %v6835_v58, %v2464_v60 }
 0xa18   :  { %v2466_v62 = vpop.permute.xlu1 %2465 }
 0xa19   :  { %5290 = vmatmul.mubr.bf16.gmra.mrb[44].mxu0 %v7023_v49  ;;  %v2470_v14 = vmul.f32 %v6835_v58, %v2466_v62 }
 0xa1a   :  { %5293 = vmatprep.mubr.msk.bf16.mxu0 %vm5614_vm10, %v8003_v3  ;;  %5334 = vmatpush3.bf16.msra.mxu0 %v5517_v51  ;;  %v5522_v51 = vld [vmem:[%s7822_s9 + $0x38] sm:$0xff]   ;;  %v2472_v45 = vpop.permute.xlu0 %2471  ;;  %s5626_s9 = smov 125  }
 0xa1b   :  { %5335 = vmatprep.subr.bf16.mxu0 %v8003_v3  ;;  %v7053_v5 = vpack.c.bf16 %v2470_v14, %v2469_v4 }
 0xa1c   :  { %v2474_v58 = vpop.permute.xlu1 %2473 }
 0xa1d   :  { %v2478_v47 = vmul.f32 %v6844_v34, %v2474_v58 }
 0xa1e   :  { %5336 = vmatpush3.bf16.msra.mxu0 %v5518_v59  ;;  %v2477_v59 = vmul.f32 %v6844_v34, %v2472_v45 }
 0xa1f   :  { %5337 = vmatprep.subr.bf16.mxu0 %v8003_v3 }
 0xa20   :  { %v7069_v53 = vpack.c.bf16 %v2478_v47, %v2477_v59  ;;  %v2482_v17 = vpop.permute.xlu1 %2481 }
 0xa21   :  { %5294 = vmatmul.mubr.bf16.gmra.mrb[48].mxu0 %v7038_v15  ;;  %v2486_v62 = vmul.f32 %v6855_v32, %v2482_v17 }
 0xa22   :  { %5297 = vmatprep.mubr.msk.bf16.mxu0 %vm5614_vm10, %v8003_v3  ;;  %5338 = vmatpush3.bf16.msra.mxu0 %v5519_v30  ;;  %v2480_v30 = vpop.permute.xlu0 %2479 }
 0xa23   :  { %5339 = vmatprep.subr.bf16.mxu0 %v8003_v3  ;;  %v2485_v60 = vmul.f32 %v6855_v32, %v2480_v30 }
 0xa24   :  { %v2490_v14 = vpop.permute.xlu1 %2489 }
 0xa25   :  { %v2494_v34 = vmul.f32 %v6863_v35, %v2490_v14 }
 0xa26   :  { %5340 = vmatpush3.bf16.msra.mxu0 %v5520_v6  ;;  %v7076_v6 = vpack.c.bf16 %v2486_v62, %v2485_v60  ;;  %v2488_v4 = vpop.permute.xlu0 %2487 }
 0xa27   :  { %5341 = vmatprep.subr.bf16.mxu0 %v8003_v3 }
 0xa28   :  { %v2498_v58 = vpop.permute.xlu1 %2497 }
 0xa29   :  { %5298 = vmatmul.mubr.bf16.gmra.mrb[52].mxu0 %v7053_v5  ;;  %v2502_v32 = vmul.f32 %v6871_v37, %v2498_v58 }
 0xa2a   :  { %5301 = vmatprep.mubr.msk.bf16.mxu0 %vm5614_vm10, %v8003_v3  ;;  %5342 = vmatpush3.bf16.msra.mxu0 %v5521_v13  ;;  %v2493_v13 = vmul.f32 %v6863_v35, %v2488_v4  ;;  %v2496_v45 = vpop.permute.xlu0 %2495  ;;  %v5523_v35 = vld [vmem:[%s7815_s1 + $0x70] ss:$12 sps:$4 sm:$0xff]  }
 0xa2b   :  { %5343 = vmatprep.subr.bf16.mxu0 %v8003_v3  ;;  %v2501_v47 = vmul.f32 %v6871_v37, %v2496_v45  ;;  %4917 = vmatprep.mubr.msk.bf16.mxu1 %vm112_vm1, %v5523_v35 }
 0xa2d   :  { %v7090_v59 = vpack.c.bf16 %v2502_v32, %v2501_v47 }
 0xa2e   :  { %5344 = vmatpush3.bf16.msra.mxu0 %v5522_v51  ;;  %v7083_v51 = vpack.c.bf16 %v2494_v34, %v2493_v13 }
 0xa2f   :  { %5363 = vmatprep.subr.bf16.mxu0 %v8003_v3 }
 0xa31   :  { %5302 = vmatmul.mubr.bf16.gmra.mrb[56].mxu0 %v6976_v27 }
 0xa32   :  { %5305 = vmatprep.mubr.msk.bf16.mxu0 %vm5614_vm10, %v8003_v3 }
 0xa39   :  { %5306 = vmatmul.mubr.bf16.gmra.mrb[60].mxu0 %v7069_v53 }
 0xa3a   :  { %5309 = vmatprep.mubr.msk.bf16.mxu0 %vm5614_vm10, %v8003_v3 }
 0xa41   :  { %5310 = vmatmul.mubr.bf16.gmra.mrb[64].mxu0 %v7076_v6 }
 0xa42   :  { %5313 = vmatprep.mubr.msk.bf16.mxu0 %vm5614_vm10, %v8003_v3 }
 0xa49   :  { %5314 = vmatmul.mubr.bf16.gmra.mrb[68].mxu0 %v7083_v51 }
 0xa4a   :  { %5317 = vmatprep.mubr.msk.bf16.mxu0 %vm5614_vm10, %v8003_v3 }
 0xa51   :  { %5318 = vmatmul.mubr.bf16.gmra.mrb[72].mxu0 %v7090_v59 }
 0xa52   :  { %5345 = vmatprep.mubr.msk.bf16.mxu0 %vm5614_vm10, %v8003_v3 }
 0xa59   :  { %5346 = vmatmul.mubr.bf16.vlgmr.msra.gmra.mrb[76].mxu0 %v6976_v27 }
 0xa5a   :  { %5379 = vmatprep.mubr.msk.bf16.mxu0 %vm5614_vm10, %v8003_v3 }
 0xae4   :  { %v2610_v17 = vpop.f32.mrb[40].mxu0 }
 0xae5   :  { %v5287_v37 = vpop.f32.mrb[41].mxu0 }
 0xae6   :  { %v2613_v30 = vpop.f32.mrb[42].mxu0 }
 0xae7   :  { %v2681_v62 = vpack.c.bf16 %v2613_v30, %v2610_v17  ;;  %v5288_v60 = vpop.f32.mrb[43].mxu0 }
 0xae9   :  { %2735 = vmatpush1.bf16.msra.mxu1 %v2681_v62 }
 0xaea   :  { %2736 = vmatprep.subr.bf16.mxu1 %v7973_v52 }
 0xaec   :  { %v2618_v14 = vpop.f32.mrb[44].mxu0 }
 0xaed   :  { %v5291_v4 = vpop.f32.mrb[45].mxu0 }
 0xaee   :  { %v2621_v34 = vpop.f32.mrb[46].mxu0 }
 0xaef   :  { %v2682_v13 = vpack.c.bf16 %v2621_v34, %v2618_v14  ;;  %v5292_v58 = vpop.f32.mrb[47].mxu0 }
 0xaf1   :  { %2737 = vmatpush1.bf16.msra.mxu1 %v2682_v13 }
 0xaf2   :  { %2738 = vmatprep.subr.bf16.mxu1 %v7973_v52 }
 0xaf4   :  { %v2626_v45 = vpop.f32.mrb[48].mxu0 }
 0xaf5   :  { %v5295_v32 = vpop.f32.mrb[49].mxu0 }
 0xaf6   :  { %v2629_v47 = vpop.f32.mrb[50].mxu0 }
 0xaf7   :  { %v2683_v35 = vpack.c.bf16 %v2629_v47, %v2626_v45  ;;  %v5296_v36 = vpop.f32.mrb[51].mxu0 }
 0xaf9   :  { %2739 = vmatpush1.bf16.msra.mxu1 %v2683_v35 }
 0xafa   :  { %2740 = vmatprep.subr.bf16.mxu1 %v7973_v52 }
 0xafc   :  { %v2634_v17 = vpop.f32.mrb[52].mxu0 }
 0xafd   :  { %v5299_v37 = vpop.f32.mrb[53].mxu0 }
 0xafe   :  { %v2637_v30 = vpop.f32.mrb[54].mxu0 }
 0xaff   :  { %v2684_v62 = vpack.c.bf16 %v2637_v30, %v2634_v17  ;;  %v5300_v60 = vpop.f32.mrb[55].mxu0 }
 0xb01   :  { %2741 = vmatpush1.bf16.msra.mxu1 %v2684_v62 }
 0xb02   :  { %2742 = vmatprep.subr.bf16.mxu1 %v7973_v52 }
 0xb04   :  { %v2642_v14 = vpop.f32.mrb[56].mxu0 }
 0xb05   :  { %v5303_v4 = vpop.f32.mrb[57].mxu0 }
 0xb06   :  { %v2645_v34 = vpop.f32.mrb[58].mxu0 }
 0xb07   :  { %v2685_v13 = vpack.c.bf16 %v2645_v34, %v2642_v14  ;;  %v5304_v58 = vpop.f32.mrb[59].mxu0 }
 0xb09   :  { %2743 = vmatpush1.bf16.msra.mxu1 %v2685_v13 }
 0xb0a   :  { %2744 = vmatprep.subr.bf16.mxu1 %v7973_v52 }
 0xb0c   :  { %v2650_v36 = vpop.f32.mrb[60].mxu0 }
 0xb0d   :  { %v5307_v45 = vpop.f32.mrb[61].mxu0 }
 0xb0e   :  { %v2653_v32 = vpop.f32.mrb[62].mxu0 }
 0xb0f   :  { %v2686_v47 = vpack.c.bf16 %v2653_v32, %v2650_v36  ;;  %v5308_v35 = vpop.f32.mrb[63].mxu0 }
 0xb11   :  { %2745 = vmatpush1.bf16.msra.mxu1 %v2686_v47 }
 0xb12   :  { %2746 = vmatprep.subr.bf16.mxu1 %v7973_v52 }
 0xb14   :  { %v2658_v17 = vpop.f32.mrb[64].mxu0 }
 0xb15   :  { %v5311_v37 = vpop.f32.mrb[65].mxu0 }
 0xb16   :  { %v2661_v30 = vpop.f32.mrb[66].mxu0  ;;  %v5526_v37 = vld [vmem:[%s7815_s1 + $0x88] ss:$12 sps:$4 sm:$0xff]  }
 0xb17   :  { %v2687_v62 = vpack.c.bf16 %v2661_v30, %v2658_v17  ;;  %v5312_v60 = vpop.f32.mrb[67].mxu0  ;;  %v5525_v17 = vld [vmem:[%s7815_s1 + $0x6c] ss:$12 sps:$4 sm:$0xff]  }
 0xb19   :  { %2747 = vmatpush1.bf16.msra.mxu1 %v2687_v62 }
 0xb1a   :  { %2748 = vmatprep.subr.bf16.mxu1 %v7973_v52 }
 0xb1c   :  { %v2666_v14 = vpop.f32.mrb[68].mxu0 }
 0xb1d   :  { %v5315_v4 = vpop.f32.mrb[69].mxu0 }
 0xb1e   :  { %v2669_v34 = vpop.f32.mrb[70].mxu0 }
 0xb1f   :  { %v2688_v13 = vpack.c.bf16 %v2669_v34, %v2666_v14  ;;  %v5316_v58 = vpop.f32.mrb[71].mxu0  ;;  %v5528_v34 = vld [vmem:[%s7815_s1 + $0x84] ss:$12 sps:$4 sm:$0xff]  }
 0xb21   :  { %2749 = vmatpush1.bf16.msra.mxu1 %v2688_v13  ;;  %v2693_v13 = vpop.permute.xlu0 %2692 }
 0xb22   :  { %2750 = vmatprep.subr.bf16.mxu1 %v7973_v52 }
 0xb24   :  { %v2674_v36 = vpop.f32.mrb[72].mxu0 }
 0xb25   :  { %v5319_v45 = vpop.f32.mrb[73].mxu0 }
 0xb26   :  { %v2677_v32 = vpop.f32.mrb[74].mxu0 }
 0xb27   :  { %v2689_v47 = vpack.c.bf16 %v2677_v32, %v2674_v36  ;;  %v5320_v35 = vpop.f32.mrb[75].mxu0  ;;  %v2698_v32 = vpop.permute.xlu1 %2697 }
 0xb29   :  { %2751 = vmatpush1.bf16.msra.mxu1 %v2689_v47 }
 0xb2c   :  { %2767 = vmatmul.mubr.bf16.vlgmr.msra.gmra.mrb[40].mxu1 %v5525_v17  ;;  %v3385_v30 = vpop.f32.mrb[76].mxu0 }
 0xb2d   :  { %v5347_v62 = vpop.f32.mrb[77].mxu0  ;;  %4918 = vmatprep.mubr.msk.bf16.mxu1 %vm112_vm1, %v5526_v37 }
 0xb2e   :  { %v3388_v60 = vpop.f32.mrb[78].mxu0 }
 0xb2f   :  { %v7117_v14 = vpack.c.bf16 %v3388_v60, %v3385_v30  ;;  %v5348_v4 = vpop.f32.mrb[79].mxu0 }
 0xb34   :  { %2775 = vmatmul.mubr.bf16.gmra.mrb[44].mxu1 %v5528_v34 }
 0xbff   :  { %v2768_v58 = vpop.f32.mrb[40].mxu1 }
 0xc00   :  { %v2769_v36 = vadd.f32 %v2768_v58, %v2693_v13  ;;  %v2770_v45 = vpop.f32.mrb[41].mxu1 }
 0xc01   :  { %v2771_v47 = vpop.f32.mrb[42].mxu1  ;;  %v2703_v45 = vpop.permute.xlu0 %2702 }
 0xc02   :  { %vm2783_vm15 = vcmp.ge.f32.partialorder %v2769_v36, 0.0  ;;  %v2787_v35 = vmul.f32 0.01, %v2769_v36  ;;  %v2772_v17 = vadd.f32 %v2771_v47, %v2698_v32  ;;  %v2773_v62 = vpop.f32.mrb[43].mxu1  ;;  %v2708_v47 = vpop.permute.xlu1 %2707 }
 0xc04   :  { %v7122_v37 = vsel %vm2783_vm15, %v2769_v36, %v2787_v35  ;;  %vm2784_vm9 = vcmp.ge.f32.partialorder %v2772_v17, 0.0  ;;  %v2788_v30 = vmul.f32 0.01, %v2772_v17  ;;  %vm2986_vm15 = vcmask 252928  }
 0xc05   :  { %2811 = vrot.lane.b32.xlu0 %v7122_v37, %s5621_s26 }
 0xc06   :  { %v7126_v60 = vsel %vm2784_vm9, %v2772_v17, %v2788_v30  ;;  %vm2873_vm9 = vcmask 31744  }
 0xc07   :  { %v2776_v4 = vpop.f32.mrb[44].mxu1  ;;  %2813 = vrot.lane.b32.xlu1 %v7126_v60, %s5621_s26  ;;  %v3122_v34 = vpack.c.bf16 %v7126_v60, %v7122_v37 }
 0xc08   :  { %v2778_v13 = vpop.f32.mrb[45].mxu1  ;;  %v2777_v32 = vadd.f32 %v2776_v4, %v2703_v45  ;;  %v7222_v45 = vld [vmem:[%s7823_s5] ss:$0 sm:$0xff] }
 0xc09   :  { %v2779_v58 = vpop.f32.mrb[46].mxu1  ;;  %2823 = vrot.lane.b32.xlu0 %v7122_v37, %s5622_s22  ;;  %5167 = vmatprep.subr.bf16.mxu1 %v3122_v34  ;;  %v5531_v34 = vld [vmem:[%s7815_s1 + $0xa0] ss:$12 sps:$4 sm:$0xff]  }
 0xc0a   :  { %v2781_v36 = vpop.f32.mrb[47].mxu1  ;;  %v2780_v35 = vadd.f32 %v2779_v58, %v2708_v47  ;;  %v2789_v17 = vmul.f32 0.01, %v2777_v32  ;;  %vm2785_vm11 = vcmp.ge.f32.partialorder %v2777_v32, 0.0  ;;  %3221 = vmatprep.mubr.bf16.mxu1 %v5531_v34 }
 0xc0b   :  { %2825 = vrot.lane.b32.xlu1 %v7126_v60, %s5622_s22 }
 0xc0c   :  { %v2790_v62 = vmul.f32 0.01, %v2780_v35  ;;  %vm2786_vm13 = vcmp.ge.f32.partialorder %v2780_v35, 0.0  ;;  %v2793_v30 = vsel %vm2785_vm11, %v2777_v32, %v2789_v17  ;;  %vm3024_vm11 = vcmask 236544  }
 0xc0d   :  { %2962 = vrot.lane.b32.xlu0 %v7122_v37, %s5608_s24 }
 0xc0e   :  { %v2794_v4 = vsel %vm2786_vm13, %v2780_v35, %v2790_v62  ;;  %vm2911_vm13 = vcmask 23552  }
 0xc0f   :  { %2964 = vrot.lane.b32.xlu1 %v7126_v60, %s5608_s24  ;;  %v3123_v33 = vpack.c.bf16 %v2794_v4, %v2793_v30 }
 0xc11   :  { %2974 = vrot.lane.b32.xlu0 %v7122_v37, %s5623_s25 }
 0xc13   :  { %2976 = vrot.lane.b32.xlu1 %v7126_v60, %s5623_s25 }
 0xc15   :  { %2849 = vrot.lane.b32.xlu0 %v7122_v37, %s5624_s27 }
 0xc17   :  { %2851 = vrot.lane.b32.xlu1 %v7126_v60, %s5624_s27 }
 0xc19   :  { %2861 = vrot.lane.b32.xlu0 %v7122_v37, %s5625_s19 }
 0xc1b   :  { %2863 = vrot.lane.b32.xlu1 %v7126_v60, %s5625_s19 }
 0xc1d   :  { %3000 = vrot.lane.b32.xlu0 %v7122_v37, %s5626_s9 }
 0xc1f   :  { %3002 = vrot.lane.b32.xlu1 %v7126_v60, %s5626_s9 }
 0xc21   :  { %3012 = vrot.lane.b32.xlu0 %v7122_v37, %s5627_s7 }
 0xc23   :  { %3014 = vrot.lane.b32.xlu1 %v7126_v60, %s5627_s7 }
 0xc25   :  { %2887 = vrot.lane.b32.xlu0 %v7122_v37, %s5628_s30 }
 0xc27   :  { %2889 = vrot.lane.b32.xlu1 %v7126_v60, %s5628_s30 }
 0xc29   :  { %2899 = vrot.lane.b32.xlu0 %v7122_v37, %s5629_s6 }
 0xc2b   :  { %2901 = vrot.lane.b32.xlu1 %v7126_v60, %s5629_s6 }
 0xc2d   :  { %3038 = vrot.lane.b32.xlu0 %v7122_v37, %s5630_s16 }
 0xc2f   :  { %3040 = vrot.lane.b32.xlu1 %v7126_v60, %s5630_s16 }
 0xc31   :  { %3050 = vrot.lane.b32.xlu0 %v7122_v37, %s5631_s18 }
 0xc33   :  { %3052 = vrot.lane.b32.xlu1 %v7126_v60, %s5631_s18 }
 0xc35   :  { %2925 = vrot.lane.b32.xlu0 %v7122_v37, %s5632_s8 }
 0xc37   :  { %2927 = vrot.lane.b32.xlu1 %v7126_v60, %s5632_s8 }
 0xc39   :  { %2937 = vrot.lane.b32.xlu0 %v7122_v37, %s5607_s23 }
 0xc3b   :  { %2939 = vrot.lane.b32.xlu1 %v7126_v60, %s5607_s23 }
 0xc3d   :  { %2815 = vrot.lane.b32.xlu0 %v2793_v30, %s5621_s26 }
 0xc3f   :  { %2817 = vrot.lane.b32.xlu1 %v2794_v4, %s5621_s26 }
 0xc41   :  { %2827 = vrot.lane.b32.xlu0 %v2793_v30, %s5622_s22 }
 0xc43   :  { %2829 = vrot.lane.b32.xlu1 %v2794_v4, %s5622_s22  ;;  %s5633_s22 = smov 123  }
 0xc45   :  { %2966 = vrot.lane.b32.xlu0 %v2793_v30, %s5608_s24 }
 0xc47   :  { %2968 = vrot.lane.b32.xlu1 %v2794_v4, %s5608_s24 }
 0xc49   :  { %2978 = vrot.lane.b32.xlu0 %v2793_v30, %s5623_s25 }
 0xc4b   :  { %2980 = vrot.lane.b32.xlu1 %v2794_v4, %s5623_s25  ;;  %s5634_s25 = smov 27  }
 0xc4d   :  { %2853 = vrot.lane.b32.xlu0 %v2793_v30, %s5624_s27 }
 0xc4f   :  { %2855 = vrot.lane.b32.xlu1 %v2794_v4, %s5624_s27 }
 0xc51   :  { %2865 = vrot.lane.b32.xlu0 %v2793_v30, %s5625_s19 }
 0xc53   :  { %2867 = vrot.lane.b32.xlu1 %v2794_v4, %s5625_s19 }
 0xc55   :  { %3004 = vrot.lane.b32.xlu0 %v2793_v30, %s5626_s9 }
 0xc57   :  { %3006 = vrot.lane.b32.xlu1 %v2794_v4, %s5626_s9 }
 0xc59   :  { %3016 = vrot.lane.b32.xlu0 %v2793_v30, %s5627_s7 }
 0xc5b   :  { %3018 = vrot.lane.b32.xlu1 %v2794_v4, %s5627_s7  ;;  %s8008_s7 = smov 113  }
 0xc5d   :  { %2891 = vrot.lane.b32.xlu0 %v2793_v30, %s5628_s30 }
 0xc5f   :  { %2893 = vrot.lane.b32.xlu1 %v2794_v4, %s5628_s30  ;;  %s8009_s30 = smov 16  }
 0xc61   :  { %2903 = vrot.lane.b32.xlu0 %v2793_v30, %s5629_s6 }
 0xc63   :  { %2905 = vrot.lane.b32.xlu1 %v2794_v4, %s5629_s6  ;;  %s8012_s6 = smov 111  }
 0xc65   :  { %3042 = vrot.lane.b32.xlu0 %v2793_v30, %s5630_s16 }
 0xc67   :  { %3044 = vrot.lane.b32.xlu1 %v2794_v4, %s5630_s16 }
 0xc69   :  { %3054 = vrot.lane.b32.xlu0 %v2793_v30, %s5631_s18 }
 0xc6b   :  { %3056 = vrot.lane.b32.xlu1 %v2794_v4, %s5631_s18 }
 0xc6d   :  { %2929 = vrot.lane.b32.xlu0 %v2793_v30, %s5632_s8 }
 0xc6f   :  { %2931 = vrot.lane.b32.xlu1 %v2794_v4, %s5632_s8 }
 0xc71   :  { %2941 = vrot.lane.b32.xlu0 %v2793_v30, %s5607_s23 }
 0xc73   :  { %2943 = vrot.lane.b32.xlu1 %v2794_v4, %s5607_s23 }
 0xc75   :  { %3076 = vrot.lane.b32.xlu0 %v7122_v37, %s5633_s22 }
 0xc77   :  { %3078 = vrot.lane.b32.xlu1 %v7126_v60, %s5633_s22  ;;  %v2812_v13 = vpop.permute.xlu0 %2811 }
 0xc79   :  { %v2814_v58 = vpop.permute.xlu1 %2813  ;;  %3088 = vrot.lane.b32.xlu0 %v7122_v37, %s5634_s25 }
 0xc7b   :  { %3090 = vrot.lane.b32.xlu1 %v7126_v60, %s5634_s25  ;;  %v2824_v36 = vpop.permute.xlu0 %2823 }
 0xc7c   :  { %v2836_v32 = vsel %vm2835_vm14, %v2812_v13, %v2824_v36 }
 0xc7d   :  { %v2826_v47 = vpop.permute.xlu1 %2825  ;;  %3080 = vrot.lane.b32.xlu0 %v2793_v30, %s5633_s22  ;;  %v2845_v17 = vmul.f32 %v7222_v45, %v2836_v32  ;;  %v2805_v32 = vld [vmem:[%s7816_s2 + $0x78] sm:$0xff] }
 0xc7e   :  { %v2837_v35 = vsel %vm2835_vm14, %v2814_v58, %v2826_v47  ;;  %v2804_v58 = vld [vmem:[%s7816_s2 + $0x70] sm:$0xff]  ;;  %v2806_v47 = vld [vmem:[%s7816_s2 + $0x80] sm:$0xff] }
 0xc7f   :  { %v2846_v62 = vmul.f32 %v7222_v45, %v2837_v35  ;;  %3082 = vrot.lane.b32.xlu1 %v2794_v4, %s5633_s22  ;;  %v2963_v37 = vpop.permute.xlu0 %2962 }
 0xc81   :  { %v3114_v34 = vpack.c.bf16 %v2846_v62, %v2845_v17  ;;  %v2965_v60 = vpop.permute.xlu1 %2964  ;;  %3092 = vrot.lane.b32.xlu0 %v2793_v30, %s5634_s25 }
 0xc83   :  { %3094 = vrot.lane.b32.xlu1 %v2794_v4, %s5634_s25  ;;  %v2975_v13 = vpop.permute.xlu0 %2974  ;;  %5168 = vmatpush3.bf16.msra.mxu1 %v3114_v34 }
 0xc84   :  { %5169 = vmatprep.subr.bf16.mxu1 %v3123_v33  ;;  %v3480_v33 = vld [vmem:[%s7816_s2 + $0xa8] sm:$0xff]  ;;  %v2987_v54 = vsel %vm2986_vm15, %v2963_v37, %v2975_v13 }
 0xc85   :  { %v2977_v36 = vpop.permute.xlu1 %2976  ;;  %3134 = vperm.xlu0 %5436, %v2803_v26   ;;  %v3481_v26 = vld [vmem:[%s7816_s2 + $0xb0] sm:$0xff]  ;;  %v2996_v56 = vmul.f32 %v4923_v16, %v2987_v54 }
 0xc86   :  { %v2988_v8 = vsel %vm2986_vm15, %v2965_v60, %v2977_v36 }
 0xc87   :  { %3139 = vperm.xlu1 %5437, %v2804_v58   ;;  %v2850_v30 = vpop.permute.xlu0 %2849  ;;  %v2997_v61 = vmul.f32 %v4923_v16, %v2988_v8 }
 0xc89   :  { %v2852_v4 = vpop.permute.xlu1 %2851  ;;  %3144 = vperm.xlu0 %5436, %v2805_v32   ;;  %v3124_v8 = vpack.c.bf16 %v2997_v61, %v2996_v56 }
 0xc8b   :  { %3149 = vperm.xlu1 %5437, %v2806_v47   ;;  %v2862_v35 = vpop.permute.xlu0 %2861 }
 0xc8d   :  { %v2864_v17 = vpop.permute.xlu1 %2863  ;;  %3601 = vperm.xlu0 %5436, %v3480_v33  }
 0xc8e   :  { %v2875_v57 = vsel %vm2873_vm9, %v2852_v4, %v2864_v17 }
 0xc8f   :  { %3606 = vperm.xlu1 %5437, %v3481_v26   ;;  %v3001_v62 = vpop.permute.xlu0 %3000 }
 0xc91   :  { %v3003_v34 = vpop.permute.xlu1 %3002 }
 0xc93   :  { %v3013_v58 = vpop.permute.xlu0 %3012 }
 0xc95   :  { %v3015_v38 = vpop.permute.xlu1 %3014 }
 0xc97   :  { %v7246_v2 = vpop.permute.xlu0 %2887 }
 0xc99   :  { %v2890_v32 = vpop.permute.xlu1 %2889 }
 0xc9b   :  { %v7248_v18 = vpop.permute.xlu0 %2899 }
 0xc9d   :  { %v2902_v1 = vpop.permute.xlu1 %2901 }
 0xc9f   :  { %v7250_v0 = vpop.permute.xlu0 %3038 }
 0xca1   :  { %v7252_v47 = vpop.permute.xlu1 %3040 }
 0xca3   :  { %v7254_v48 = vpop.permute.xlu0 %3050 }
 0xca5   :  { %v7256_v43 = vpop.permute.xlu1 %3052 }
 0xca7   :  { %v7258_v33 = vpop.permute.xlu0 %2925 }
 0xca9   :  { %v7260_v26 = vpop.permute.xlu1 %2927 }
 0xcab   :  { %v7262_v55 = vpop.permute.xlu0 %2937 }
 0xcad   :  { %v7264_v11 = vpop.permute.xlu1 %2939 }
 0xcaf   :  { %v2816_v24 = vpop.permute.xlu0 %2815 }
 0xcb1   :  { %v2818_v39 = vpop.permute.xlu1 %2817 }
 0xcb3   :  { %v2828_v7 = vpop.permute.xlu0 %2827 }
 0xcb4   :  { %v2838_v63 = vsel %vm2835_vm14, %v2816_v24, %v2828_v7  ;;  %v4920_v7 = vld [vmem:[%s7823_s5 + $0x1] ss:$0 sm:$0xff]  ;;  %v2874_v24 = vsel %vm2873_vm9, %v2850_v30, %v2862_v35  ;;  %v2913_v35 = vsel %vm2911_vm13, %v2890_v32, %v2902_v1 }
 0xcb5   :  { %v2830_v12 = vpop.permute.xlu1 %2829  ;;  %v2847_v19 = vmul.f32 %v7222_v45, %v2838_v63  ;;  %v2884_v37 = vmul.f32 %v4920_v7, %v2875_v57  ;;  %v2883_v29 = vmul.f32 %v4920_v7, %v2874_v24  ;;  %v3026_v57 = vsel %vm3024_vm11, %v3003_v34, %v3015_v38 }
 0xcb6   :  { %v2839_v9 = vsel %vm2835_vm14, %v2818_v39, %v2830_v12  ;;  %vm3062_vm14 = vcmask 228352  }
 0xcb7   :  { %v2848_v60 = vmul.f32 %v7222_v45, %v2839_v9  ;;  %v2967_v36 = vpop.permute.xlu0 %2966  ;;  %v3116_v63 = vpack.c.bf16 %v2884_v37, %v2883_v29  ;;  %v4924_v29 = vld [vmem:[%s7823_s5 + $0x6] ss:$0 sm:$0xff]  ;;  %v4921_v37 = vld [vmem:[%s7823_s5 + $0x2] ss:$0 sm:$0xff] }
 0xcb9   :  { %v3115_v13 = vpack.c.bf16 %v2848_v60, %v2847_v19  ;;  %v2969_v40 = vpop.permute.xlu1 %2968  ;;  %v3025_v19 = vsel %vm3024_vm11, %v3001_v62, %v3013_v58  ;;  %v2922_v62 = vmul.f32 %v4921_v37, %v2913_v35 }
 0xcba   :  { %v3034_v34 = vmul.f32 %v4924_v29, %v3025_v19  ;;  %v2950_v19 = vsel %vm202_vm2, %v7260_v26, %v7264_v11 }
 0xcbb   :  { %v2979_v4 = vpop.permute.xlu0 %2978  ;;  %5170 = vmatpush3.bf16.msra.mxu1 %v3115_v13  ;;  %v2912_v13 = vsel %vm2911_vm13, %v7246_v2, %v7248_v18  ;;  %v3064_v18 = vsel %vm3062_vm14, %v7252_v47, %v7256_v43 }
 0xcbc   :  { %v2989_v12 = vsel %vm2986_vm15, %v2967_v36, %v2979_v4  ;;  %5171 = vmatprep.subr.bf16.mxu1 %v3124_v8 }
 0xcbd   :  { %v2981_v9 = vpop.permute.xlu1 %2980  ;;  %v2998_v39 = vmul.f32 %v4923_v16, %v2989_v12  ;;  %v2921_v12 = vmul.f32 %v4921_v37, %v2912_v13 }
 0xcbe   :  { %v2990_v54 = vsel %vm2986_vm15, %v2969_v40, %v2981_v9  ;;  %vm3100_vm15 = vcmask 220160  }
 0xcbf   :  { %v2999_v45 = vmul.f32 %v4923_v16, %v2990_v54  ;;  %v2854_v17 = vpop.permute.xlu0 %2853  ;;  %5172 = vmatpush3.bf16.msra.mxu1 %v3116_v63  ;;  %v3035_v16 = vmul.f32 %v4924_v29, %v3026_v57  ;;  %v3118_v32 = vpack.c.bf16 %v2922_v62, %v2921_v12  ;;  %v4925_v57 = vld [vmem:[%s7823_s5 + $0x7] ss:$0 sm:$0xff] }
 0xcc1   :  { %v2856_v23 = vpop.permute.xlu1 %2855  ;;  %v3125_v30 = vpack.c.bf16 %v2999_v45, %v2998_v39  ;;  %v3126_v4 = vpack.c.bf16 %v3035_v16, %v3034_v34 }
 0xcc3   :  { %v2866_v56 = vpop.permute.xlu0 %2865  ;;  %5173 = vmatprep.subr.bf16.mxu1 %v3125_v30 }
 0xcc4   :  { %v2876_v61 = vsel %vm2873_vm9, %v2854_v17, %v2866_v56  ;;  %v3063_v56 = vsel %vm3062_vm14, %v7250_v0, %v7254_v48  ;;  %v2949_v48 = vsel %vm202_vm2, %v7258_v33, %v7262_v55 }
 0xcc5   :  { %v2868_v40 = vpop.permute.xlu1 %2867  ;;  %v2885_v36 = vmul.f32 %v4920_v7, %v2876_v61  ;;  %v3072_v35 = vmul.f32 %v4925_v57, %v3063_v56 }
 0xcc6   :  { %v2877_v60 = vsel %vm2873_vm9, %v2856_v23, %v2868_v40  ;;  %vm3182_vm9 = vcmask 261120  }
 0xcc7   :  { %v2886_v24 = vmul.f32 %v4920_v7, %v2877_v60  ;;  %v3005_v38 = vpop.permute.xlu0 %3004  ;;  %v4922_v60 = vld [vmem:[%s7823_s5 + $0x3] ss:$0 sm:$0xff] }
 0xcc8   :  { %v2959_v0 = vmul.f32 %v4922_v60, %v2950_v19  ;;  %v2958_v34 = vmul.f32 %v4922_v60, %v2949_v48 }
 0xcc9   :  { %v3117_v58 = vpack.c.bf16 %v2886_v24, %v2885_v36  ;;  %v3007_v8 = vpop.permute.xlu1 %3006 }
 0xccb   :  { %v3017_v1 = vpop.permute.xlu0 %3016  ;;  %5174 = vmatpush3.bf16.msra.mxu1 %v3117_v58 }
 0xccc   :  { %v3027_v23 = vsel %vm3024_vm11, %v3005_v38, %v3017_v1  ;;  %5175 = vmatprep.subr.bf16.mxu1 %v3126_v4 }
 0xccd   :  { %v3019_v7 = vpop.permute.xlu1 %3018  ;;  %v3036_v9 = vmul.f32 %v4924_v29, %v3027_v23 }
 0xcce   :  { %v3028_v63 = vsel %vm3024_vm11, %v3007_v8, %v3019_v7 }
 0xccf   :  { %v3037_v54 = vmul.f32 %v4924_v29, %v3028_v63  ;;  %v2892_v39 = vpop.permute.xlu0 %2891  ;;  %5176 = vmatpush3.bf16.msra.mxu1 %v3118_v32  ;;  %v3073_v29 = vmul.f32 %v4925_v57, %v3064_v18  ;;  %v5532_v18 = vld [vmem:[%s7815_s1 + $0xb8] ss:$12 sps:$4 sm:$0xff]  }
 0xcd1   :  { %v2894_v45 = vpop.permute.xlu1 %2893  ;;  %v3127_v2 = vpack.c.bf16 %v3037_v54, %v3036_v9  ;;  %v3128_v38 = vpack.c.bf16 %v3073_v29, %v3072_v35  ;;  %v5535_v35 = vld [vmem:[%s7815_s1 + $0xa4] ss:$12 sps:$4 sm:$0xff]  }
 0xcd3   :  { %v2904_v17 = vpop.permute.xlu0 %2903  ;;  %5177 = vmatprep.subr.bf16.mxu1 %v3127_v2 }
 0xcd4   :  { %v2914_v30 = vsel %vm2911_vm13, %v2892_v39, %v2904_v17  ;;  %v4926_v17 = vld [vmem:[%s7823_s5 + $0x8] ss:$0 sm:$0xff] }
 0xcd5   :  { %v2906_v61 = vpop.permute.xlu1 %2905  ;;  %v2923_v47 = vmul.f32 %v4921_v37, %v2914_v30 }
 0xcd6   :  { %v2915_v43 = vsel %vm2911_vm13, %v2894_v45, %v2906_v61  ;;  %v5529_v45 = vld [vmem:[%s7815_s1 + $0x9c] ss:$12 sps:$4 sm:$0xff]  }
 0xcd7   :  { %v2924_v40 = vmul.f32 %v4921_v37, %v2915_v43  ;;  %v3043_v16 = vpop.permute.xlu0 %3042  ;;  %v3120_v37 = vpack.c.bf16 %v2959_v0, %v2958_v34  ;;  %v5536_v34 = vld [vmem:[%s7815_s1 + $0xbc] ss:$12 sps:$4 sm:$0xff]  }
 0xcd9   :  { %v3119_v36 = vpack.c.bf16 %v2924_v40, %v2923_v47  ;;  %v3045_v24 = vpop.permute.xlu1 %3044  ;;  %v5534_v40 = vld [vmem:[%s7815_s1 + $0xb4] ss:$12 sps:$4 sm:$0xff]  }
 0xcdb   :  { %v3055_v11 = vpop.permute.xlu0 %3054  ;;  %5178 = vmatpush3.bf16.msra.mxu1 %v3119_v36 }
 0xcdc   :  { %v3065_v26 = vsel %vm3062_vm14, %v3043_v16, %v3055_v11  ;;  %5179 = vmatprep.subr.bf16.mxu1 %v3128_v38  ;;  %v5537_v11 = vld [vmem:[%s7815_s1 + $0xcc] ss:$12 sps:$4 sm:$0xff]  }
 0xcdd   :  { %v3057_v13 = vpop.permute.xlu1 %3056  ;;  %v3074_v58 = vmul.f32 %v4925_v57, %v3065_v26  ;;  %v5538_v26 = vld [vmem:[%s7815_s1 + $0xe4] ss:$12 sps:$4 sm:$0xff]  }
 0xcde   :  { %v3066_v62 = vsel %vm3062_vm14, %v3045_v24, %v3057_v13  ;;  %v5540_v13 = vld [vmem:[%s7824_s10 + $0x8] sm:$0xff]  }
 0xcdf   :  { %v3075_v8 = vmul.f32 %v4925_v57, %v3066_v62  ;;  %v2930_v4 = vpop.permute.xlu0 %2929  ;;  %5180 = vmatpush3.bf16.msra.mxu1 %v3120_v37  ;;  %v5539_v37 = vld [vmem:[%s7824_s10] sm:$0xff]  }
 0xce1   :  { %v2932_v12 = vpop.permute.xlu1 %2931  ;;  %v3129_v55 = vpack.c.bf16 %v3075_v8, %v3074_v58 }
 0xce3   :  { %v2942_v33 = vpop.permute.xlu0 %2941  ;;  %5181 = vmatprep.subr.bf16.mxu1 %v3129_v55 }
 0xce4   :  { %v2951_v1 = vsel %vm202_vm2, %v2930_v4, %v2942_v33 }
 0xce5   :  { %v2944_v23 = vpop.permute.xlu1 %2943  ;;  %v2960_v7 = vmul.f32 %v4922_v60, %v2951_v1 }
 0xce6   :  { %v2952_v32 = vsel %vm202_vm2, %v2932_v12, %v2944_v23 }
 0xce7   :  { %v2961_v63 = vmul.f32 %v4922_v60, %v2952_v32  ;;  %v3077_v9 = vpop.permute.xlu0 %3076 }
 0xce9   :  { %v3121_v54 = vpack.c.bf16 %v2961_v63, %v2960_v7  ;;  %v3079_v39 = vpop.permute.xlu1 %3078 }
 0xceb   :  { %v3089_v2 = vpop.permute.xlu0 %3088  ;;  %5182 = vmatpush3.bf16.msra.mxu1 %v3121_v54 }
 0xcec   :  { %v3101_v30 = vsel %vm3100_vm15, %v3077_v9, %v3089_v2 }
 0xced   :  { %v3091_v57 = vpop.permute.xlu1 %3090  ;;  %v3110_v61 = vmul.f32 %v4926_v17, %v3101_v30 }
 0xcee   :  { %v3102_v56 = vsel %vm3100_vm15, %v3079_v39, %v3091_v57  ;;  %3222 = vmatmul.mubr.bf16.vlgmr.msra.gmra.mrb[48].mxu1 %v5529_v45 }
 0xcef   :  { %v3111_v29 = vmul.f32 %v4926_v17, %v3102_v56  ;;  %v3081_v19 = vpop.permute.xlu0 %3080  ;;  %3229 = vmatprep.mubr.bf16.mxu1 %v5532_v18 }
 0xcf1   :  { %v3083_v43 = vpop.permute.xlu1 %3082  ;;  %v3130_v47 = vpack.c.bf16 %v3111_v29, %v3110_v61 }
 0xcf3   :  { %v3093_v16 = vpop.permute.xlu0 %3092  ;;  %5321 = vmatprep.subr.bf16.mxu1 %v3130_v47 }
 0xcf4   :  { %v3103_v60 = vsel %vm3100_vm15, %v3081_v19, %v3093_v16  ;;  %5322 = vmatpush3.bf16.msra.mxu1 %v3130_v47 }
 0xcf5   :  { %v3095_v48 = vpop.permute.xlu1 %3094  ;;  %v3112_v36 = vmul.f32 %v4926_v17, %v3103_v60 }
 0xcf6   :  { %v3104_v0 = vsel %vm3100_vm15, %v3083_v43, %v3095_v48  ;;  %3230 = vmatmul.mubr.bf16.gmra.mrb[52].mxu1 %v5534_v40 }
 0xcf7   :  { %v3113_v24 = vmul.f32 %v4926_v17, %v3104_v0  ;;  %5325 = vmatprep.mubr.msk.bf16.mxu1 %vm3182_vm9, %v5535_v35 }
 0xcf9   :  { %v3131_v38 = vpack.c.bf16 %v3113_v24, %v3112_v36 }
 0xcfb   :  { %5323 = vmatprep.subr.bf16.mxu1 %v3131_v38 }
 0xcfc   :  { %5324 = vmatpush3.bf16.msra.mxu1 %v3131_v38 }
 0xcfd   :  { %5349 = vmatprep.subr.bf16.mxu1 %v7117_v14 }
 0xcff   :  { %5326 = vmatmul.mubr.msk.bf16.vlgmr.msra.gmra.mrb[56].mxu1 %vm3182_vm9, %v5536_v34 }
 0xd00   :  { %5350 = vmatpush3.bf16.msra.mxu1 %v7117_v14  ;;  %5351 = vmatprep.mubr.msk.bf16.mxu1 %vm112_vm1, %v5537_v11  ;;  %v4951_v11 = vld [vmem:[%s7825_s12] ss:$0 sm:$0xff] }
 0xd01   :  { %5355 = vmatprep.subr.bf16.mxu1 %v5539_v37 }
 0xd04   :  { %v3135_v63 = vpop.permute.xlu0 %3134 }
 0xd06   :  { %v3140_v9 = vpop.permute.xlu1 %3139 }
 0xd08   :  { %v3145_v54 = vpop.permute.xlu0 %3144 }
 0xd0a   :  { %v3150_v45 = vpop.permute.xlu1 %3149 }
 0xd0b   :  { %5352 = vmatmul.mubr.msk.bf16.vlgmr.msra.gmra.mrb[56].mxu1 %vm112_vm1, %v5538_v26  ;;  %v4952_v26 = vld [vmem:[%s7825_s12 + $0x1] ss:$0 sm:$0xff] }
 0xd0c   :  { %5356 = vmatpush3.bf16.msra.mxu1 %v5539_v37  ;;  %v4953_v37 = vld [vmem:[%s7825_s12 + $0x2] ss:$0 sm:$0xff] }
 0xd0d   :  { %5357 = vmatprep.subr.bf16.mxu1 %v5540_v13 }
 0xd10   :  { %5358 = vmatpush3.bf16.msra.mxu1 %v5540_v13  ;;  %v4954_v13 = vld [vmem:[%s7825_s12 + $0x3] ss:$0 sm:$0xff] }
 0xdc1   :  { %v5183_v14 = vpop.f32.mrb[48].mxu1 }
 0xdc2   :  { %v5184_v62 = vpop.f32.mrb[49].mxu1 }
 0xdc3   :  { %v5185_v58 = vadd.f32 %v5184_v62, %v5183_v14  ;;  %v5186_v8 = vpop.f32.mrb[50].mxu1 }
 0xdc4   :  { %v5187_v4 = vpop.f32.mrb[51].mxu1 }
 0xdc5   :  { %v5188_v12 = vadd.f32 %v5187_v4, %v5186_v8  ;;  %v3224_v18 = vadd.f32 %v5185_v58, %v3135_v63 }
 0xdc7   :  { %v3227_v29 = vadd.f32 %v5188_v12, %v3140_v9 }
 0xdc9   :  { %v5189_v55 = vpop.f32.mrb[52].mxu1 }
 0xdca   :  { %v5190_v33 = vpop.f32.mrb[53].mxu1 }
 0xdcb   :  { %v5191_v1 = vadd.f32 %v5190_v33, %v5189_v55  ;;  %v5192_v23 = vpop.f32.mrb[54].mxu1 }
 0xdcc   :  { %v5193_v32 = vpop.f32.mrb[55].mxu1 }
 0xdcd   :  { %v5194_v7 = vadd.f32 %v5193_v32, %v5192_v23  ;;  %v3232_v39 = vadd.f32 %v5191_v1, %v3145_v54 }
 0xdcf   :  { %v3235_v57 = vadd.f32 %v5194_v7, %v3150_v45 }
 0xdde   :  { %v5353_v2 = vpop.f32.mrb[56].mxu1 }
 0xddf   :  { %v5393_v17 = vadd.f32 %v5353_v2, %v3232_v39  ;;  %v3447_v30 = vpop.f32.mrb[57].mxu1 }
 0xde0   :  { %v5394_v56 = vadd.f32 %v3447_v30, %v3224_v18  ;;  %v5354_v61 = vpop.f32.mrb[58].mxu1 }
 0xde1   :  { %v3472_v19 = vmul.f32 0.01, %v5393_v17  ;;  %v5395_v43 = vadd.f32 %v5354_v61, %v3235_v57  ;;  %v3450_v47 = vpop.f32.mrb[59].mxu1  ;;  %vm3468_vm11 = vcmp.ge.f32.partialorder %v5393_v17, 0.0 }
 0xde2   :  { %v3470_v40 = vmul.f32 0.01, %v5394_v56  ;;  %v5396_v16 = vadd.f32 %v3450_v47, %v3227_v29  ;;  %vm3466_vm13 = vcmp.ge.f32.partialorder %v5394_v56, 0.0 }
 0xde3   :  { %vm3469_vm14 = vcmp.ge.f32.partialorder %v5395_v43, 0.0  ;;  %v3473_v35 = vmul.f32 0.01, %v5395_v43  ;;  %v3476_v48 = vsel %vm3468_vm11, %v5393_v17, %v3472_v19  ;;  %vm4278_vm11 = vcmask 523264  }
 0xde4   :  { %vm3467_vm15 = vcmp.ge.f32.partialorder %v5396_v16, 0.0  ;;  %v3471_v60 = vmul.f32 0.01, %v5396_v16  ;;  %v3474_v36 = vsel %vm3466_vm13, %v5394_v56, %v3470_v40  ;;  %v5541_v40 = vld [vmem:[%s7815_s1 + $0xfc] ss:$12 sps:$4 sm:$0xff]  }
 0xde5   :  { %v3477_v0 = vsel %vm3469_vm14, %v5395_v43, %v3473_v35 }
 0xde6   :  { %v3483_v24 = vpack.c.bf16 %v3477_v0, %v3476_v48  ;;  %v3475_v38 = vsel %vm3467_vm15, %v5396_v16, %v3471_v60  ;;  %v3602_v16 = vpop.permute.xlu0 %3601  ;;  %v3607_v0 = vpop.permute.xlu1 %3606 }
 0xde7   :  { %v3482_v34 = vpack.c.bf16 %v3475_v38, %v3474_v36 }
 0xde9   :  { %5359 = vmatprep.mubr.msk.bf16.mxu1 %vm3182_vm9, %v3482_v34 }
 0xdea   :  { %5360 = vmatmul.mubr.msk.bf16.vlgmr.msra.gmra.mrb[60].mxu1 %vm3182_vm9, %v3483_v24 }
 0xebd   :  { %v5361_v14 = vpop.f32.mrb[60].mxu1 }
 0xebe   :  { %v3562_v62 = vmul.f32 %v5361_v14, %v4951_v11  ;;  %v3571_v58 = vmul.f32 %v5361_v14, %v4952_v26  ;;  %v3580_v8 = vmul.f32 %v5361_v14, %v4953_v37  ;;  %v3589_v4 = vmul.f32 %v5361_v14, %v4954_v13  ;;  %v3540_v12 = vpop.f32.mrb[61].mxu1 }
 0xebf   :  { %v3560_v55 = vmul.f32 %v4951_v11, %v3540_v12  ;;  %v3569_v33 = vmul.f32 %v4952_v26, %v3540_v12  ;;  %v3578_v1 = vmul.f32 %v4953_v37, %v3540_v12  ;;  %v3587_v23 = vmul.f32 %v4954_v13, %v3540_v12  ;;  %v5362_v32 = vpop.f32.mrb[62].mxu1 }
 0xec0   :  { %v3563_v7 = vmul.f32 %v5362_v32, %v4951_v11  ;;  %v3572_v63 = vmul.f32 %v5362_v32, %v4952_v26  ;;  %v3581_v9 = vmul.f32 %v5362_v32, %v4953_v37  ;;  %v3590_v54 = vmul.f32 %v5362_v32, %v4954_v13  ;;  %v3543_v39 = vpop.f32.mrb[63].mxu1 }
 0xec1   :  { %v3561_v45 = vmul.f32 %v4951_v11, %v3543_v39  ;;  %v3570_v2 = vmul.f32 %v4952_v26, %v3543_v39  ;;  %v3579_v18 = vmul.f32 %v4953_v37, %v3543_v39  ;;  %v3588_v17 = vmul.f32 %v4954_v13, %v3543_v39  ;;  %v5544_v11 = vld [vmem:[%s7815_s1 + $0x118] ss:$12 sps:$4 sm:$0xff]   ;;  %v3854_v13 = vld [vmem:[%s7816_s2 + $0xc8] sm:$0xff] }
 0xec2   :  { %v3592_v30 = vpack.c.bf16 %v3563_v7, %v3562_v62  ;;  %v3594_v57 = vpack.c.bf16 %v3572_v63, %v3571_v58  ;;  %v3596_v56 = vpack.c.bf16 %v3581_v9, %v3580_v8  ;;  %v3598_v61 = vpack.c.bf16 %v3590_v54, %v3589_v4  ;;  %3797 = vmatprep.mubr.bf16.mxu1 %v5544_v11  ;;  %v3660_v26 = vld [vmem:[%s7816_s2 + $0xb8] sm:$0xff]  ;;  %v3661_v37 = vld [vmem:[%s7816_s2 + $0xc0] sm:$0xff] }
 0xec3   :  { %v3591_v29 = vpack.c.bf16 %v3561_v45, %v3560_v55  ;;  %v3593_v19 = vpack.c.bf16 %v3570_v2, %v3569_v33  ;;  %v3595_v43 = vpack.c.bf16 %v3579_v18, %v3578_v1  ;;  %v3597_v47 = vpack.c.bf16 %v3588_v17, %v3587_v23  ;;  %v5596_v58 = vld [vmem:[%s7820_s4] ss:$0 sm:$0xff]  ;;  %v5597_v1 = vld [vmem:[%s7820_s4 + $0x5] ss:$0 sm:$0xff]  ;;  %v5598_v54 = vld [vmem:[%s7820_s4 + $0x1] ss:$0 sm:$0xff] }
 0xec5   :  { %5364 = vmatpush3.bf16.msra.mxu0 %v3591_v29 }
 0xec6   :  { %5365 = vmatprep.subr.bf16.mxu0 %v8003_v3 }
 0xec9   :  { %5366 = vmatpush3.bf16.msra.mxu0 %v3592_v30  ;;  %v5599_v30 = vld [vmem:[%s7820_s4 + $0x6] ss:$0 sm:$0xff] }
 0xeca   :  { %5367 = vmatprep.subr.bf16.mxu0 %v8003_v3 }
 0xecd   :  { %5368 = vmatpush3.bf16.msra.mxu0 %v3593_v19 }
 0xece   :  { %5369 = vmatprep.subr.bf16.mxu0 %v8003_v3 }
 0xed1   :  { %5370 = vmatpush3.bf16.msra.mxu0 %v3594_v57 }
 0xed2   :  { %5371 = vmatprep.subr.bf16.mxu0 %v8003_v3 }
 0xed5   :  { %5372 = vmatpush3.bf16.msra.mxu0 %v3595_v43 }
 0xed6   :  { %5373 = vmatprep.subr.bf16.mxu0 %v8003_v3 }
 0xed9   :  { %5374 = vmatpush3.bf16.msra.mxu0 %v3596_v56 }
 0xeda   :  { %5375 = vmatprep.subr.bf16.mxu0 %v8003_v3 }
 0xedd   :  { %5376 = vmatpush3.bf16.msra.mxu0 %v3597_v47 }
 0xede   :  { %5377 = vmatprep.subr.bf16.mxu0 %v8003_v3 }
 0xee1   :  { %5378 = vmatpush3.bf16.msra.mxu0 %v3598_v61 }
 0xee2   :  { %5383 = vmatprep.subr.bf16.mxu0 %v8003_v3 }
 0xee4   :  { %5380 = vmatmul.mubr.bf16.vlgmr.msra.gmra.mrb[80].mxu0 %v5541_v40 }
 0xee5   :  { %5387 = vmatprep.mubr.msk.bf16.mxu0 %vm5614_vm10, %v8003_v3 }
 0xfb7   :  { %v3649_v35 = vpop.f32.mrb[80].mxu0 }
 0xfb8   :  { %v3650_v60 = vadd.f32 %v3649_v35, %v3602_v16  ;;  %v5381_v48 = vpop.f32.mrb[81].mxu0  ;;  %v5601_v35 = vld [vmem:[%s7820_s4 + $0x7] ss:$0 sm:$0xff] }
 0xfb9   :  { %v3652_v36 = vpop.f32.mrb[82].mxu0 }
 0xfba   :  { %v3653_v24 = vadd.f32 %v3652_v36, %v3607_v0  ;;  %3664 = vrot.lane.b32.xlu0 %v3650_v60, %s5615_s20  ;;  %v5382_v38 = vpop.f32.mrb[83].mxu0 }
 0xfbc   :  { %3666 = vrot.lane.b32.xlu1 %v3653_v24, %s5615_s20  ;;  %v3732_v34 = vpack.c.bf16 %v3653_v24, %v3650_v60 }
 0xfbe   :  { %3696 = vrot.lane.b32.xlu0 %v3650_v60, %s5608_s24  ;;  %5224 = vmatprep.subr.bf16.mxu1 %v3732_v34 }
 0xfc0   :  { %3698 = vrot.lane.b32.xlu1 %v3653_v24, %s5608_s24 }
 0xfc2   :  { %3672 = vrot.lane.b32.xlu0 %v3650_v60, %s5616_s21 }
 0xfc4   :  { %3674 = vrot.lane.b32.xlu1 %v3653_v24, %s5616_s21 }
 0xfc6   :  { %3704 = vrot.lane.b32.xlu0 %v3650_v60, %s5618_s28 }
 0xfc8   :  { %3706 = vrot.lane.b32.xlu1 %v3653_v24, %s5618_s28 }
 0xfca   :  { %3680 = vrot.lane.b32.xlu0 %v3650_v60, %s5617_s3 }
 0xfcc   :  { %3682 = vrot.lane.b32.xlu1 %v3653_v24, %s5617_s3 }
 0xfce   :  { %3712 = vrot.lane.b32.xlu0 %v3650_v60, %s5619_s29 }
 0xfd0   :  { %3714 = vrot.lane.b32.xlu1 %v3653_v24, %s5619_s29 }
 0xfd2   :  { %3688 = vrot.lane.b32.xlu0 %v3650_v60, %s5607_s23 }
 0xfd4   :  { %3690 = vrot.lane.b32.xlu1 %v3653_v24, %s5607_s23 }
 0xfd6   :  { %3720 = vrot.lane.b32.xlu0 %v3650_v60, %s5620_s15 }
 0xfd8   :  { %3722 = vrot.lane.b32.xlu1 %v3653_v24, %s5620_s15  ;;  %s8010_s15 = smov 15  }
 0xfda   :  { %3739 = vperm.xlu0 %5436, %v3660_v26  }
 0xfdc   :  { %3744 = vperm.xlu1 %5437, %v3661_v37   ;;  %v5603_v37 = vld [vmem:[%s7820_s4 + $0x8] ss:$0 sm:$0xff] }
 0xfde   :  { %4275 = vperm.xlu0 %5436, %v3854_v13  }
0x102c   :  { %v3665_v14 = vpop.permute.xlu0 %3664 }
0x102d   :  { %v3670_v8 = vmul.f32 %v5596_v58, %v3665_v14  ;;  %v5548_v14 = vld [vmem:[%s7826_s11 + $0x4] ss:$16 sps:$4 sm:$0xff]  }
0x102e   :  { %v3667_v62 = vpop.permute.xlu1 %3666 }
0x102f   :  { %v3671_v4 = vmul.f32 %v5596_v58, %v3667_v62  ;;  %v5546_v58 = vld [vmem:[%s7826_s11] ss:$16 sps:$4 sm:$0xff]  }
0x1030   :  { %v3697_v12 = vpop.permute.xlu0 %3696 }
0x1031   :  { %v3728_v55 = vpack.c.bf16 %v3671_v4, %v3670_v8  ;;  %v3702_v23 = vmul.f32 %v5597_v1, %v3697_v12  ;;  %v5554_v8 = vld [vmem:[%s7826_s11 + $0x24] ss:$16 sps:$4 sm:$0xff]   ;;  %v5552_v4 = vld [vmem:[%s7826_s11 + $0x20] ss:$16 sps:$4 sm:$0xff]   ;;  %v5557_v12 = vld [vmem:[%s7826_s11 + $0x2c] ss:$16 sps:$4 sm:$0xff]  }
0x1032   :  { %v3699_v33 = vpop.permute.xlu1 %3698 }
0x1033   :  { %v3703_v32 = vmul.f32 %v5597_v1, %v3699_v33  ;;  %5225 = vmatpush3.bf16.msra.mxu1 %v3728_v55  ;;  %v5560_v55 = vld [vmem:[%s7826_s11 + $0x44] ss:$16 sps:$4 sm:$0xff]   ;;  %v5558_v33 = vld [vmem:[%s7826_s11 + $0x40] ss:$16 sps:$4 sm:$0xff]   ;;  %v5563_v1 = vld [vmem:[%s7826_s11 + $0x4c] ss:$16 sps:$4 sm:$0xff]  }
0x1034   :  { %v3673_v7 = vpop.permute.xlu0 %3672  ;;  %5226 = vmatprep.subr.bf16.mxu1 %v6976_v27 }
0x1035   :  { %v3733_v63 = vpack.c.bf16 %v3703_v32, %v3702_v23  ;;  %v3678_v39 = vmul.f32 %v5598_v54, %v3673_v7  ;;  %v5566_v23 = vld [vmem:[%s7826_s11 + $0x64] ss:$16 sps:$4 sm:$0xff]   ;;  %v5561_v32 = vld [vmem:[%s7826_s11 + $0x48] ss:$16 sps:$4 sm:$0xff]   ;;  %v5564_v7 = vld [vmem:[%s7826_s11 + $0x60] ss:$16 sps:$4 sm:$0xff]  }
0x1036   :  { %v3675_v9 = vpop.permute.xlu1 %3674 }
0x1037   :  { %v3679_v45 = vmul.f32 %v5598_v54, %v3675_v9  ;;  %5227 = vmatpush3.bf16.msra.mxu1 %v7009_v41  ;;  %v5600_v41 = vld [vmem:[%s7820_s4 + $0x2] ss:$0 sm:$0xff]  ;;  %v5572_v9 = vld [vmem:[%s7826_s11 + $0x84] ss:$16 sps:$4 sm:$0xff]   ;;  %v5567_v54 = vld [vmem:[%s7826_s11 + $0x68] ss:$16 sps:$4 sm:$0xff]  }
0x1038   :  { %v3705_v2 = vpop.permute.xlu0 %3704  ;;  %5228 = vmatprep.subr.bf16.mxu1 %v3733_v63  ;;  %v5569_v63 = vld [vmem:[%s7826_s11 + $0x6c] ss:$16 sps:$4 sm:$0xff]  }
0x1039   :  { %v3729_v18 = vpack.c.bf16 %v3679_v45, %v3678_v39  ;;  %v3710_v57 = vmul.f32 %v5599_v30, %v3705_v2  ;;  %v5570_v39 = vld [vmem:[%s7826_s11 + $0x80] ss:$16 sps:$4 sm:$0xff]   ;;  %v5575_v45 = vld [vmem:[%s7826_s11 + $0x8c] ss:$16 sps:$4 sm:$0xff]   ;;  %v5573_v2 = vld [vmem:[%s7826_s11 + $0x88] ss:$16 sps:$4 sm:$0xff]  }
0x103a   :  { %v3707_v17 = vpop.permute.xlu1 %3706 }
0x103b   :  { %v3711_v27 = vmul.f32 %v5599_v30, %v3707_v17  ;;  %5229 = vmatpush3.bf16.msra.mxu1 %v3729_v18  ;;  %v5578_v18 = vld [vmem:[%s7826_s11 + $0xa4] ss:$16 sps:$4 sm:$0xff]   ;;  %v5581_v17 = vld [vmem:[%s7826_s11 + $0xac] ss:$16 sps:$4 sm:$0xff]   ;;  %v5576_v30 = vld [vmem:[%s7826_s11 + $0xa0] ss:$16 sps:$4 sm:$0xff]  }
0x103c   :  { %v3681_v56 = vpop.permute.xlu0 %3680  ;;  %5230 = vmatprep.subr.bf16.mxu1 %v7069_v53 }
0x103d   :  { %v3734_v61 = vpack.c.bf16 %v3711_v27, %v3710_v57  ;;  %v3686_v19 = vmul.f32 %v5600_v41, %v3681_v56  ;;  %v5579_v57 = vld [vmem:[%s7826_s11 + $0xa8] ss:$16 sps:$4 sm:$0xff]   ;;  %v5584_v27 = vld [vmem:[%s7826_s11 + $0xc4] ss:$16 sps:$4 sm:$0xff]   ;;  %v5587_v56 = vld [vmem:[%s7826_s11 + $0xcc] ss:$16 sps:$4 sm:$0xff]  }
0x103e   :  { %v3683_v29 = vpop.permute.xlu1 %3682 }
0x103f   :  { %v3687_v43 = vmul.f32 %v5600_v41, %v3683_v29  ;;  %5231 = vmatpush3.bf16.msra.mxu1 %v7023_v49  ;;  %v5602_v49 = vld [vmem:[%s7820_s4 + $0x3] ss:$0 sm:$0xff]  ;;  %v5585_v29 = vld [vmem:[%s7826_s11 + $0xc8] ss:$16 sps:$4 sm:$0xff]   ;;  %v5590_v41 = vld [vmem:[%s7826_s11 + $0xe4] ss:$16 sps:$4 sm:$0xff]  }
0x1040   :  { %v3713_v47 = vpop.permute.xlu0 %3712  ;;  %5232 = vmatprep.subr.bf16.mxu1 %v3734_v61  ;;  %v5582_v61 = vld [vmem:[%s7826_s11 + $0xc0] ss:$16 sps:$4 sm:$0xff]  }
0x1041   :  { %v3730_v40 = vpack.c.bf16 %v3687_v43, %v3686_v19  ;;  %v3718_v60 = vmul.f32 %v5601_v35, %v3713_v47  ;;  %v5593_v19 = vld [vmem:[%s7826_s11 + $0xec] ss:$16 sps:$4 sm:$0xff]   ;;  %v5588_v43 = vld [vmem:[%s7826_s11 + $0xe0] ss:$16 sps:$4 sm:$0xff]   ;;  %v5591_v47 = vld [vmem:[%s7826_s11 + $0xe8] ss:$16 sps:$4 sm:$0xff]  }
0x1042   :  { %v3715_v16 = vpop.permute.xlu1 %3714 }
0x1043   :  { %v3719_v53 = vmul.f32 %v5601_v35, %v3715_v16  ;;  %5233 = vmatpush3.bf16.msra.mxu1 %v3730_v40 }
0x1044   :  { %v3689_v48 = vpop.permute.xlu0 %3688  ;;  %5234 = vmatprep.subr.bf16.mxu1 %v7076_v6 }
0x1045   :  { %v3735_v0 = vpack.c.bf16 %v3719_v53, %v3718_v60  ;;  %v3694_v24 = vmul.f32 %v5602_v49, %v3689_v48 }
0x1046   :  { %v3691_v36 = vpop.permute.xlu1 %3690 }
0x1047   :  { %v3695_v38 = vmul.f32 %v5602_v49, %v3691_v36  ;;  %5235 = vmatpush3.bf16.msra.mxu1 %v7038_v15  ;;  %v5542_v15 = vld [vmem:[%s7815_s1 + $0x114] ss:$12 sps:$4 sm:$0xff]  }
0x1048   :  { %v3721_v34 = vpop.permute.xlu0 %3720  ;;  %5236 = vmatprep.subr.bf16.mxu1 %v3735_v0 }
0x1049   :  { %v3731_v11 = vpack.c.bf16 %v3695_v38, %v3694_v24  ;;  %v3726_v13 = vmul.f32 %v5603_v37, %v3721_v34 }
0x104a   :  { %v3723_v26 = vpop.permute.xlu1 %3722 }
0x104b   :  { %v3727_v6 = vmul.f32 %v5603_v37, %v3723_v26  ;;  %5237 = vmatpush3.bf16.msra.mxu1 %v3731_v11 }
0x104c   :  { %5238 = vmatprep.subr.bf16.mxu1 %v7083_v51  ;;  %v5551_v51 = vld [vmem:[%s7826_s11 + $0xc] ss:$16 sps:$4 sm:$0xff]  }
0x104d   :  { %v3736_v62 = vpack.c.bf16 %v3727_v6, %v3726_v13 }
0x104f   :  { %5239 = vmatpush3.bf16.msra.mxu1 %v7053_v5  ;;  %5384 = vmatpush3.bf16.msra.mxu0 %v3736_v62  ;;  %v5545_v5 = vld [vmem:[%s7815_s1 + $0x11c] ss:$12 sps:$4 sm:$0xff]  }
0x1050   :  { %5385 = vmatprep.subr.bf16.mxu0 %v8003_v3  ;;  %4048 = vmatprep.subr.bf16.mxu1 %v5548_v14  ;;  %v5549_v3 = vld [vmem:[%s7826_s11 + $0x8] ss:$16 sps:$4 sm:$0xff]  }
0x1052   :  { %3798 = vmatmul.mubr.bf16.vlgmr.msra.gmra.mrb[64].mxu1 %v5542_v15 }
0x1053   :  { %5386 = vmatpush3.bf16.msra.mxu0 %v7090_v59  ;;  %4049 = vmatpush1.bf16.msra.mxu1 %v5546_v58  ;;  %v5555_v59 = vld [vmem:[%s7826_s11 + $0x28] ss:$16 sps:$4 sm:$0xff]  }
0x1054   :  { %4091 = vmatprep.subr.bf16.mxu0 %v5551_v51  ;;  %4050 = vmatprep.subr.bf16.mxu1 %v5554_v8  ;;  %v4134_v51 = vld [vmem:[%s7827_s13] ss:$4 sm:$0xf]  ;;  %v4992_v8 = vld [vmem:[%s7827_s13 + $0x1] ss:$4 sm:$0xf] }
0x1055   :  { %4080 = vmatprep.mubr.bf16.mxu1 %v7973_v52 }
0x1056   :  { %5388 = vmatmul.mubr.msk.bf16.vlgmr.msra.gmra.mrb[84].mxu0 %vm3182_vm9, %v5545_v5  ;;  %v4993_v5 = vld [vmem:[%s7827_s13 + $0x2] ss:$4 sm:$0xf] }
0x1057   :  { %4092 = vmatpush1.bf16.msra.mxu0 %v5549_v3  ;;  %4051 = vmatpush1.bf16.msra.mxu1 %v5552_v4  ;;  %v4994_v3 = vld [vmem:[%s7827_s13 + $0x3] ss:$4 sm:$0xf]  ;;  %v8004_v4 = vld [vmem:[#allocation5_spill] sm:$0xff] }
0x1058   :  { %4093 = vmatprep.subr.bf16.mxu0 %v5557_v12  ;;  %4052 = vmatprep.subr.bf16.mxu1 %v5560_v55  ;;  %v4139_v12 = vrot.slane %v4134_v51, %v8004_v4  ;;  %v4170_v55 = vrot.slane %v4992_v8, %v8004_v4 }
0x1059   :  { %4123 = vmatprep.mubr.bf16.mxu0 %v7973_v52  ;;  %v3740_v53 = vpop.permute.xlu0 %3739 }
0x105b   :  { %4094 = vmatpush1.bf16.msra.mxu0 %v5555_v59  ;;  %4053 = vmatpush1.bf16.msra.mxu1 %v5558_v33  ;;  %v3745_v24 = vpop.permute.xlu1 %3744  ;;  %v4201_v59 = vrot.slane %v4993_v5, %v8004_v4  ;;  %v4232_v33 = vrot.slane %v4994_v3, %v8004_v4 }
0x105c   :  { %4095 = vmatprep.subr.bf16.mxu0 %v5563_v1  ;;  %4054 = vmatprep.subr.bf16.mxu1 %v5566_v23  ;;  %v8005_v1 = vld [vmem:[#allocation4_spill] sm:$0xff] }
0x105d   :  { %v4147_v23 = vrot.slane %v4134_v51, %v8005_v1 }
0x105f   :  { %4096 = vmatpush1.bf16.msra.mxu0 %v5561_v32  ;;  %4055 = vmatpush1.bf16.msra.mxu1 %v5564_v7  ;;  %v4178_v32 = vrot.slane %v4992_v8, %v8005_v1  ;;  %v4209_v7 = vrot.slane %v4993_v5, %v8005_v1 }
0x1060   :  { %4097 = vmatprep.subr.bf16.mxu0 %v5569_v63  ;;  %4056 = vmatprep.subr.bf16.mxu1 %v5572_v9  ;;  %v4240_v63 = vrot.slane %v4994_v3, %v8005_v1  ;;  %v8006_v9 = vld [vmem:[#allocation2_spill] sm:$0xff] }
0x1063   :  { %4098 = vmatpush1.bf16.msra.mxu0 %v5567_v54  ;;  %4057 = vmatpush1.bf16.msra.mxu1 %v5570_v39  ;;  %v4143_v54 = vrot.slane %v4134_v51, %v8006_v9  ;;  %v4174_v39 = vrot.slane %v4992_v8, %v8006_v9 }
0x1064   :  { %4099 = vmatprep.subr.bf16.mxu0 %v5575_v45  ;;  %4058 = vmatprep.subr.bf16.mxu1 %v5578_v18  ;;  %v4205_v45 = vrot.slane %v4993_v5, %v8006_v9 }
0x1067   :  { %4100 = vmatpush1.bf16.msra.mxu0 %v5573_v2  ;;  %4059 = vmatpush1.bf16.msra.mxu1 %v5576_v30  ;;  %v4236_v2 = vrot.slane %v4994_v3, %v8006_v9  ;;  %v8007_v30 = vld [vmem:[#allocation3_spill] sm:$0xff] }
0x1068   :  { %4101 = vmatprep.subr.bf16.mxu0 %v5581_v17  ;;  %4060 = vmatprep.subr.bf16.mxu1 %v5584_v27  ;;  %v4182_v27 = vrot.slane %v4992_v8, %v8007_v30 }
0x106b   :  { %4102 = vmatpush1.bf16.msra.mxu0 %v5579_v57  ;;  %4061 = vmatpush1.bf16.msra.mxu1 %v5582_v61  ;;  %v4151_v57 = vrot.slane %v4134_v51, %v8007_v30  ;;  %v4244_v61 = vrot.slane %v4994_v3, %v8007_v30 }
0x106c   :  { %4103 = vmatprep.subr.bf16.mxu0 %v5587_v56  ;;  %4062 = vmatprep.subr.bf16.mxu1 %v5590_v41  ;;  %v4213_v56 = vrot.slane %v4993_v5, %v8007_v30 }
0x106f   :  { %4104 = vmatpush1.bf16.msra.mxu0 %v5585_v29  ;;  %4063 = vmatpush1.bf16.msra.mxu1 %v5588_v43 }
0x1070   :  { %4105 = vmatprep.subr.bf16.mxu0 %v5593_v19 }
0x1073   :  { %4106 = vmatpush1.bf16.msra.mxu0 %v5591_v47 }
0x1125   :  { %v5240_v40 = vpop.f32.mrb[64].mxu1 }
0x1126   :  { %v5241_v16 = vpop.f32.mrb[65].mxu1 }
0x1127   :  { %v5242_v35 = vadd.f32 %v5241_v16, %v5240_v40  ;;  %v5243_v60 = vpop.f32.mrb[66].mxu1 }
0x1128   :  { %v5244_v48 = vpop.f32.mrb[67].mxu1 }
0x1129   :  { %v5245_v0 = vadd.f32 %v5244_v48, %v5243_v60  ;;  %v3800_v36 = vadd.f32 %v5242_v35, %v3740_v53  ;;  %v3840_v49 = vpop.f32.mrb[84].mxu0 }
0x112a   :  { %v5389_v38 = vpop.f32.mrb[85].mxu0 }
0x112b   :  { %v3841_v34 = vadd.f32 %v3840_v49, %v3800_v36  ;;  %v3803_v11 = vadd.f32 %v5245_v0, %v3745_v24  ;;  %v3843_v26 = vpop.f32.mrb[86].mxu0 }
0x112c   :  { %v5390_v37 = vpop.f32.mrb[87].mxu0 }
0x112d   :  { %v3849_v13 = vmul.f32 0.01, %v3841_v34  ;;  %v3844_v6 = vadd.f32 %v3843_v26, %v3803_v11  ;;  %vm3847_vm10 = vcmp.ge.f32.partialorder %v3841_v34, 0.0 }
0x112f   :  { %vm3848_vm9 = vcmp.ge.f32.partialorder %v3844_v6, 0.0  ;;  %v3850_v14 = vmul.f32 0.01, %v3844_v6  ;;  %v3851_v62 = vsel %vm3847_vm10, %v3841_v34, %v3849_v13 }
0x1131   :  { %v3852_v15 = vsel %vm3848_vm9, %v3844_v6, %v3850_v14 }
0x1132   :  { %v3855_v58 = vpack.c.bf16 %v3852_v15, %v3851_v62 }
0x1134   :  { %4081 = vmatmul.mubr.bf16.vlgmr.msra.gmra.mrb[68].mxu1 %v3855_v58  ;;  %4124 = vmatmul.mubr.bf16.vlgmr.msra.gmra.mrb[88].mxu0 %v3855_v58 }
0x1135   :  { %4314 = vmatprep.mubr.bf16.mxu1 %v7973_v52  ;;  %4355 = vmatprep.mubr.bf16.mxu0 %v7973_v52 }
0x1207   :  { %v4082_v18 = vpop.f32.mrb[68].mxu1  ;;  %v4125_v17 = vpop.f32.mrb[88].mxu0 }
0x1208   :  { %v4156_v29 = vmul.f32 %v4139_v12, %v4082_v18  ;;  %v4187_v41 = vmul.f32 %v4170_v55, %v4082_v18  ;;  %v4218_v19 = vmul.f32 %v4201_v59, %v4082_v18  ;;  %v7586_v43 = vmul.f32 %v4232_v33, %v4082_v18  ;;  %v4084_v47 = vpop.f32.mrb[69].mxu1  ;;  %v4127_v40 = vpop.f32.mrb[89].mxu0 }
0x1209   :  { %v4158_v16 = vmul.f32 %v4147_v23, %v4125_v17  ;;  %v4189_v35 = vmul.f32 %v4178_v32, %v4125_v17  ;;  %v4220_v60 = vmul.f32 %v4209_v7, %v4125_v17  ;;  %v4251_v53 = vmul.f32 %v4240_v63, %v4125_v17  ;;  %v4086_v48 = vpop.f32.mrb[70].mxu1  ;;  %v4129_v0 = vpop.f32.mrb[90].mxu0 }
0x120a   :  { %v4157_v36 = vmul.f32 %v4143_v54, %v4084_v47  ;;  %v4188_v49 = vmul.f32 %v4174_v39, %v4084_v47  ;;  %v4219_v24 = vmul.f32 %v4205_v45, %v4084_v47  ;;  %v4250_v38 = vmul.f32 %v4236_v2, %v4084_v47  ;;  %v4088_v34 = vpop.f32.mrb[71].mxu1  ;;  %v4131_v11 = vpop.f32.mrb[91].mxu0 }
0x120b   :  { %v4159_v26 = vmul.f32 %v4151_v57, %v4127_v40  ;;  %v4190_v37 = vmul.f32 %v4182_v27, %v4127_v40  ;;  %v4221_v13 = vmul.f32 %v4213_v56, %v4127_v40  ;;  %v4252_v6 = vmul.f32 %v4244_v61, %v4127_v40 }
0x120c   :  { %v4160_v14 = vmul.f32 %v4139_v12, %v4086_v48  ;;  %v4191_v62 = vmul.f32 %v4170_v55, %v4086_v48  ;;  %v4222_v15 = vmul.f32 %v4201_v59, %v4086_v48  ;;  %v4253_v58 = vmul.f32 %v4232_v33, %v4086_v48  ;;  %v4365_v48 = vld [vmem:[%s7816_s2 + $0xd0] sm:$0xff] }
0x120d   :  { %v4162_v51 = vmul.f32 %v4147_v23, %v4129_v0  ;;  %v4193_v8 = vmul.f32 %v4178_v32, %v4129_v0  ;;  %v4224_v5 = vmul.f32 %v4209_v7, %v4129_v0  ;;  %v4255_v3 = vmul.f32 %v4240_v63, %v4129_v0  ;;  %v4683_v0 = vld [vmem:[%s7816_s2 + $0xd8] sm:$0x7] }
0x120e   :  { %v4161_v4 = vmul.f32 %v4143_v54, %v4088_v34  ;;  %v4192_v1 = vmul.f32 %v4174_v39, %v4088_v34  ;;  %v4223_v9 = vmul.f32 %v4205_v45, %v4088_v34  ;;  %v4254_v18 = vmul.f32 %v4236_v2, %v4088_v34 }
0x120f   :  { %v4163_v17 = vmul.f32 %v4151_v57, %v4131_v11  ;;  %v4194_v30 = vmul.f32 %v4182_v27, %v4131_v11  ;;  %v4225_v47 = vmul.f32 %v4213_v56, %v4131_v11  ;;  %v4256_v52 = vmul.f32 %v4244_v61, %v4131_v11 }
0x1210   :  { %v4258_v25 = vpack.c.bf16 %v4161_v4, %v4157_v36  ;;  %v4257_v46 = vpack.c.bf16 %v4160_v14, %v4156_v29  ;;  %v4259_v50 = vpack.c.bf16 %v4162_v51, %v4158_v16  ;;  %v4262_v40 = vpack.c.bf16 %v4192_v1, %v4188_v49 }
0x1211   :  { %v4260_v12 = vpack.c.bf16 %v4163_v17, %v4159_v26  ;;  %v4264_v55 = vpack.c.bf16 %v4194_v30, %v4190_v37  ;;  %v4261_v59 = vpack.c.bf16 %v4191_v62, %v4187_v41  ;;  %v4263_v33 = vpack.c.bf16 %v4193_v8, %v4189_v35  ;;  %v8013_v30 = vld [vmem:[#allocation8_spill] sm:$0xff] }
0x1212   :  { %4282 = vmatprep.subr.bf16.mxu1 %v4258_v25  ;;  %v4266_v23 = vpack.c.bf16 %v4223_v9, %v4219_v24  ;;  %v4268_v32 = vpack.c.bf16 %v4225_v47, %v4221_v13  ;;  %v4265_v7 = vpack.c.bf16 %v4222_v15, %v4218_v19  ;;  %v4267_v63 = vpack.c.bf16 %v4224_v5, %v4220_v60  ;;  %v3853_v25 = vld [vmem:[%s7815_s1 + $0x12c] sm:$0xf]  ;;  %v7659_v60 = vld [vmem:[%s7815_s1 + $0x138] sm:$0xff] }
0x1213   :  { %4323 = vmatprep.subr.bf16.mxu0 %v4260_v12  ;;  %4283 = vmatpush1.bf16.msra.mxu1 %v4257_v46  ;;  %v4270_v54 = vpack.c.bf16 %v4254_v18, %v4250_v38  ;;  %v4272_v39 = vpack.c.bf16 %v4256_v52, %v4252_v6  ;;  %v4269_v45 = vpack.c.bf16 %v4253_v58, %v7586_v43  ;;  %v4276_v52 = vpop.permute.xlu0 %4275 }
0x1214   :  { %4324 = vmatpush1.bf16.msra.mxu0 %v4259_v50  ;;  %4284 = vmatprep.subr.bf16.mxu1 %v4262_v40  ;;  %v4271_v2 = vpack.c.bf16 %v4255_v3, %v4251_v53  ;;  %v4998_v53 = vcombine.high %v7659_v60, %v7659_v60  ;;  %v8014_v40 = vld [vmem:[#allocation38_spill] sm:$0xff] }
0x1215   :  { %4325 = vmatprep.subr.bf16.mxu0 %v4264_v55 }
0x1217   :  { %4285 = vmatpush1.bf16.msra.mxu1 %v4261_v59 }
0x1218   :  { %4326 = vmatpush1.bf16.msra.mxu0 %v4263_v33  ;;  %4286 = vmatprep.subr.bf16.mxu1 %v4266_v23  ;;  %v8017_v23 = vld [vmem:[#allocation9_spill] sm:$0xff] }
0x1219   :  { %4327 = vmatprep.subr.bf16.mxu0 %v4268_v32 }
0x121b   :  { %4287 = vmatpush1.bf16.msra.mxu1 %v4265_v7  ;;  %v8018_v7 = vld [vmem:[#allocation41_spill] sm:$0xff] }
0x121c   :  { %4328 = vmatpush1.bf16.msra.mxu0 %v4267_v63  ;;  %4288 = vmatprep.subr.bf16.mxu1 %v4270_v54 }
0x121d   :  { %4329 = vmatprep.subr.bf16.mxu0 %v4272_v39 }
0x121f   :  { %4289 = vmatpush1.bf16.msra.mxu1 %v4269_v45  ;;  %v8019_v45 = vld [vmem:[#allocation40_spill] sm:$0xff] }
0x1220   :  { %4330 = vmatpush1.bf16.msra.mxu0 %v4271_v2 }
0x1222   :  { %4995 = vmatmul.mubr.msk.bf16.vlgmr.msra.gmra.mrb[72].mxu1 %vm4278_vm11, %v3853_v25 }
0x1223   :  { %4996 = vmatmul.mubr.msk.bf16.vlgmr.msra.gmra.mrb[92].mxu0 %vm4278_vm11, %v3853_v25  ;;  %4999 = vmatprep.mubr.msk.bf16.mxu1 %vm112_vm1, %v4998_v53  ;;  %v8020_v25 = vld [vmem:[#allocation39_spill] sm:$0xff] }
0x1224   :  { %5000 = vmatprep.mubr.msk.bf16.mxu0 %vm112_vm1, %v4998_v53  ;;  %v8023_v53 = vld [vmem:[#allocation17_spill] sm:$0xff] }
0x12f5   :  { %v4316_v50 = vpop.f32.mrb[72].mxu1 }
0x12f6   :  { %v7592_v46 = vadd.f32 %v4316_v50, %v4276_v52  ;;  %v4357_v57 = vpop.f32.mrb[92].mxu0  ;;  %v4318_v27 = vpop.f32.mrb[73].mxu1 }
0x12f7   :  { %v4359_v56 = vpop.f32.mrb[93].mxu0  ;;  %v4320_v61 = vpop.f32.mrb[74].mxu1  ;;  %v7598_v43 = vadd.f32 %v4357_v57, %v4276_v52  ;;  %v7614_v35 = vadd.f32 %v4318_v27, %v4276_v52  ;;  %v8021_v27 = vld [vmem:[#allocation10_spill] sm:$0xff] }
0x12f8   :  { %v4321_v29 = vpop.f32.mrb[75].mxu1  ;;  %4454 = vrot.lane.b32.xlu1 %v7592_v46, %s5608_s24  ;;  %4373 = vrot.lane.b32.xlu0 %v7592_v46, %s5604_s17  ;;  %v4361_v41 = vpop.f32.mrb[94].mxu0  ;;  %v7608_v16 = vadd.f32 %v4359_v56, %v4276_v52 }
0x12f9   :  { %v4362_v19 = vpop.f32.mrb[95].mxu0  ;;  %v8022_v41 = vld [vmem:[#allocation42_spill] sm:$0xff] }
0x12fc   :  { %4458 = vrot.lane.b32.xlu1 %v7598_v43, %s5608_s24  ;;  %4377 = vrot.lane.b32.xlu0 %v7598_v43, %s5604_s17 }
0x1300   :  { %4475 = vrot.lane.b32.xlu1 %v7592_v46, %s8008_s7  ;;  %4394 = vrot.lane.b32.xlu0 %v7592_v46, %s8009_s30 }
0x1304   :  { %4367 = vrot.lane.b32.xlu1 %v7608_v16, %s5604_s17  ;;  %4398 = vrot.lane.b32.xlu0 %v7598_v43, %s8009_s30 }
0x1308   :  { %4375 = vrot.lane.b32.xlu1 %v7614_v35, %s5604_s17  ;;  %4415 = vrot.lane.b32.xlu0 %v7592_v46, %s8010_s15  ;;  %s8011_s17 = smov 112  }
0x130c   :  { %4391 = vrot.lane.b32.xlu1 %v7608_v16, %s8009_s30  ;;  %4419 = vrot.lane.b32.xlu0 %v7598_v43, %s8010_s15 }
0x1310   :  { %4396 = vrot.lane.b32.xlu1 %v7614_v35, %s8009_s30  ;;  %4436 = vrot.lane.b32.xlu0 %v7592_v46, %s5607_s23 }
0x1314   :  { %4412 = vrot.lane.b32.xlu1 %v7608_v16, %s8010_s15  ;;  %4440 = vrot.lane.b32.xlu0 %v7598_v43, %s5607_s23 }
0x1318   :  { %4417 = vrot.lane.b32.xlu1 %v7614_v35, %s8010_s15  ;;  %4456 = vrot.lane.b32.xlu0 %v7614_v35, %s5608_s24 }
0x131c   :  { %4433 = vrot.lane.b32.xlu1 %v7608_v16, %s5607_s23  ;;  %4460 = vrot.lane.b32.xlu0 %v7608_v16, %s5608_s24 }
0x1320   :  { %4438 = vrot.lane.b32.xlu1 %v7614_v35, %s5607_s23  ;;  %4477 = vrot.lane.b32.xlu0 %v7614_v35, %s8008_s7 }
0x1324   :  { %4479 = vrot.lane.b32.xlu1 %v7598_v43, %s8008_s7  ;;  %4481 = vrot.lane.b32.xlu0 %v7608_v16, %s8008_s7 }
0x1328   :  { %4496 = vrot.lane.b32.xlu1 %v7592_v46, %s8011_s17  ;;  %4498 = vrot.lane.b32.xlu0 %v7614_v35, %s8011_s17 }
0x132c   :  { %4500 = vrot.lane.b32.xlu1 %v7598_v43, %s8011_s17  ;;  %4502 = vrot.lane.b32.xlu0 %v7608_v16, %s8011_s17 }
0x1330   :  { %4517 = vrot.lane.b32.xlu1 %v7592_v46, %s8012_s6  ;;  %4519 = vrot.lane.b32.xlu0 %v7614_v35, %s8012_s6 }
0x1334   :  { %4521 = vrot.lane.b32.xlu1 %v7598_v43, %s8012_s6  ;;  %4523 = vrot.lane.b32.xlu0 %v7608_v16, %s8012_s6 }
0x1338   :  { %4576 = vperm.xlu1 %5437, %v4365_v48   ;;  %4690 = vperm.xlu0 %5436, %v4683_v0  }
0x136a   :  { %v7679_v36 = vpop.permute.xlu1 %4454  ;;  %v4374_v49 = vpop.permute.xlu0 %4373 }
0x136e   :  { %v7681_v24 = vpop.permute.xlu1 %4458  ;;  %v4378_v38 = vpop.permute.xlu0 %4377 }
0x1372   :  { %v7683_v34 = vpop.permute.xlu1 %4475  ;;  %v4395_v11 = vpop.permute.xlu0 %4394 }
0x1376   :  { %v4368_v26 = vpop.permute.xlu1 %4367  ;;  %v4399_v37 = vpop.permute.xlu0 %4398 }
0x1377   :  { %v4381_v13 = vsel %vm68_vm0, %v4378_v38, %v4368_v26  ;;  %v4386_v6 = vsel %vm68_vm0, %v4368_v26, %v4374_v49  ;;  %v8025_v26 = vld [vmem:[#allocation12_spill] sm:$0xff] }
0x1378   :  { %v4390_v14 = vmul.f32 %v4381_v13, %v5819_v21  ;;  %v4387_v51 = vmul.f32 %v4386_v6, %v5841_v31  ;;  %v8026_v13 = vld [vmem:[#allocation45_spill] sm:$0xff] }
0x137a   :  { %v4376_v62 = vpop.permute.xlu1 %4375  ;;  %v4416_v15 = vpop.permute.xlu0 %4415  ;;  %v4541_v58 = vpack.c.bf16 %v6524_v10, %v4390_v14  ;;  %v4538_v17 = vpack.c.bf16 %v6553_v44, %v4387_v51  ;;  %v8016_v44 = vld [vmem:[#allocation6_spill] sm:$0xff] }
0x137b   :  { %v4379_v8 = vsel %vm68_vm0, %v4374_v49, %v4376_v62  ;;  %v4380_v5 = vsel %vm68_vm0, %v4376_v62, %v4378_v38  ;;  %v8024_v38 = vld [vmem:[#allocation11_spill] sm:$0xff] }
0x137c   :  { %v4388_v3 = vmul.f32 %v4379_v8, %v5816_v20  ;;  %v4389_v4 = vmul.f32 %v4380_v5, %v5834_v28  ;;  %4629 = vmatprep.subr.bf16.mxu0 %v4541_v58  ;;  %v8027_v58 = vld [vmem:[#allocation44_spill] sm:$0xff]  ;;  %v8028_v8 = vld [vmem:[#allocation51_spill] sm:$0xff] }
0x137e   :  { %v4540_v1 = vpack.c.bf16 %v6544_v42, %v4389_v4  ;;  %v4392_v9 = vpop.permute.xlu1 %4391  ;;  %v4420_v18 = vpop.permute.xlu0 %4419  ;;  %v4539_v21 = vpack.c.bf16 %v6541_v22, %v4388_v3  ;;  %v8015_v42 = vld [vmem:[#allocation7_spill] sm:$0xff] }
0x137f   :  { %v4402_v10 = vsel %vm112_vm1, %v4399_v37, %v4392_v9  ;;  %v4407_v31 = vsel %vm112_vm1, %v4392_v9, %v4395_v11 }
0x1380   :  { %v4411_v47 = vmul.f32 %v4402_v10, %v8013_v30  ;;  %4588 = vmatprep.subr.bf16.mxu1 %v4539_v21  ;;  %4630 = vmatpush1.bf16.msra.mxu0 %v4540_v1  ;;  %v4408_v55 = vmul.f32 %v4407_v31, %v8015_v42  ;;  %v8030_v21 = vld [vmem:[#allocation43_spill] sm:$0xff]  ;;  %v8031_v10 = vld [vmem:[#allocation13_spill] sm:$0xff]  ;;  %v8033_v42 = vld [vmem:[#allocation16_spill] sm:$0xff] }
0x1381   :  { %4589 = vmatpush1.bf16.msra.mxu1 %v4538_v17 }
0x1382   :  { %v4397_v20 = vpop.permute.xlu1 %4396  ;;  %v4437_v28 = vpop.permute.xlu0 %4436  ;;  %v4545_v12 = vpack.c.bf16 %v8014_v40, %v4411_v47  ;;  %v4542_v52 = vpack.c.bf16 %v8020_v25, %v4408_v55  ;;  %v8032_v40 = vld [vmem:[#allocation15_spill] sm:$0xff] }
0x1383   :  { %v4400_v59 = vsel %vm112_vm1, %v4395_v11, %v4397_v20  ;;  %v4401_v22 = vsel %vm112_vm1, %v4397_v20, %v4399_v37  ;;  %v8038_v25 = vld [vmem:[#allocation19_spill] sm:$0xff] }
0x1384   :  { %v4409_v33 = vmul.f32 %v4400_v59, %v8016_v44  ;;  %v4410_v32 = vmul.f32 %v4401_v22, %v8017_v23  ;;  %4631 = vmatprep.subr.bf16.mxu0 %v4545_v12  ;;  %v8034_v44 = vld [vmem:[#allocation49_spill] sm:$0xff] }
0x1386   :  { %v4544_v63 = vpack.c.bf16 %v8018_v7, %v4410_v32  ;;  %v4413_v54 = vpop.permute.xlu1 %4412  ;;  %v4441_v39 = vpop.permute.xlu0 %4440  ;;  %v4543_v2 = vpack.c.bf16 %v8019_v45, %v4409_v33  ;;  %v8035_v32 = vld [vmem:[#allocation48_spill] sm:$0xff] }
0x1387   :  { %v4423_v50 = vsel %vm157_vm3, %v4420_v18, %v4413_v54  ;;  %v4428_v57 = vsel %vm157_vm3, %v4413_v54, %v4416_v15 }
0x1388   :  { %v4432_v56 = vmul.f32 %v4423_v50, %v8021_v27  ;;  %4590 = vmatprep.subr.bf16.mxu1 %v4543_v2  ;;  %4632 = vmatpush1.bf16.msra.mxu0 %v4544_v63  ;;  %v4429_v48 = vmul.f32 %v4428_v57, %v8023_v53  ;;  %v8036_v63 = vld [vmem:[#allocation37_spill] sm:$0xff]  ;;  %v8040_v27 = vld [vmem:[#allocation36_spill] sm:$0xff] }
0x1389   :  { %4591 = vmatpush1.bf16.msra.mxu1 %v4542_v52  ;;  %v4557_v54 = vpack.c.bf16 %v8036_v63, %v7608_v16  ;;  %v8060_v63 = vld [vmem:[#allocation60_spill] sm:$0xff] }
0x138a   :  { %v4418_v61 = vpop.permute.xlu1 %4417  ;;  %v4457_v29 = vpop.permute.xlu0 %4456  ;;  %v4549_v19 = vpack.c.bf16 %v8022_v41, %v4432_v56  ;;  %v4546_v5 = vpack.c.bf16 %v8028_v8, %v4429_v48  ;;  %v4555_v56 = vpack.c.bf16 %v8040_v27, %v7614_v35  ;;  %v8042_v41 = vld [vmem:[#allocation21_spill] sm:$0xff] }
0x138b   :  { %v4421_v0 = vsel %vm157_vm3, %v4416_v15, %v4418_v61  ;;  %v4422_v49 = vsel %vm157_vm3, %v4418_v61, %v4420_v18  ;;  %v8029_v15 = vld [vmem:[#allocation14_spill] sm:$0xff]  ;;  %v4463_v59 = vsel %vm246_vm4, %v4457_v29, %v7681_v24  ;;  %v4462_v22 = vsel %vm246_vm4, %v7679_v36, %v4457_v29  ;;  %v8049_v8 = vld [vmem:[#allocation53_spill] sm:$0xff] }
0x138c   :  { %v4430_v11 = vmul.f32 %v4421_v0, %v8024_v38  ;;  %v4431_v37 = vmul.f32 %v4422_v49, %v8025_v26  ;;  %4633 = vmatprep.subr.bf16.mxu0 %v4549_v19  ;;  %v8041_v61 = vld [vmem:[#allocation18_spill] sm:$0xff]  ;;  %v8044_v49 = vld [vmem:[#allocation35_spill] sm:$0xff] }
0x138d   :  { %v4471_v29 = vmul.f32 %v4462_v22, %v8041_v61  ;;  %v8043_v19 = vld [vmem:[#allocation22_spill] sm:$0xff]  ;;  %v4556_v38 = vpack.c.bf16 %v8044_v49, %v7598_v43  ;;  %v8050_v43 = vld [vmem:[#allocation52_spill] sm:$0xff] }
0x138e   :  { %v4548_v6 = vpack.c.bf16 %v8026_v13, %v4431_v37  ;;  %v4434_v14 = vpop.permute.xlu1 %4433  ;;  %v4461_v62 = vpop.permute.xlu0 %4460  ;;  %v4547_v51 = vpack.c.bf16 %v8027_v58, %v4430_v11  ;;  %v8045_v26 = vld [vmem:[#allocation34_spill] sm:$0xff]  ;;  %v8048_v58 = vld [vmem:[#allocation47_spill] sm:$0xff] }
0x138f   :  { %v4444_v3 = vsel %vm202_vm2, %v4441_v39, %v4434_v14  ;;  %v4449_v4 = vsel %vm202_vm2, %v4434_v14, %v4437_v28  ;;  %v4470_v20 = vsel %vm246_vm4, %v4461_v62, %v7679_v36  ;;  %v4464_v2 = vsel %vm246_vm4, %v7681_v24, %v4461_v62  ;;  %v8039_v36 = vld [vmem:[#allocation20_spill] sm:$0xff]  ;;  %v8046_v13 = vld [vmem:[#allocation50_spill] sm:$0xff]  ;;  %v8047_v14 = vld [vmem:[#allocation23_spill] sm:$0xff] }
0x1390   :  { %v4453_v1 = vmul.f32 %v4444_v3, %v8029_v15  ;;  %4592 = vmatprep.subr.bf16.mxu1 %v4547_v51  ;;  %4634 = vmatpush1.bf16.msra.mxu0 %v4548_v6  ;;  %v4450_v31 = vmul.f32 %v4449_v4, %v8031_v10  ;;  %v4474_v52 = vmul.f32 %v4470_v20, %v8038_v25  ;;  %v8051_v4 = vld [vmem:[#allocation29_spill] sm:$0xff]  ;;  %v8052_v15 = vld [vmem:[#allocation24_spill] sm:$0xff]  ;;  %v8062_v25 = vld [vmem:[#allocation58_spill] sm:$0xff] }
0x1391   :  { %4593 = vmatpush1.bf16.msra.mxu1 %v4546_v5  ;;  %v4472_v57 = vmul.f32 %v4463_v59, %v8039_v36  ;;  %v4473_v24 = vmul.f32 %v4464_v2, %v8042_v41  ;;  %v4554_v37 = vpack.c.bf16 %v8045_v26, %v7592_v46  ;;  %v4558_v5 = vpack.c.bf16 %v8049_v8, %v4471_v29  ;;  %v8057_v59 = vld [vmem:[#allocation55_spill] sm:$0xff]  ;;  %v8065_v29 = vld [vmem:[#allocation30_spill] sm:$0xff] }
0x1392   :  { %v4439_v9 = vpop.permute.xlu1 %4438  ;;  %v4478_v18 = vpop.permute.xlu0 %4477  ;;  %v4553_v17 = vpack.c.bf16 %v8030_v21, %v4453_v1  ;;  %v4561_v6 = vpack.c.bf16 %v8046_v13, %v4474_v52  ;;  %v8073_v8 = vmov 0  }
0x1393   :  { %v4442_v30 = vsel %vm202_vm2, %v4437_v28, %v4439_v9  ;;  %v4443_v47 = vsel %vm202_vm2, %v4439_v9, %v4441_v39  ;;  %v8037_v39 = vld [vmem:[#allocation46_spill] sm:$0xff]  ;;  %v4483_v11 = vsel %vm291_vm6, %v7683_v34, %v4478_v18  ;;  %v4559_v51 = vpack.c.bf16 %v8048_v58, %v4472_v57  ;;  %v8064_v57 = vld [vmem:[#allocation59_spill] sm:$0xff] }
0x1394   :  { %v4451_v12 = vmul.f32 %v4442_v30, %v8032_v40  ;;  %v4452_v55 = vmul.f32 %v4443_v47, %v8033_v42  ;;  %4635 = vmatprep.subr.bf16.mxu0 %v4553_v17  ;;  %v4550_v45 = vpack.c.bf16 %v8037_v39, %v4450_v31  ;;  %v4560_v3 = vpack.c.bf16 %v8050_v43, %v4473_v24  ;;  %v8054_v47 = vld [vmem:[#allocation27_spill] sm:$0xff]  ;;  %v8055_v40 = vld [vmem:[#allocation26_spill] sm:$0xff]  ;;  %v8061_v39 = vld [vmem:[#allocation61_spill] sm:$0xff] }
0x1395   :  { %v8056_v42 = vld [vmem:[#allocation54_spill] sm:$0xff] }
0x1396   :  { %v4552_v33 = vpack.c.bf16 %v8034_v44, %v4452_v55  ;;  %v4480_v23 = vpop.permute.xlu1 %4479  ;;  %v4482_v28 = vpop.permute.xlu0 %4481  ;;  %v4551_v7 = vpack.c.bf16 %v8035_v32, %v4451_v12  ;;  %v8058_v44 = vld [vmem:[#allocation25_spill] sm:$0xff] }
0x1397   :  { %v4491_v50 = vsel %vm291_vm6, %v4482_v28, %v7683_v34  ;;  %v4484_v16 = vsel %vm291_vm6, %v4478_v18, %v4480_v23  ;;  %v4485_v35 = vsel %vm291_vm6, %v4480_v23, %v4482_v28  ;;  %v4492_v34 = vmul.f32 %v4483_v11, %v8051_v4  ;;  %v8053_v18 = vld [vmem:[#allocation57_spill] sm:$0xff]  ;;  %v8059_v23 = vld [vmem:[#allocation28_spill] sm:$0xff] }
0x1398   :  { %4594 = vmatprep.subr.bf16.mxu1 %v4551_v7  ;;  %4636 = vmatpush1.bf16.msra.mxu0 %v4552_v33  ;;  %v4495_v53 = vmul.f32 %v4491_v50, %v8043_v19  ;;  %v4493_v62 = vmul.f32 %v4484_v16, %v8047_v14  ;;  %v4494_v1 = vmul.f32 %v4485_v35, %v8052_v15  ;;  %v8063_v50 = vld [vmem:[#allocation56_spill] sm:$0xff] }
0x1399   :  { %4595 = vmatpush1.bf16.msra.mxu1 %v4550_v45  ;;  %4637 = vmatprep.subr.bf16.mxu0 %v4557_v54  ;;  %v4562_v45 = vpack.c.bf16 %v8061_v39, %v4492_v34  ;;  %v8069_v35 = vld [vmem:[#allocation64_spill] sm:$0xff] }
0x139a   :  { %v4497_v48 = vpop.permute.xlu1 %4496  ;;  %4596 = vmatprep.subr.bf16.mxu1 %v4555_v56  ;;  %v4499_v0 = vpop.permute.xlu0 %4498  ;;  %v4565_v21 = vpack.c.bf16 %v8053_v18, %v4495_v53  ;;  %v4563_v55 = vpack.c.bf16 %v8056_v42, %v4493_v62  ;;  %v4564_v22 = vpack.c.bf16 %v8057_v59, %v4494_v1  ;;  %v8066_v53 = vld [vmem:[#allocation32_spill] sm:$0xff]  ;;  %v8072_v62 = vld [vmem:[#allocation62_spill] sm:$0xff] }
0x139b   :  { %v4504_v17 = vsel %vm336_vm5, %v4497_v48, %v4499_v0 }
0x139c   :  { %4638 = vmatpush1.bf16.msra.mxu0 %v4556_v38  ;;  %v4513_v33 = vmul.f32 %v4504_v17, %v8058_v44  ;;  %v8068_v38 = vld [vmem:[#allocation31_spill] sm:$0xff] }
0x139d   :  { %4597 = vmatpush1.bf16.msra.mxu1 %v4554_v37  ;;  %4639 = vmatprep.subr.bf16.mxu0 %v4561_v6  ;;  %v8070_v37 = vld [vmem:[#allocation63_spill] sm:$0xff]  ;;  %v8071_v6 = vld [vmem:[#allocation65_spill] sm:$0xff] }
0x139e   :  { %v4501_v9 = vpop.permute.xlu1 %4500  ;;  %4598 = vmatprep.subr.bf16.mxu1 %v4559_v51  ;;  %v4503_v46 = vpop.permute.xlu0 %4502  ;;  %v4566_v36 = vpack.c.bf16 %v8063_v50, %v4513_v33  ;;  %v4997_v51 = vcombine.low %v7659_v60, %v7659_v60 }
0x139f   :  { %v4505_v10 = vsel %vm336_vm5, %v4499_v0, %v4501_v9  ;;  %v4506_v31 = vsel %vm336_vm5, %v4501_v9, %v4503_v46  ;;  %v4512_v30 = vsel %vm336_vm5, %v4503_v46, %v4497_v48  ;;  %v8067_v0 = vld [vmem:[#allocation33_spill] sm:$0xff] }
0x13a0   :  { %v4514_v20 = vmul.f32 %v4505_v10, %v8054_v47  ;;  %v4516_v12 = vmul.f32 %v4512_v30, %v8055_v40  ;;  %4640 = vmatpush1.bf16.msra.mxu0 %v4560_v3  ;;  %v4515_v28 = vmul.f32 %v4506_v31, %v8059_v23 }
0x13a1   :  { %4599 = vmatpush1.bf16.msra.mxu1 %v4558_v5  ;;  %4641 = vmatprep.subr.bf16.mxu0 %v4565_v21 }
0x13a2   :  { %v4518_v32 = vpop.permute.xlu1 %4517  ;;  %4600 = vmatprep.subr.bf16.mxu1 %v4563_v55  ;;  %v4520_v7 = vpop.permute.xlu0 %4519  ;;  %v4569_v54 = vpack.c.bf16 %v8060_v63, %v4516_v12  ;;  %v4567_v52 = vpack.c.bf16 %v8062_v25, %v4514_v20  ;;  %v4568_v27 = vpack.c.bf16 %v8064_v57, %v4515_v28  ;;  %v4682_v28 = vld [vmem:[%s7815_s1 + $0x144] sm:$0x3] }
0x13a3   :  { %v4525_v2 = vsel %vm381_vm7, %v4518_v32, %v4520_v7 }
0x13a4   :  { %4642 = vmatpush1.bf16.msra.mxu0 %v4564_v22  ;;  %v4534_v16 = vmul.f32 %v4525_v2, %v8065_v29 }
0x13a5   :  { %4601 = vmatpush1.bf16.msra.mxu1 %v4562_v45  ;;  %4643 = vmatprep.subr.bf16.mxu0 %v4569_v54 }
0x13a6   :  { %v4522_v56 = vpop.permute.xlu1 %4521  ;;  %4602 = vmatprep.subr.bf16.mxu1 %v4567_v52  ;;  %v4524_v61 = vpop.permute.xlu0 %4523  ;;  %v4570_v58 = vpack.c.bf16 %v8072_v62, %v4534_v16 }
0x13a7   :  { %v4526_v41 = vsel %vm381_vm7, %v4520_v7, %v4522_v56  ;;  %v4527_v24 = vsel %vm381_vm7, %v4522_v56, %v4524_v61  ;;  %v4533_v19 = vsel %vm381_vm7, %v4524_v61, %v4518_v32 }
0x13a8   :  { %v4535_v48 = vmul.f32 %v4526_v41, %v8066_v53  ;;  %v4536_v49 = vmul.f32 %v4527_v24, %v8067_v0  ;;  %v4537_v11 = vmul.f32 %v4533_v19, %v8068_v38  ;;  %4644 = vmatpush1.bf16.msra.mxu0 %v4568_v27 }
0x13a9   :  { %4603 = vmatpush1.bf16.msra.mxu1 %v4566_v36 }
0x13aa   :  { %v4572_v26 = vpack.c.bf16 %v8069_v35, %v4536_v49  ;;  %v4571_v13 = vpack.c.bf16 %v8070_v37, %v4535_v48  ;;  %v4573_v14 = vpack.c.bf16 %v8071_v6, %v4537_v11 }
0x13ac   :  { %4604 = vmatprep.subr.bf16.mxu1 %v4571_v13  ;;  %4645 = vmatprep.subr.bf16.mxu0 %v4573_v14 }
0x13ad   :  { %4605 = vmatpush1.bf16.msra.mxu1 %v4570_v58  ;;  %4646 = vmatpush1.bf16.msra.mxu0 %v4572_v26 }
0x13b0   :  { %4621 = vmatmul.mubr.bf16.vlgmr.msra.gmra.mrb[76].mxu1 %v4997_v51  ;;  %4662 = vmatmul.mubr.bf16.vlgmr.msra.gmra.mrb[96].mxu0 %v4997_v51 }
0x13b1   :  { %4740 = vmatprep.mubr.bf16.mxu1 %v8073_v8  ;;  %4781 = vmatprep.mubr.bf16.mxu0 %v8073_v8 }
0x13b7   :  { %v4577_v5 = vpop.permute.xlu1 %4576  ;;  %v4691_v32 = vpop.permute.xlu0 %4690 }
0x1483   :  { %v4622_v43 = vpop.f32.mrb[76].mxu1  ;;  %v4663_v3 = vpop.f32.mrb[96].mxu0 }
0x1484   :  { %v4623_v4 = vadd.f32 %v4622_v43, %v4577_v5  ;;  %v4664_v34 = vadd.f32 %v4663_v3, %v4577_v5  ;;  %v4624_v15 = vpop.f32.mrb[77].mxu1  ;;  %v4665_v1 = vpop.f32.mrb[97].mxu0 }
0x1485   :  { %v4625_v9 = vadd.f32 %v4624_v15, %v4577_v5  ;;  %v4666_v46 = vadd.f32 %v4665_v1, %v4577_v5  ;;  %v4626_v18 = vpop.f32.mrb[78].mxu1  ;;  %v4667_v21 = vpop.f32.mrb[98].mxu0 }
0x1486   :  { %vm4670_vm0 = vcmp.ge.f32.partialorder %v4623_v4, 0.0  ;;  %v4674_v60 = vmul.f32 0.01, %v4623_v4  ;;  %vm4672_vm1 = vcmp.ge.f32.partialorder %v4664_v34, 0.0  ;;  %v4676_v17 = vmul.f32 0.01, %v4664_v34 }
0x1487   :  { %vm4671_vm2 = vcmp.ge.f32.partialorder %v4625_v9, 0.0  ;;  %v4675_v10 = vmul.f32 0.01, %v4625_v9  ;;  %vm4673_vm3 = vcmp.ge.f32.partialorder %v4666_v46, 0.0  ;;  %v4677_v31 = vmul.f32 0.01, %v4666_v46 }
0x1488   :  { %v4678_v30 = vsel %vm4670_vm0, %v4623_v4, %v4674_v60  ;;  %v4680_v47 = vsel %vm4672_vm1, %v4664_v34, %v4676_v17  ;;  %v4627_v20 = vpop.f32.mrb[79].mxu1  ;;  %v4668_v40 = vpop.f32.mrb[99].mxu0 }
0x1489   :  { %v4684_v12 = vpack.c.bf16 %v4678_v30, %v4678_v30  ;;  %v4686_v42 = vpack.c.bf16 %v4680_v47, %v4680_v47  ;;  %v4679_v55 = vsel %vm4671_vm2, %v4625_v9, %v4675_v10  ;;  %v4681_v59 = vsel %vm4673_vm3, %v4666_v46, %v4677_v31 }
0x148a   :  { %v4685_v22 = vpack.c.bf16 %v4679_v55, %v4679_v55  ;;  %v4687_v44 = vpack.c.bf16 %v4681_v59, %v4681_v59 }
0x148b   :  { %v4697_v33 = vsel %vm447_vm8, %v4684_v12, 0  ;;  %v4703_v23 = vsel %vm447_vm8, %v4686_v42, 0 }
0x148c   :  { %5001 = vmatprep.subr.msk.bf16.mxu1 %vm447_vm8, %v4685_v22  ;;  %5003 = vmatprep.subr.msk.bf16.mxu0 %vm447_vm8, %v4687_v44 }
0x148d   :  { %4709 = vmatpush1.bf16.msra.mxu1 %v4697_v33  ;;  %4750 = vmatpush1.bf16.msra.mxu0 %v4703_v23 }
0x1490   :  { %5002 = vmatmul.mubr.msk.bf16.vlgmr.msra.gmra.mrb[80].mxu1 %vm1868_vm12, %v4682_v28  ;;  %5004 = vmatmul.mubr.msk.bf16.vlgmr.msra.gmra.mrb[100].mxu0 %vm1868_vm12, %v4682_v28 }
0x1563   :  { %v4742_v7 = vpop.f32.mrb[80].mxu1  ;;  %v4783_v63 = vpop.f32.mrb[100].mxu0 }
0x1564   :  { %v4743_v54 = vadd.f32 %v4742_v7, %v4691_v32  ;;  %v4784_v39 = vadd.f32 %v4783_v63, %v4691_v32  ;;  %v4744_v45 = vpop.f32.mrb[81].mxu1  ;;  %v4785_v2 = vpop.f32.mrb[101].mxu0 }
0x1565   :  { %v4745_v25 = vadd.f32 %v4744_v45, %v4691_v32  ;;  %v4786_v52 = vadd.f32 %v4785_v2, %v4691_v32  ;;  %v4746_v50 = vpop.f32.mrb[82].mxu1  ;;  %v4787_v36 = vpop.f32.mrb[102].mxu0 }
0x1566   :  { %v4747_v57 = vpop.f32.mrb[83].mxu1  ;;  %v4788_v27 = vpop.f32.mrb[103].mxu0 }
0x1567   :  { %v4792_v56 = vcombine.low %v4743_v54, %v4745_v25  ;;  %v4797_v61 = vcombine.low %v4784_v39, %v4786_v52 }
0x1569   :  { %4794 = vst [vmem:[%s7828_s14] sm:$0x77] %v4792_v56  ;;  %5005 = vst [vmem:[%s7828_s14 + $0x8] sm:$0x77] %v4797_v61 }

</bundles_post_ra>
